<compile_context>
chip_gen: v7x
topology: tpu7x:2x2x1
jax: 0.10.0
libtpu: 0.0.40
codegen_flags: <defaults>
</compile_context>

<pallas_src>
import functools

import jax
import jax.numpy as jnp
import numpy as np
from jax.experimental import pallas as pl
from jax.experimental.pallas import tpu as pltpu

_LANE = 128


def _round_up(x, m):
    return (x + m - 1) // m * m


def _pick_row_tile(H, Wp, target_rows=512):
    """Largest divisor TR of H with TR*Wp a sublane multiple and <= target."""
    divs = [d for d in range(1, H + 1) if H % d == 0]
    legal = [d for d in divs if (d * Wp) % 8 == 0 or d == H]
    fits = [d for d in legal if d * Wp <= target_rows]
    return max(fits) if fits else min(legal)


def _vmem_limit_bytes():
    """Per-generation scoped-VMEM limit (review pt: don't hard-code 32 MiB)."""
    try:
        cap = pltpu.get_tpu_info().vmem_capacity_bytes
    except Exception:
        cap = 64 * 1024 * 1024
    return int(min(cap * 3 // 4, 100 * 1024 * 1024))


def _general_kernel(cin, cout, Wp, TR,
                    x_ref, w1_ref, o1_ref, w2_ref, o2_ref, o_ref,
                    xcat_ref, acc_ref):
    """One row-tile (TR image rows) of one image per grid step.

    x_ref   : (Hp*Wp, cin)         whole padded image, channels NOT padded
    w1_ref  : (3, 3*cin_p, cin_p)  per-dy dx-fused 3x3 taps, BN1 scale folded
    o1_ref  : (1, cin_p)           BN1 offset (f32)
    w2_ref  : (cin_p, cout_p)      1x1 weights, BN2 scale folded
    o2_ref  : (1, cout_p)          BN2 offset (f32)
    o_ref   : (TR*Wp, cout)        output rows for this tile (incl. junk cols)
    xcat_ref: ((TR+2)*Wp, 3*cin_p) lane-concatenated dx-shifted staging
    acc_ref : (TR*Wp, cin_p)       f32 accumulator
    """
    r = pl.program_id(1)
    cin_p = acc_ref.shape[1]
    TRW = TR * Wp                      # output rows this step
    LC = (TR + 2) * Wp                 # staged rows (dy halo)
    base = pl.multiple_of(r * TRW, 8)  # first padded-input row of this tile

    # Stage the three dx-shifted copies side by side on the lane axis; pad
    # channels to cin_p only here (HBM carried just `cin` channels).
    for dx in range(3):
        xcat_ref[:, dx * cin_p:dx * cin_p + cin] = x_ref[pl.ds(base + dx, LC), :]
        if cin_p != cin:
            xcat_ref[:, dx * cin_p + cin:(dx + 1) * cin_p] = jnp.zeros(
                (LC, cin_p - cin), xcat_ref.dtype)

    # 3x3 conv (padding=1): 3 fused matmuls, K = 3*cin_p, f32 accumulation in
    # an explicit VMEM scratch.  acc initialized from the dy=0 matmul.
    acc_ref[...] = jnp.dot(xcat_ref[0:TRW, :], w1_ref[0],
                           preferred_element_type=jnp.float32)
    for dy in (1, 2):
        acc_ref[...] += jnp.dot(xcat_ref[dy * Wp:dy * Wp + TRW, :], w1_ref[dy],
                                preferred_element_type=jnp.float32)

    # BN1 (scale already folded into w1) + ReLU6.
    h = jnp.clip(acc_ref[...] + o1_ref[...], 0.0, 6.0).astype(w2_ref.dtype)

    # 1x1 pointwise conv (single matmul, N padded to a lane multiple for the
    # MXU) + BN2 (scale folded) + ReLU6; store only the real channels.
    out = jnp.dot(h, w2_ref[...], preferred_element_type=jnp.float32)
    out = jnp.clip(out + o2_ref[...], 0.0, 6.0)
    if out.shape[1] != cout:
        out = out[:, :cout]
    o_ref[...] = out.astype(o_ref.dtype)


def fold_general_params(params, compute_dtype=jnp.bfloat16, eps=1e-5):
    """Fold conv bias + eval-mode BN into the weights/offsets (done once).

    BN scales are folded into the conv weights in f32, then cast."""
    (w1, b1, g1, be1, m1, v1, w2, b2, g2, be2, m2, v2) = params
    cin, cout = w1.shape[1], w2.shape[0]
    cin_p, cout_p = _round_up(cin, _LANE), _round_up(cout, _LANE)

    s1 = g1 / jnp.sqrt(v1 + eps)
    o1 = be1 + (b1 - m1) * s1
    s2 = g2 / jnp.sqrt(v2 + eps)
    o2 = be2 + (b2 - m2) * s2

    # w1f[dy, dx*cin_p + ci, co] = w1_torch[co, ci, dy, dx] * s1[co]
    w1_sc = (w1 * s1[:, None, None, None]).astype(jnp.float32)
    w1_taps = jnp.transpose(w1_sc, (2, 3, 1, 0))              # (dy, dx, ci, co)
    w1f = jnp.zeros((3, 3, cin_p, cin_p), jnp.float32)
    w1f = w1f.at[:, :, :cin, :cin].set(w1_taps)
    w1f = w1f.reshape(3, 3 * cin_p, cin_p).astype(compute_dtype)

    # w2f[ci, co] = w2_torch[co, ci, 0, 0] * s2[co]
    w2_sc = (w2[:, :, 0, 0] * s2[:, None]).T.astype(jnp.float32)
    w2f = jnp.zeros((cin_p, cout_p), jnp.float32).at[:cin, :cout].set(w2_sc)
    w2f = w2f.astype(compute_dtype)

    o1v = jnp.zeros((1, cin_p), jnp.float32).at[0, :cin].set(
        o1.astype(jnp.float32))
    o2v = jnp.zeros((1, cout_p), jnp.float32).at[0, :cout].set(
        o2.astype(jnp.float32))

    return dict(w1=w1f, o1=o1v, w2=w2f, o2=o2v,
                cin=cin, cout=cout, cin_p=cin_p, cout_p=cout_p,
                compute_dtype=compute_dtype)


def general_forward(x_nchw, folded):
    B, cin, H, W = x_nchw.shape
    assert cin == folded["cin"]
    cout, cin_p = folded["cout"], folded["cin_p"]
    dt = folded["compute_dtype"]
    Wp = W + 2            # padded width (3x3 halo; 2 junk output cols per row)
    Hp = H + 3            # 1 top halo row + 2 bottom rows (halo + shift slack)

    # Layout glue: NCHW -> channels-last, spatial halo pad only (no channel
    # pad in HBM), rows flattened.
    x = jnp.transpose(x_nchw, (0, 2, 3, 1)).astype(dt)
    x = jnp.pad(x, ((0, 0), (1, 2), (1, 1), (0, 0)))
    x = x.reshape(B, Hp * Wp, cin)

    TR = _pick_row_tile(H, Wp)            # image rows per grid step
    TRW, LC, R = TR * Wp, (TR + 2) * Wp, H // TR

    kernel = functools.partial(_general_kernel, cin, cout, Wp, TR)
    out2d = pl.pallas_call(
        kernel,
        grid=(B, R),
        in_specs=[
            # Whole padded image per batch element; constant along the row
            # axis so it is DMA'd once per image (row tiles read overlapping
            # windows of it in-kernel).
            pl.BlockSpec((None, Hp * Wp, cin), lambda b, r: (b, 0, 0)),
            # Constants: whole-array VMEM residents (no double buffering).
            pl.BlockSpec(memory_space=pltpu.MemorySpace.VMEM),   # w1
            pl.BlockSpec(memory_space=pltpu.MemorySpace.VMEM),   # o1
            pl.BlockSpec(memory_space=pltpu.MemorySpace.VMEM),   # w2
            pl.BlockSpec(memory_space=pltpu.MemorySpace.VMEM),   # o2
        ],
        out_specs=pl.BlockSpec((None, TRW, cout), lambda b, r: (b, r, 0)),
        out_shape=jax.ShapeDtypeStruct((B, H * Wp, cout), dt),
        scratch_shapes=[
            pltpu.VMEM((LC, 3 * cin_p), dt),        # dx-fused staging
            pltpu.VMEM((TRW, cin_p), jnp.float32),  # f32 accumulator
        ],
        compiler_params=pltpu.CompilerParams(
            dimension_semantics=("parallel", "parallel"),
            vmem_limit_bytes=_vmem_limit_bytes(),
        ),
    )(x, folded["w1"], folded["o1"], folded["w2"], folded["o2"])

    # Drop the 2 junk columns per row; back to NCHW.
    out = out2d.reshape(B, H, Wp, cout)[:, :, :W, :]
    return jnp.transpose(out, (0, 3, 1, 2))


def torch_like_reference(x_nchw, params):
    """Pure-JAX reference mirroring the PyTorch forward (eval-mode BN)."""
    (w1, b1, g1, be1, m1, v1, w2, b2, g2, be2, m2, v2) = params
    eps = 1e-5

    def bn(x, g, be, m, v):
        return (x - m[None, :, None, None]) / jnp.sqrt(v + eps)[None, :, None, None] \
               * g[None, :, None, None] + be[None, :, None, None]

    y = jax.lax.conv_general_dilated(
        x_nchw, w1, window_strides=(1, 1), padding=((1, 1), (1, 1)),
        dimension_numbers=('NCHW', 'OIHW', 'NCHW'))
    y = y + b1[None, :, None, None]
    y = jnp.clip(bn(y, g1, be1, m1, v1), 0.0, 6.0)

    z = jax.lax.conv_general_dilated(
        y, w2, window_strides=(1, 1), padding=((0, 0), (0, 0)),
        dimension_numbers=('NCHW', 'OIHW', 'NCHW'))
    z = z + b2[None, :, None, None]
    z = jnp.clip(bn(z, g2, be2, m2, v2), 0.0, 6.0)
    return z


if __name__ == "__main__":
    B, Cin, Cout, H, W = 2, 4, 8, 16, 16
    key = jax.random.PRNGKey(0)
    keys = jax.random.split(key, 13)

    x = jax.random.normal(keys[0], (B, Cin, H, W), jnp.float32)

    # Deterministic synthetic parameters (shapes from the module's __init__).
    w1 = 0.2 * jax.random.normal(keys[1], (Cin, Cin, 3, 3), jnp.float32)
    b1 = 0.1 * jax.random.normal(keys[2], (Cin,), jnp.float32)
    g1 = 1.0 + 0.1 * jax.random.normal(keys[3], (Cin,), jnp.float32)
    be1 = 0.1 * jax.random.normal(keys[4], (Cin,), jnp.float32)
    m1 = 0.1 * jax.random.normal(keys[5], (Cin,), jnp.float32)
    v1 = 1.0 + 0.5 * jax.random.uniform(keys[6], (Cin,), jnp.float32)

    w2 = 0.2 * jax.random.normal(keys[7], (Cout, Cin, 1, 1), jnp.float32)
    b2 = 0.1 * jax.random.normal(keys[8], (Cout,), jnp.float32)
    g2 = 1.0 + 0.1 * jax.random.normal(keys[9], (Cout,), jnp.float32)
    be2 = 0.1 * jax.random.normal(keys[10], (Cout,), jnp.float32)
    m2 = 0.1 * jax.random.normal(keys[11], (Cout,), jnp.float32)
    v2 = 1.0 + 0.5 * jax.random.uniform(keys[12], (Cout,), jnp.float32)

    params = (w1, b1, g1, be1, m1, v1, w2, b2, g2, be2, m2, v2)
    ref = torch_like_reference(x, params)

    # f32 operands/output: tight correctness check.
    folded32 = fold_general_params(params, compute_dtype=jnp.float32)
    out32 = jax.block_until_ready(general_forward(x, folded32))
    np.testing.assert_allclose(np.asarray(out32), np.asarray(ref),
                               rtol=1e-4, atol=1e-4)

    # bf16 operands/output (MXU-native, f32 accumulation + epilogue):
    # looser sanity check for the reduced-precision path.
    folded16 = fold_general_params(params, compute_dtype=jnp.bfloat16)
    out16 = jax.block_until_ready(general_forward(x, folded16))
    np.testing.assert_allclose(np.asarray(out16).astype(np.float32),
                               np.asarray(ref), rtol=5e-2, atol=5e-2)

    print("KERNEL_OK")
</pallas_src>

<mosaic_0001>
module attributes {stable_mosaic.version = 11 : i64} {
  func.func @_general_kernel(%arg0: i32, %arg1: i32, %arg2: memref<1x342x4xf32, #tpu.memory_space<vmem>>, %arg3: memref<3x384x128xf32, #tpu.memory_space<vmem>>, %arg4: memref<1x128xf32, #tpu.memory_space<vmem>>, %arg5: memref<128x128xf32, #tpu.memory_space<vmem>>, %arg6: memref<1x128xf32, #tpu.memory_space<vmem>>, %arg7: memref<1x288x8xf32, #tpu.memory_space<vmem>>, %arg8: memref<324x384xf32, #tpu.memory_space<vmem>>, %arg9: memref<288x128xf32, #tpu.memory_space<vmem>>) attributes {dimension_semantics = [#tpu.dimension_semantics<parallel>, #tpu.dimension_semantics<parallel>], iteration_bounds = array<i64: 2, 1>, scalar_prefetch = 0 : i64, scratch_operands = 2 : i64, tpu.core_type = #tpu.core_type<tc>, window_params = [{transform_indices = @transform_0, window_bounds = array<i64: 1, 342, 4>}, {pipeline_mode = #tpu.pipeline_mode<synchronous>, transform_indices = @transform_1, window_bounds = array<i64: 3, 384, 128>}, {pipeline_mode = #tpu.pipeline_mode<synchronous>, transform_indices = @transform_2, window_bounds = array<i64: 1, 128>}, {pipeline_mode = #tpu.pipeline_mode<synchronous>, transform_indices = @transform_3, window_bounds = array<i64: 128, 128>}, {pipeline_mode = #tpu.pipeline_mode<synchronous>, transform_indices = @transform_4, window_bounds = array<i64: 1, 128>}, {transform_indices = @transform_5, window_bounds = array<i64: 1, 288, 8>}]} {
    %c288_i32 = arith.constant 288 : i32
    %0 = arith.muli %arg1, %c288_i32 : i32
    %1 = tpu.assume_multiple %0, 8 : i32
    %c0_i32 = arith.constant 0 : i32
    %2 = arith.addi %1, %c0_i32 : i32
    %c0 = arith.constant 0 : index
    %3 = arith.index_cast %2 : i32 to index
    %c0_0 = arith.constant 0 : index
    %4 = vector.load %arg2[%c0, %3, %c0_0] : memref<1x342x4xf32, #tpu.memory_space<vmem>>, vector<1x324x4xf32>
    %5 = vector.shape_cast %4 : vector<1x324x4xf32> to vector<324x4xf32>
    %c0_1 = arith.constant 0 : index
    %c0_2 = arith.constant 0 : index
    %6 = vector.load %arg8[%c0_1, %c0_2] : memref<324x384xf32, #tpu.memory_space<vmem>>, vector<324x4xf32>
    tpu.vector_store %arg8[%c0_1, %c0_2], %5 {strides = array<i32>} : memref<324x384xf32, #tpu.memory_space<vmem>>, vector<324x4xf32>,
    %cst = arith.constant 0.000000e+00 : f32
    %7 = vector.broadcast %cst : f32 to vector<324x124xf32>
    %c0_3 = arith.constant 0 : index
    %c4 = arith.constant 4 : index
    %8 = vector.load %arg8[%c0_3, %c4] : memref<324x384xf32, #tpu.memory_space<vmem>>, vector<324x124xf32>
    tpu.vector_store %arg8[%c0_3, %c4], %7 {strides = array<i32>} : memref<324x384xf32, #tpu.memory_space<vmem>>, vector<324x124xf32>,
    %c1_i32 = arith.constant 1 : i32
    %9 = arith.addi %1, %c1_i32 : i32
    %c0_4 = arith.constant 0 : index
    %10 = arith.index_cast %9 : i32 to index
    %c0_5 = arith.constant 0 : index
    %11 = vector.load %arg2[%c0_4, %10, %c0_5] : memref<1x342x4xf32, #tpu.memory_space<vmem>>, vector<1x324x4xf32>
    %12 = vector.shape_cast %11 : vector<1x324x4xf32> to vector<324x4xf32>
    %c0_6 = arith.constant 0 : index
    %c128 = arith.constant 128 : index
    %13 = vector.load %arg8[%c0_6, %c128] : memref<324x384xf32, #tpu.memory_space<vmem>>, vector<324x4xf32>
    tpu.vector_store %arg8[%c0_6, %c128], %12 {strides = array<i32>} : memref<324x384xf32, #tpu.memory_space<vmem>>, vector<324x4xf32>,
    %cst_7 = arith.constant 0.000000e+00 : f32
    %14 = vector.broadcast %cst_7 : f32 to vector<324x124xf32>
    %c0_8 = arith.constant 0 : index
    %c132 = arith.constant 132 : index
    %15 = vector.load %arg8[%c0_8, %c132] : memref<324x384xf32, #tpu.memory_space<vmem>>, vector<324x124xf32>
    tpu.vector_store %arg8[%c0_8, %c132], %14 {strides = array<i32>} : memref<324x384xf32, #tpu.memory_space<vmem>>, vector<324x124xf32>,
    %c2_i32 = arith.constant 2 : i32
    %16 = arith.addi %1, %c2_i32 : i32
    %c0_9 = arith.constant 0 : index
    %17 = arith.index_cast %16 : i32 to index
    %c0_10 = arith.constant 0 : index
    %18 = vector.load %arg2[%c0_9, %17, %c0_10] : memref<1x342x4xf32, #tpu.memory_space<vmem>>, vector<1x324x4xf32>
    %19 = vector.shape_cast %18 : vector<1x324x4xf32> to vector<324x4xf32>
    %c0_11 = arith.constant 0 : index
    %c256 = arith.constant 256 : index
    %20 = vector.load %arg8[%c0_11, %c256] : memref<324x384xf32, #tpu.memory_space<vmem>>, vector<324x4xf32>
    tpu.vector_store %arg8[%c0_11, %c256], %19 {strides = array<i32>} : memref<324x384xf32, #tpu.memory_space<vmem>>, vector<324x4xf32>,
    %cst_12 = arith.constant 0.000000e+00 : f32
    %21 = vector.broadcast %cst_12 : f32 to vector<324x124xf32>
    %c0_13 = arith.constant 0 : index
    %c260 = arith.constant 260 : index
    %22 = vector.load %arg8[%c0_13, %c260] : memref<324x384xf32, #tpu.memory_space<vmem>>, vector<324x124xf32>
    tpu.vector_store %arg8[%c0_13, %c260], %21 {strides = array<i32>} : memref<324x384xf32, #tpu.memory_space<vmem>>, vector<324x124xf32>,
    %c0_14 = arith.constant 0 : index
    %c0_15 = arith.constant 0 : index
    %23 = vector.load %arg8[%c0_14, %c0_15] : memref<324x384xf32, #tpu.memory_space<vmem>>, vector<288x384xf32>
    %c0_16 = arith.constant 0 : index
    %c0_17 = arith.constant 0 : index
    %c0_18 = arith.constant 0 : index
    %24 = vector.load %arg3[%c0_16, %c0_17, %c0_18] : memref<3x384x128xf32, #tpu.memory_space<vmem>>, vector<1x384x128xf32>
    %25 = vector.shape_cast %24 : vector<1x384x128xf32> to vector<384x128xf32>
    %cst_19 = arith.constant dense<0.000000e+00> : vector<288x128xf32>
    %26 = tpu.matmul %23, %25, %cst_19 {dimension_numbers = #tpu.dot_dimension_numbers<[1], [0], [0], [1], [0, 0, 1, 1], [], []>} : vector<288x384xf32>, vector<384x128xf32>, vector<288x128xf32> -> vector<288x128xf32>
    %c0_20 = arith.constant 0 : index
    %c0_21 = arith.constant 0 : index
    %27 = vector.load %arg9[%c0_20, %c0_21] : memref<288x128xf32, #tpu.memory_space<vmem>>, vector<288x128xf32>
    tpu.vector_store %arg9[%c0_20, %c0_21], %26 {strides = array<i32>} : memref<288x128xf32, #tpu.memory_space<vmem>>, vector<288x128xf32>,
    %c0_22 = arith.constant 0 : index
    %c0_23 = arith.constant 0 : index
    %28 = vector.load %arg9[%c0_22, %c0_23] : memref<288x128xf32, #tpu.memory_space<vmem>>, vector<288x128xf32>
    %c18 = arith.constant 18 : index
    %c0_24 = arith.constant 0 : index
    %29 = vector.load %arg8[%c18, %c0_24] : memref<324x384xf32, #tpu.memory_space<vmem>>, vector<288x384xf32>
    %c1 = arith.constant 1 : index
    %c0_25 = arith.constant 0 : index
    %c0_26 = arith.constant 0 : index
    %30 = vector.load %arg3[%c1, %c0_25, %c0_26] : memref<3x384x128xf32, #tpu.memory_space<vmem>>, vector<1x384x128xf32>
    %31 = vector.shape_cast %30 : vector<1x384x128xf32> to vector<384x128xf32>
    %cst_27 = arith.constant dense<0.000000e+00> : vector<288x128xf32>
    %32 = tpu.matmul %29, %31, %cst_27 {dimension_numbers = #tpu.dot_dimension_numbers<[1], [0], [0], [1], [0, 0, 1, 1], [], []>} : vector<288x384xf32>, vector<384x128xf32>, vector<288x128xf32> -> vector<288x128xf32>
    %33 = arith.addf %28, %32 : vector<288x128xf32>
    %c0_28 = arith.constant 0 : index
    %c0_29 = arith.constant 0 : index
    %34 = vector.load %arg9[%c0_28, %c0_29] : memref<288x128xf32, #tpu.memory_space<vmem>>, vector<288x128xf32>
    tpu.vector_store %arg9[%c0_28, %c0_29], %33 {strides = array<i32>} : memref<288x128xf32, #tpu.memory_space<vmem>>, vector<288x128xf32>,
    %c0_30 = arith.constant 0 : index
    %c0_31 = arith.constant 0 : index
    %35 = vector.load %arg9[%c0_30, %c0_31] : memref<288x128xf32, #tpu.memory_space<vmem>>, vector<288x128xf32>
    %c36 = arith.constant 36 : index
    %c0_32 = arith.constant 0 : index
    %36 = vector.load %arg8[%c36, %c0_32] : memref<324x384xf32, #tpu.memory_space<vmem>>, vector<288x384xf32>
    %c2 = arith.constant 2 : index
    %c0_33 = arith.constant 0 : index
    %c0_34 = arith.constant 0 : index
    %37 = vector.load %arg3[%c2, %c0_33, %c0_34] : memref<3x384x128xf32, #tpu.memory_space<vmem>>, vector<1x384x128xf32>
    %38 = vector.shape_cast %37 : vector<1x384x128xf32> to vector<384x128xf32>
    %cst_35 = arith.constant dense<0.000000e+00> : vector<288x128xf32>
    %39 = tpu.matmul %36, %38, %cst_35 {dimension_numbers = #tpu.dot_dimension_numbers<[1], [0], [0], [1], [0, 0, 1, 1], [], []>} : vector<288x384xf32>, vector<384x128xf32>, vector<288x128xf32> -> vector<288x128xf32>
    %40 = arith.addf %35, %39 : vector<288x128xf32>
    %c0_36 = arith.constant 0 : index
    %c0_37 = arith.constant 0 : index
    %41 = vector.load %arg9[%c0_36, %c0_37] : memref<288x128xf32, #tpu.memory_space<vmem>>, vector<288x128xf32>
    tpu.vector_store %arg9[%c0_36, %c0_37], %40 {strides = array<i32>} : memref<288x128xf32, #tpu.memory_space<vmem>>, vector<288x128xf32>,
    %c0_38 = arith.constant 0 : index
    %c0_39 = arith.constant 0 : index
    %42 = vector.load %arg9[%c0_38, %c0_39] : memref<288x128xf32, #tpu.memory_space<vmem>>, vector<288x128xf32>
    %c0_40 = arith.constant 0 : index
    %c0_41 = arith.constant 0 : index
    %43 = vector.load %arg4[%c0_40, %c0_41] : memref<1x128xf32, #tpu.memory_space<vmem>>, vector<1x128xf32>
    %44 = vector.broadcast %43 : vector<1x128xf32> to vector<288x128xf32>
    %45 = arith.addf %42, %44 : vector<288x128xf32>
    %cst_42 = arith.constant 0.000000e+00 : f32
    %cst_43 = arith.constant 6.000000e+00 : f32
    %46 = vector.broadcast %cst_42 : f32 to vector<288x128xf32>
    %47 = arith.maximumf %46, %45 : vector<288x128xf32>
    %48 = vector.broadcast %cst_43 : f32 to vector<288x128xf32>
    %49 = arith.minimumf %48, %47 : vector<288x128xf32>
    %c0_44 = arith.constant 0 : index
    %c0_45 = arith.constant 0 : index
    %50 = vector.load %arg5[%c0_44, %c0_45] : memref<128x128xf32, #tpu.memory_space<vmem>>, vector<128x128xf32>
    %cst_46 = arith.constant dense<0.000000e+00> : vector<288x128xf32>
    %51 = tpu.matmul %49, %50, %cst_46 {dimension_numbers = #tpu.dot_dimension_numbers<[1], [0], [0], [1], [0, 0, 1, 1], [], []>} : vector<288x128xf32>, vector<128x128xf32>, vector<288x128xf32> -> vector<288x128xf32>
    %c0_47 = arith.constant 0 : index
    %c0_48 = arith.constant 0 : index
    %52 = vector.load %arg6[%c0_47, %c0_48] : memref<1x128xf32, #tpu.memory_space<vmem>>, vector<1x128xf32>
    %53 = vector.broadcast %52 : vector<1x128xf32> to vector<288x128xf32>
    %54 = arith.addf %51, %53 : vector<288x128xf32>
    %cst_49 = arith.constant 0.000000e+00 : f32
    %cst_50 = arith.constant 6.000000e+00 : f32
    %55 = vector.broadcast %cst_49 : f32 to vector<288x128xf32>
    %56 = arith.maximumf %55, %54 : vector<288x128xf32>
    %57 = vector.broadcast %cst_50 : f32 to vector<288x128xf32>
    %58 = arith.minimumf %57, %56 : vector<288x128xf32>
    %59 = vector.extract_strided_slice %58 {offsets = [0, 0], sizes = [288, 8], strides = [1, 1]} : vector<288x128xf32> to vector<288x8xf32>
    %c0_51 = arith.constant 0 : index
    %c0_52 = arith.constant 0 : index
    %c0_53 = arith.constant 0 : index
    %60 = vector.load %arg7[%c0_51, %c0_52, %c0_53] : memref<1x288x8xf32, #tpu.memory_space<vmem>>, vector<1x288x8xf32>
    %61 = vector.shape_cast %60 : vector<1x288x8xf32> to vector<288x8xf32>
    %62 = vector.shape_cast %59 : vector<288x8xf32> to vector<1x288x8xf32>
    tpu.vector_store %arg7[%c0_51, %c0_52, %c0_53], %62 {strides = array<i32>} : memref<1x288x8xf32, #tpu.memory_space<vmem>>, vector<1x288x8xf32>,
    return
  }
  func.func @transform_0(%arg0: i32, %arg1: i32) -> (i32, i32, i32) {
    %c0_i32 = arith.constant 0 : i32
    %c0_i32_0 = arith.constant 0 : i32
    %c0_i32_1 = arith.constant 0 : i32
    return %arg0, %c0_i32, %c0_i32_0 : i32, i32, i32
  }
  func.func @transform_1(%arg0: i32, %arg1: i32) -> (i32, i32, i32) {
    %c0_i32 = arith.constant 0 : i32
    %c0_i32_0 = arith.constant 0 : i32
    %c0_i32_1 = arith.constant 0 : i32
    %c0_i32_2 = arith.constant 0 : i32
    return %c0_i32, %c0_i32_0, %c0_i32_1 : i32, i32, i32
  }
  func.func @transform_2(%arg0: i32, %arg1: i32) -> (i32, i32) {
    %c0_i32 = arith.constant 0 : i32
    %c0_i32_0 = arith.constant 0 : i32
    %c0_i32_1 = arith.constant 0 : i32
    return %c0_i32, %c0_i32_0 : i32, i32
  }
  func.func @transform_3(%arg0: i32, %arg1: i32) -> (i32, i32) {
    %c0_i32 = arith.constant 0 : i32
    %c0_i32_0 = arith.constant 0 : i32
    %c0_i32_1 = arith.constant 0 : i32
    return %c0_i32, %c0_i32_0 : i32, i32
  }
  func.func @transform_4(%arg0: i32, %arg1: i32) -> (i32, i32) {
    %c0_i32 = arith.constant 0 : i32
    %c0_i32_0 = arith.constant 0 : i32
    %c0_i32_1 = arith.constant 0 : i32
    return %c0_i32, %c0_i32_0 : i32, i32
  }
  func.func @transform_5(%arg0: i32, %arg1: i32) -> (i32, i32, i32) {
    %c0_i32 = arith.constant 0 : i32
    %c0_i32_0 = arith.constant 0 : i32
    return %arg0, %arg1, %c0_i32 : i32, i32, i32
  }
}

</mosaic_0001>

<bundles_post_ra>
// kernel: tpu_custom_call.1
= control target key start
LH: loop header
LB: loop body
LE: loop exit
PB: predicated region body
PF: predicated region fallthrough
CT: control target
= control target key end

     0   :  { %10 = vsyncpa [#allocation5], 0  ;;  %s5414_s18 = smov 0   ;;  %s5416_s19 = smov 0   ;;  %s7420_s0 = inlined_call_operand.vmem [shape: f32[2,342,4], index: 0, kind: input, shape index: {}]   ;;  %s7421_s1 = inlined_call_operand.hbm [shape: f32[3,384,128], index: 1, kind: input, shape index: {}]   ;;  %s7422_s2 = inlined_call_operand.vmem [shape: f32[1,128], index: 2, kind: input, shape index: {}]   ;;  %s7423_s3 = inlined_call_operand.vmem [shape: f32[128,128], index: 3, kind: input, shape index: {}]   ;;  %s7424_s4 = inlined_call_operand.vmem [shape: f32[1,128], index: 4, kind: input, shape index: {}]   ;;  %s7425_s5 = inlined_call_operand.vmem [shape: f32[2,288,8], index: 5, kind: output, shape index: {}]  }
   0x1   :  { %s5418_s20 = smov 0  }
   0x2 LB: > { %s4347_s21 = sadd.s32 4294967295, %s5377_s20   ;;  %s28_s22 = sadd.s32 1, %s5373_s19  ;;  %s5377_s20 = sphi %s5418_s20, %s16_s20   ;;  %s5373_s19 = sphi %s5416_s19, %s7476_s19   ;;  %s5369_s18 = sphi %s5414_s18, %s7475_s18  }
   0x3   : > { %p30_p0 = scmp.ge.s32.totalorder %s28_s22, 2  ;;  %p4349_p1 = scmp.ge.s32.totalorder %s5377_s20, 1 }
   0x4   : > { %p171_p2 = scmp.lt.s32.totalorder %s5377_s20, 3  ;;  %p5439_p4 = scmp.eq.s32.totalorder %s4347_s21, 0 }
   0x5   : > { %s7478_s22 = smov (%p30_p0, %s28_s22), 0  ;;  %s5379_s25 = smov [#allocation4]  }
   0x6   : > { %p5435_p3 = pnand %p4349_p1, %p171_p2  ;;  %s183_s26 = sshll.u32 %s5379_s25, 4  ;;  %s184_s26 = int_to_ptr.vmem [resolvable:$true] %s183_s26 }
   0x7   : > { %s7435_s24 = scalar_select %p5439_p4, 1, 0 }
   0x8   : > { %s7434_s23 = scalar_select %p5435_p3, 1, 0 }
   0x9   : > { %p5288_p5 = pneg %p5435_p3  ;;  %s5323_s30 = scalar_lea.hbm %s7421_s1, 18432 }
   0xa   : > { %p5324_p7 = scmp.ne.s32.totalorder %s7421_s1, %s5323_s30  ;;  %p5330_p11 = scmp.lt.u32.totalorder %s5323_s30, %s7421_s1 }
   0xb   : > { %p5447_p6 = pnand %p5439_p4, %p5288_p5 }
   0xd   : > { %p5325_p8 = pneg %p5447_p6 }
   0xf   : > { %p5326_p9 = pnand %p5325_p8, %p5324_p7 }
  0x11   : > { %p5327_p10 = pneg %p5326_p9 }
  0x13   : > { %p5332_p12 = pnand %p5330_p11, %p5327_p10 }
  0x15   : > { %5335 = shalt.err (!%p5332_p12)
}
  0x16   : > { %s5336_s10 = scalar_lea.vmem %s184_s26, 18432  ;;  %p5344_p2 = scmp.lt.s32.totalorder %s184_s26, %s184_s26 }
  0x17   : > { %p5337_p13 = scmp.ne.s32.totalorder %s184_s26, %s5336_s10  ;;  %p5345_p5 = scmp.lt.s32.totalorder %s5336_s10, %s5336_s10 }
  0x19   : > { %p5339_p0 = pnand %p5337_p13, %p5325_p8  ;;  %p5346_p4 = por %p5345_p5, %p5344_p2 }
  0x1b   : > { %p5340_p1 = pneg %p5339_p0 }
  0x1d   : > { %p5347_p3 = pnand %p5346_p4, %p5340_p1 }
  0x1f   : > { %5350 = shalt.err (!%p5347_p3)
}
  0x20   : > { %s5380_s11 = smov 128   ;;  %s5381_s12 = smov 8  }
  0x21   : > { %5291 = dma.hbm_to_vmem [thread:$0]  (!%p5447_p6), %s7421_s1, 18432, %s184_s26, [#allocation5], %s5380_s11, %s5380_s11, %s5381_s12  }
  0x22   : > { %p7437_p7 = scmp.ne.s32.totalorder %s7434_s23, 0 }
  0x24   : > { %216 = sbr.rel (%p7437_p7) target bundleno = 910 (0x38e), region = 40 }
  0x2b   : > { %p7438_p9 = scmp.ne.s32.totalorder %s7435_s24, 0 }
  0x2d   : > { %5364 = dma.done.wait (%p7438_p9), [#allocation5], 18432  }
  0x2e   : > { %5366 = vsyncadd (%p7438_p9), [#allocation5], 4294948864  ;;  %v5382_v0 = vmov 0.0|0.0   ;;  %p248_p3 = scmp.lt.s32.totalorder %s5369_s18, 1  ;;  %v750_v1 = vld [vmem:[#allocation4] sm:$0xff]  ;;  %v751_v2 = vld [vmem:[#allocation4 + $0x8] sm:$0xff] }
  0x2f   : > { %4994 = vmatprep.subr.bf16.mxu0 %v5382_v0  ;;  %v782_v3 = vld [vmem:[#allocation4 + $0x100] sm:$0xff]  ;;  %v4995_v4 = vpack.c.bf16 %v751_v2, %v750_v1  ;;  %v783_v5 = vld [vmem:[#allocation4 + $0x108] sm:$0xff]  ;;  %v752_v6 = vld [vmem:[#allocation4 + $0x10] sm:$0xff]  ;;  %vm306_vm0 = vcmask 31744   ;;  %vm349_vm1 = vcmask 1047584   ;;  %v7431_v31 = vmov 0.0  }
  0x30   : > { %s7480_s18 = smov (!%p248_p3, %s5369_s18), 1  ;;  %v753_v7 = vld [vmem:[#allocation4 + $0x18] sm:$0xff]  ;;  %v5042_v8 = vpack.c.bf16 %v783_v5, %v782_v3  ;;  %v784_v9 = vld [vmem:[#allocation4 + $0x110] sm:$0xff]  ;;  %v786_v13 = vld [vmem:[#allocation4 + $0x120] sm:$0xff]  ;;  %vm1631_vm2 = vcmask 1045504   ;;  %vm2828_vm3 = vcmask 1043456  }
  0x31   : > { %v785_v10 = vld [vmem:[#allocation4 + $0x118] sm:$0xff]  ;;  %4996 = vmatpush1.bf16.msra.mxu0 %v4995_v4  ;;  %v4998_v11 = vpack.c.bf16 %v753_v7, %v752_v6  ;;  %v787_v14 = vld [vmem:[#allocation4 + $0x128] sm:$0xff]  ;;  %s5282_s15 = smul.u32 344, %s7480_s18  ;;  %v754_v15 = vld [vmem:[#allocation4 + $0x20] sm:$0xff]  ;;  %vm347_vm4 = vcmask 27648   ;;  %vm390_vm5 = vcmask 1043488  }
  0x32   : > { %v5046_v12 = vpack.c.bf16 %v785_v10, %v784_v9  ;;  %5043 = vmatprep.subr.bf16.mxu1 %v5042_v8  ;;  %4997 = vmatprep.subr.bf16.mxu0 %v5382_v0  ;;  %v755_v16 = vld [vmem:[#allocation4 + $0x28] sm:$0xff]  ;;  %v5050_v17 = vpack.c.bf16 %v787_v14, %v786_v13  ;;  %v788_v19 = vld [vmem:[#allocation4 + $0x130] sm:$0xff]  ;;  %v789_v20 = vld [vmem:[#allocation4 + $0x138] sm:$0xff]  ;;  %s5283_s13 = smul.u32 288, %s7480_s18  ;;  %vm4209_vm6 = vcmask 64512  }
  0x33   : > { %5045 = vmatpush3.bf16.msra.mxu1 %v5042_v8  ;;  %v5001_v18 = vpack.c.bf16 %v755_v16, %v754_v15  ;;  %s5483_s21 = scalar_lea.vmem %s7420_s0, %s5282_s15  ;;  %v756_v21 = vld [vmem:[#allocation4 + $0x30] sm:$0xff]  ;;  %v757_v22 = vld [vmem:[#allocation4 + $0x38] sm:$0xff]  ;;  %v5054_v23 = vpack.c.bf16 %v789_v20, %v788_v19  ;;  %v790_v26 = vld [vmem:[#allocation4 + $0x140] sm:$0xff] }
  0x34   : > { %5047 = vmatprep.subr.bf16.mxu1 %v5046_v12  ;;  %v4397_v24 = vld [vmem:[%s5483_s21 + $0x2] sm:$0xff]  ;;  %v5004_v25 = vpack.c.bf16 %v757_v22, %v756_v21  ;;  %v4398_v28 = vld [vmem:[%s5483_s21 + $0xa] sm:$0xff]  ;;  %v758_v29 = vld [vmem:[#allocation4 + $0x40] sm:$0xff]  ;;  %s7303_s16 = scalar_lea.vmem %s7425_s5, %s5283_s13 }
  0x35   : > { %4999 = vmatpush1.bf16.msra.mxu0 %v4998_v11  ;;  %v791_v27 = vld [vmem:[#allocation4 + $0x148] sm:$0xff]  ;;  %560 = vst.msk [vmem:[#allocation2 + $0x10] sm:$0xff] %vm306_vm0, %v4397_v24  ;;  %561 = vst.msk [vmem:[#allocation2 + $0x28] sm:$0xff] %vm306_vm0, %v4398_v28  ;;  %v4399_v32 = vld [vmem:[%s5483_s21 + $0x12] sm:$0xff] }
  0x36   : > { %5000 = vmatprep.subr.bf16.mxu0 %v5382_v0  ;;  %v759_v30 = vld [vmem:[#allocation4 + $0x48] sm:$0xff]  ;;  %601 = vst.msk [vmem:[#allocation2 + $0x10] sm:$0xff] %vm349_vm1, %v7431_v31  ;;  %602 = vst.msk [vmem:[#allocation2 + $0x28] sm:$0xff] %vm349_vm1, %v7431_v31  ;;  %v5058_v34 = vpack.c.bf16 %v791_v27, %v790_v26  ;;  %v792_v37 = vld [vmem:[#allocation4 + $0x150] sm:$0xff] }
  0x37   : > { %5049 = vmatpush3.bf16.msra.mxu1 %v5046_v12  ;;  %562 = vst.msk [vmem:[#allocation2 + $0x40] sm:$0xff] %vm306_vm0, %v4399_v32  ;;  %v4400_v33 = vld [vmem:[%s5483_s21 + $0x1a] sm:$0xff]  ;;  %v4401_v35 = vld [vmem:[%s5483_s21 + $0x22] sm:$0xff]  ;;  %v5007_v36 = vpack.c.bf16 %v759_v30, %v758_v29  ;;  %v793_v38 = vld [vmem:[#allocation4 + $0x158] sm:$0xff] }
  0x38   : > { %5051 = vmatprep.subr.bf16.mxu1 %v5050_v17  ;;  %603 = vst.msk [vmem:[#allocation2 + $0x40] sm:$0xff] %vm349_vm1, %v7431_v31  ;;  %v4402_v39 = vld [vmem:[%s5483_s21 + $0x2a] sm:$0xff]  ;;  %v4403_v42 = vld [vmem:[%s5483_s21 + $0x32] sm:$0xff]  ;;  %v4404_v43 = vld [vmem:[%s5483_s21 + $0x3a] sm:$0xff]  ;;  %v5062_v44 = vpack.c.bf16 %v793_v38, %v792_v37 }
  0x39   : > { %5002 = vmatpush1.bf16.msra.mxu0 %v5001_v18  ;;  %563 = vst.msk [vmem:[#allocation2 + $0x58] sm:$0xff] %vm306_vm0, %v4400_v33  ;;  %564 = vst.msk [vmem:[#allocation2 + $0x70] sm:$0xff] %vm306_vm0, %v4401_v35  ;;  %v760_v40 = vld [vmem:[#allocation4 + $0x50] sm:$0xff]  ;;  %v761_v41 = vld [vmem:[#allocation4 + $0x58] sm:$0xff] }
  0x3a   : > { %5003 = vmatprep.subr.bf16.mxu0 %v5382_v0  ;;  %604 = vst.msk [vmem:[#allocation2 + $0x58] sm:$0xff] %vm349_vm1, %v7431_v31  ;;  %605 = vst.msk [vmem:[#allocation2 + $0x70] sm:$0xff] %vm349_vm1, %v7431_v31  ;;  %v762_v45 = vld [vmem:[#allocation4 + $0x60] sm:$0xff]  ;;  %v4405_v46 = vld [vmem:[%s5483_s21 + $0x42] sm:$0xff]  ;;  %v5010_v47 = vpack.c.bf16 %v761_v41, %v760_v40 }
  0x3b   : > { %5053 = vmatpush3.bf16.msra.mxu1 %v5050_v17  ;;  %565 = vst.msk [vmem:[#allocation2 + $0x88] sm:$0xff] %vm306_vm0, %v4402_v39  ;;  %566 = vst.msk [vmem:[#allocation2 + $0xa0] sm:$0xff] %vm306_vm0, %v4403_v42  ;;  %v794_v48 = vld [vmem:[#allocation4 + $0x160] sm:$0xff]  ;;  %v795_v49 = vld [vmem:[#allocation4 + $0x168] sm:$0xff] }
  0x3c   : > { %5055 = vmatprep.subr.bf16.mxu1 %v5054_v23  ;;  %606 = vst.msk [vmem:[#allocation2 + $0x88] sm:$0xff] %vm349_vm1, %v7431_v31  ;;  %607 = vst.msk [vmem:[#allocation2 + $0xa0] sm:$0xff] %vm349_vm1, %v7431_v31  ;;  %v763_v51 = vld [vmem:[#allocation4 + $0x68] sm:$0xff]  ;;  %v4406_v52 = vld [vmem:[%s5483_s21 + $0x4a] sm:$0xff]  ;;  %v5066_v54 = vpack.c.bf16 %v795_v49, %v794_v48 }
  0x3d   : > { %5005 = vmatpush1.bf16.msra.mxu0 %v5004_v25  ;;  %567 = vst.msk [vmem:[#allocation2 + $0xb8] sm:$0xff] %vm306_vm0, %v4404_v43  ;;  %v644_v50 = vld [vmem:[#allocation2 + $0x10] sm:$0xff]  ;;  %568 = vst.msk [vmem:[#allocation2 + $0xd0] sm:$0xff] %vm306_vm0, %v4405_v46  ;;  %v796_v55 = vld [vmem:[#allocation4 + $0x170] sm:$0xff]  ;;  %v5013_v56 = vpack.c.bf16 %v763_v51, %v762_v45 }
  0x3e   : > { %5006 = vmatprep.subr.bf16.mxu0 %v5382_v0  ;;  %608 = vst.msk [vmem:[#allocation2 + $0xb8] sm:$0xff] %vm349_vm1, %v7431_v31  ;;  %4682 = vmatprep.mubr.f32.mxu1 %v644_v50  ;;  %609 = vst.msk [vmem:[#allocation2 + $0xd0] sm:$0xff] %vm349_vm1, %v7431_v31  ;;  %v4407_v53 = vld [vmem:[%s5483_s21 + $0x52] sm:$0xff]  ;;  %v4408_v58 = vld [vmem:[%s5483_s21 + $0x5a] sm:$0xff] }
  0x3f   : > { %5057 = vmatpush3.bf16.msra.mxu1 %v5054_v23  ;;  %569 = vst.msk [vmem:[#allocation2 + $0xe8] sm:$0xff] %vm306_vm0, %v4406_v52  ;;  %570 = vst.msk [vmem:[#allocation2 + $0x100] sm:$0xff] %vm306_vm0, %v4407_v53  ;;  %v797_v57 = vld [vmem:[#allocation4 + $0x178] sm:$0xff]  ;;  %v4409_v59 = vld [vmem:[%s5483_s21 + $0x62] sm:$0xff] }
  0x40   : > { %5059 = vmatprep.subr.bf16.mxu1 %v5058_v34  ;;  %610 = vst.msk [vmem:[#allocation2 + $0xe8] sm:$0xff] %vm349_vm1, %v7431_v31  ;;  %611 = vst.msk [vmem:[#allocation2 + $0x100] sm:$0xff] %vm349_vm1, %v7431_v31  ;;  %v764_v60 = vld [vmem:[#allocation4 + $0x70] sm:$0xff]  ;;  %v765_v61 = vld [vmem:[#allocation4 + $0x78] sm:$0xff]  ;;  %v5070_v63 = vpack.c.bf16 %v797_v57, %v796_v55 }
  0x41   : > { %5008 = vmatpush1.bf16.msra.mxu0 %v5007_v36  ;;  %571 = vst.msk [vmem:[#allocation2 + $0x118] sm:$0xff] %vm306_vm0, %v4408_v58  ;;  %572 = vst.msk [vmem:[#allocation2 + $0x130] sm:$0xff] %vm306_vm0, %v4409_v59  ;;  %v4410_v62 = vld [vmem:[%s5483_s21 + $0x6a] sm:$0xff]  ;;  %v4411_v1 = vld [vmem:[%s5483_s21 + $0x72] sm:$0xff]  ;;  %v5016_v2 = vpack.c.bf16 %v765_v61, %v764_v60 }
  0x42   : > { %5009 = vmatprep.subr.bf16.mxu0 %v5382_v0  ;;  %612 = vst.msk [vmem:[#allocation2 + $0x118] sm:$0xff] %vm349_vm1, %v7431_v31  ;;  %613 = vst.msk [vmem:[#allocation2 + $0x130] sm:$0xff] %vm349_vm1, %v7431_v31  ;;  %v766_v3 = vld [vmem:[#allocation4 + $0x80] sm:$0xff]  ;;  %v767_v4 = vld [vmem:[#allocation4 + $0x88] sm:$0xff] }
  0x43   : > { %5061 = vmatpush3.bf16.msra.mxu1 %v5058_v34  ;;  %573 = vst.msk [vmem:[#allocation2 + $0x148] sm:$0xff] %vm306_vm0, %v4410_v62  ;;  %574 = vst.msk [vmem:[#allocation2 + $0x160] sm:$0xff] %vm306_vm0, %v4411_v1  ;;  %v4412_v5 = vld [vmem:[%s5483_s21 + $0x7a] sm:$0xff]  ;;  %v4413_v10 = vld [vmem:[%s5483_s21 + $0x82] sm:$0xff]  ;;  %v5019_v12 = vpack.c.bf16 %v767_v4, %v766_v3 }
  0x44   : > { %5063 = vmatprep.subr.bf16.mxu1 %v5062_v44  ;;  %614 = vst.msk [vmem:[#allocation2 + $0x148] sm:$0xff] %vm349_vm1, %v7431_v31  ;;  %615 = vst.msk [vmem:[#allocation2 + $0x160] sm:$0xff] %vm349_vm1, %v7431_v31  ;;  %v1472_v6 = vld [vmem:[#allocation4 + $0x180] sm:$0xff]  ;;  %v1473_v7 = vld [vmem:[#allocation4 + $0x188] sm:$0xff] }
  0x45   : > { %5011 = vmatpush1.bf16.msra.mxu0 %v5010_v47  ;;  %575 = vst.msk [vmem:[#allocation2 + $0x178] sm:$0xff] %vm306_vm0, %v4412_v5  ;;  %v4356_v8 = vld [vmem:[%s5483_s21 + $0x1] sm:$0xff]  ;;  %v4414_v11 = vld [vmem:[%s5483_s21 + $0x8a] sm:$0xff]  ;;  %576 = vst.msk [vmem:[#allocation2 + $0x190] sm:$0xff] %vm306_vm0, %v4413_v10  ;;  %v5075_v20 = vpack.c.bf16 %v1473_v7, %v1472_v6 }
  0x46   : > { %5012 = vmatprep.subr.bf16.mxu0 %v5382_v0  ;;  %616 = vst.msk [vmem:[#allocation2 + $0x178] sm:$0xff] %vm349_vm1, %v7431_v31  ;;  %v265_v9 = vld [vmem:[%s5483_s21] sm:$0xff]  ;;  %v5560_v13 = vld [vmem:[#allocation4 + $0x90] sm:$0xff]  ;;  %v769_v14 = vld [vmem:[#allocation4 + $0x98] sm:$0xff] }
  0x47   : > { %5065 = vmatpush3.bf16.msra.mxu1 %v5062_v44  ;;  %435 = vst.msk [vmem:[#allocation2 + $0x8] sm:$0xff] %vm306_vm0, %v4356_v8  ;;  %307 = vst.msk [vmem:[#allocation2] sm:$0xff] %vm306_vm0, %v265_v9  ;;  %v4357_v15 = vld [vmem:[%s5483_s21 + $0x9] sm:$0xff]  ;;  %v4415_v21 = vld [vmem:[%s5483_s21 + $0x92] sm:$0xff]  ;;  %v5022_v26 = vpack.c.bf16 %v769_v14, %v5560_v13 }
  0x48   : > { %5067 = vmatprep.subr.bf16.mxu1 %v5066_v54  ;;  %476 = vst.msk [vmem:[#allocation2 + $0x8] sm:$0xff] %vm349_vm1, %v7431_v31  ;;  %v5569_v16 = vld [vmem:[#allocation4 + $0x190] sm:$0xff]  ;;  %v5571_v17 = vld [vmem:[#allocation4 + $0x198] sm:$0xff]  ;;  %350 = vst.msk [vmem:[#allocation2] sm:$0xff] %vm349_vm1, %v7431_v31 }
  0x49   : > { %5014 = vmatpush1.bf16.msra.mxu0 %v5013_v56  ;;  %577 = vst.msk [vmem:[#allocation2 + $0x1a8] sm:$0xff] %vm306_vm0, %v4414_v11  ;;  %436 = vst.msk [vmem:[#allocation2 + $0x20] sm:$0xff] %vm306_vm0, %v4357_v15  ;;  %v266_v18 = vld [vmem:[%s5483_s21 + $0x8] sm:$0xff]  ;;  %v4416_v22 = vld [vmem:[%s5483_s21 + $0x9a] sm:$0xff]  ;;  %v5078_v36 = vpack.c.bf16 %v5571_v17, %v5569_v16 }
  0x4a   : > { %5015 = vmatprep.subr.bf16.mxu0 %v5382_v0  ;;  %617 = vst.msk [vmem:[#allocation2 + $0x190] sm:$0xff] %vm349_vm1, %v7431_v31  ;;  %618 = vst.msk [vmem:[#allocation2 + $0x1a8] sm:$0xff] %vm349_vm1, %v7431_v31  ;;  %v647_v19 = vld [vmem:[#allocation2 + $0x28] sm:$0xff]  ;;  %v650_v23 = vld [vmem:[#allocation2 + $0x40] sm:$0xff] }
  0x4b   : > { %5069 = vmatpush3.bf16.msra.mxu1 %v5066_v54  ;;  %477 = vst.msk [vmem:[#allocation2 + $0x20] sm:$0xff] %vm349_vm1, %v7431_v31  ;;  %v5587_v24 = vld [vmem:[#allocation4 + $0xa0] sm:$0xff]  ;;  %v771_v27 = vld [vmem:[#allocation4 + $0xa8] sm:$0xff]  ;;  %v267_v28 = vld [vmem:[%s5483_s21 + $0x10] sm:$0xff] }
  0x4c   : > { %5071 = vmatprep.subr.bf16.mxu1 %v5070_v63  ;;  %308 = vst.msk [vmem:[#allocation2 + $0x18] sm:$0xff] %vm306_vm0, %v266_v18  ;;  %578 = vst.msk [vmem:[#allocation2 + $0x1c0] sm:$0xff] %vm306_vm0, %v4415_v21  ;;  %v4358_v25 = vld [vmem:[%s5483_s21 + $0x11] sm:$0xff]  ;;  %v4417_v29 = vld [vmem:[%s5483_s21 + $0xa2] sm:$0xff]  ;;  %v5025_v42 = vpack.c.bf16 %v771_v27, %v5587_v24 }
  0x4d   : > { %5017 = vmatpush1.bf16.msra.mxu0 %v5016_v2  ;;  %351 = vst.msk [vmem:[#allocation2 + $0x18] sm:$0xff] %vm349_vm1, %v7431_v31  ;;  %619 = vst.msk [vmem:[#allocation2 + $0x1c0] sm:$0xff] %vm349_vm1, %v7431_v31  ;;  %v5603_v30 = vld [vmem:[#allocation4 + $0x1a0] sm:$0xff]  ;;  %v5605_v32 = vld [vmem:[#allocation4 + $0x1a8] sm:$0xff] }
  0x4e   : > { %5018 = vmatprep.subr.bf16.mxu0 %v5382_v0  ;;  %579 = vst.msk [vmem:[#allocation2 + $0x1d8] sm:$0xff] %vm306_vm0, %v4416_v22  ;;  %437 = vst.msk [vmem:[#allocation2 + $0x38] sm:$0xff] %vm306_vm0, %v4358_v25  ;;  %v4418_v33 = vld [vmem:[%s5483_s21 + $0xaa] sm:$0xff]  ;;  %v4359_v34 = vld [vmem:[%s5483_s21 + $0x19] sm:$0xff]  ;;  %v5081_v47 = vpack.c.bf16 %v5605_v32, %v5603_v30 }
  0x4f   : > { %5073 = vmatpush3.bf16.msra.mxu1 %v5070_v63  ;;  %620 = vst.msk [vmem:[#allocation2 + $0x1d8] sm:$0xff] %vm349_vm1, %v7431_v31  ;;  %478 = vst.msk [vmem:[#allocation2 + $0x38] sm:$0xff] %vm349_vm1, %v7431_v31  ;;  %v653_v35 = vld [vmem:[#allocation2 + $0x58] sm:$0xff]  ;;  %v656_v37 = vld [vmem:[#allocation2 + $0x70] sm:$0xff] }
  0x50   : > { %5074 = vmatprep.subr.bf16.mxu1 %v5382_v0  ;;  %309 = vst.msk [vmem:[#allocation2 + $0x30] sm:$0xff] %vm306_vm0, %v267_v28  ;;  %580 = vst.msk [vmem:[#allocation2 + $0x1f0] sm:$0xff] %vm306_vm0, %v4417_v29  ;;  %v268_v38 = vld [vmem:[%s5483_s21 + $0x18] sm:$0xff]  ;;  %v643_v39 = vld [vmem:[#allocation2 + $0x8] sm:$0xff] }
  0x51   : > { %5020 = vmatpush1.bf16.msra.mxu0 %v5019_v12  ;;  %352 = vst.msk [vmem:[#allocation2 + $0x30] sm:$0xff] %vm349_vm1, %v7431_v31  ;;  %621 = vst.msk [vmem:[#allocation2 + $0x1f0] sm:$0xff] %vm349_vm1, %v7431_v31  ;;  %v4419_v40 = vld [vmem:[%s5483_s21 + $0xb2] sm:$0xff]  ;;  %v4420_v41 = vld [vmem:[%s5483_s21 + $0xba] sm:$0xff]  ;;  %862 = vmatprep.mubr.f32.mxu0 %v643_v39 }
  0x52   : > { %4683 = vmatmul.mubr.f32.vlgmr.msra.gmra.mrb[0].mxu1 %v647_v19  ;;  %5021 = vmatprep.subr.bf16.mxu0 %v5382_v0  ;;  %581 = vst.msk [vmem:[#allocation2 + $0x208] sm:$0xff] %vm306_vm0, %v4418_v33  ;;  %438 = vst.msk [vmem:[#allocation2 + $0x50] sm:$0xff] %vm306_vm0, %v4359_v34  ;;  %v772_v43 = vld [vmem:[#allocation4 + $0xb0] sm:$0xff]  ;;  %v773_v44 = vld [vmem:[#allocation4 + $0xb8] sm:$0xff] }
  0x53   : > { %5076 = vmatpush1.bf16.msra.mxu1 %v5075_v20  ;;  %4685 = vmatprep.mubr.f32.mxu1 %v650_v23  ;;  %622 = vst.msk [vmem:[#allocation2 + $0x208] sm:$0xff] %vm349_vm1, %v7431_v31  ;;  %479 = vst.msk [vmem:[#allocation2 + $0x50] sm:$0xff] %vm349_vm1, %v7431_v31  ;;  %v4360_v45 = vld [vmem:[%s5483_s21 + $0x21] sm:$0xff]  ;;  %v1479_v51 = vld [vmem:[#allocation4 + $0x1b8] sm:$0xff]  ;;  %v5028_v53 = vpack.c.bf16 %v773_v44, %v772_v43 }
  0x54   : > { %5077 = vmatprep.subr.bf16.mxu1 %v5382_v0  ;;  %310 = vst.msk [vmem:[#allocation2 + $0x48] sm:$0xff] %vm306_vm0, %v268_v38  ;;  %582 = vst.msk [vmem:[#allocation2 + $0x220] sm:$0xff] %vm306_vm0, %v4419_v40  ;;  %v659_v46 = vld [vmem:[#allocation2 + $0x88] sm:$0xff]  ;;  %v269_v49 = vld [vmem:[%s5483_s21 + $0x20] sm:$0xff] }
  0x55   : > { %5023 = vmatpush1.bf16.msra.mxu0 %v5022_v26  ;;  %353 = vst.msk [vmem:[#allocation2 + $0x48] sm:$0xff] %vm349_vm1, %v7431_v31  ;;  %623 = vst.msk [vmem:[#allocation2 + $0x220] sm:$0xff] %vm349_vm1, %v7431_v31  ;;  %v1478_v48 = vld [vmem:[#allocation4 + $0x1b0] sm:$0xff]  ;;  %v662_v50 = vld [vmem:[#allocation2 + $0xa0] sm:$0xff] }
  0x56   : > { %583 = vst.msk [vmem:[#allocation2 + $0x238] sm:$0xff] %vm306_vm0, %v4420_v41  ;;  %4686 = vmatmul.mubr.f32.gmra.mrb[2].mxu1 %v653_v35  ;;  %5024 = vmatprep.subr.bf16.mxu0 %v5382_v0  ;;  %439 = vst.msk [vmem:[#allocation2 + $0x68] sm:$0xff] %vm306_vm0, %v4360_v45  ;;  %v4421_v52 = vld [vmem:[%s5483_s21 + $0xc2] sm:$0xff]  ;;  %v4422_v54 = vld [vmem:[%s5483_s21 + $0xca] sm:$0xff]  ;;  %v5084_v60 = vpack.c.bf16 %v1479_v51, %v1478_v48 }
  0x57   : > { %624 = vst.msk [vmem:[#allocation2 + $0x238] sm:$0xff] %vm349_vm1, %v7431_v31  ;;  %5079 = vmatpush1.bf16.msra.mxu1 %v5078_v36  ;;  %4688 = vmatprep.mubr.f32.mxu1 %v656_v37  ;;  %480 = vst.msk [vmem:[#allocation2 + $0x68] sm:$0xff] %vm349_vm1, %v7431_v31  ;;  %v4361_v55 = vld [vmem:[%s5483_s21 + $0x29] sm:$0xff]  ;;  %v774_v56 = vld [vmem:[#allocation4 + $0xc0] sm:$0xff] }
  0x58   : > { %5080 = vmatprep.subr.bf16.mxu1 %v5382_v0  ;;  %311 = vst.msk [vmem:[#allocation2 + $0x60] sm:$0xff] %vm306_vm0, %v269_v49  ;;  %584 = vst.msk [vmem:[#allocation2 + $0x250] sm:$0xff] %vm306_vm0, %v4421_v52  ;;  %v775_v57 = vld [vmem:[#allocation4 + $0xc8] sm:$0xff]  ;;  %v270_v58 = vld [vmem:[%s5483_s21 + $0x28] sm:$0xff] }
  0x59   : > { %5026 = vmatpush1.bf16.msra.mxu0 %v5025_v42  ;;  %354 = vst.msk [vmem:[#allocation2 + $0x60] sm:$0xff] %vm349_vm1, %v7431_v31  ;;  %625 = vst.msk [vmem:[#allocation2 + $0x250] sm:$0xff] %vm349_vm1, %v7431_v31  ;;  %v665_v59 = vld [vmem:[#allocation2 + $0xb8] sm:$0xff]  ;;  %v668_v62 = vld [vmem:[#allocation2 + $0xd0] sm:$0xff]  ;;  %v5031_v2 = vpack.c.bf16 %v775_v57, %v774_v56 }
  0x5a   : > { %4689 = vmatmul.mubr.f32.gmra.mrb[4].mxu1 %v659_v46  ;;  %5027 = vmatprep.subr.bf16.mxu0 %v5382_v0  ;;  %585 = vst.msk [vmem:[#allocation2 + $0x268] sm:$0xff] %vm306_vm0, %v4422_v54  ;;  %440 = vst.msk [vmem:[#allocation2 + $0x80] sm:$0xff] %vm306_vm0, %v4361_v55  ;;  %v4423_v61 = vld [vmem:[%s5483_s21 + $0xd2] sm:$0xff]  ;;  %v1481_v1 = vld [vmem:[#allocation4 + $0x1c8] sm:$0xff] }
  0x5b   : > { %5082 = vmatpush1.bf16.msra.mxu1 %v5081_v47  ;;  %4691 = vmatprep.mubr.f32.mxu1 %v662_v50  ;;  %626 = vst.msk [vmem:[#allocation2 + $0x268] sm:$0xff] %vm349_vm1, %v7431_v31  ;;  %481 = vst.msk [vmem:[#allocation2 + $0x80] sm:$0xff] %vm349_vm1, %v7431_v31  ;;  %v1480_v63 = vld [vmem:[#allocation4 + $0x1c0] sm:$0xff]  ;;  %v776_v3 = vld [vmem:[#allocation4 + $0xd0] sm:$0xff] }
  0x5c   : > { %312 = vst.msk [vmem:[#allocation2 + $0x78] sm:$0xff] %vm306_vm0, %v270_v58  ;;  %5083 = vmatprep.subr.bf16.mxu1 %v5382_v0  ;;  %586 = vst.msk [vmem:[#allocation2 + $0x280] sm:$0xff] %vm306_vm0, %v4423_v61  ;;  %v777_v4 = vld [vmem:[#allocation4 + $0xd8] sm:$0xff]  ;;  %v4424_v5 = vld [vmem:[%s5483_s21 + $0xda] sm:$0xff]  ;;  %v5087_v10 = vpack.c.bf16 %v1481_v1, %v1480_v63 }
  0x5d   : > { %355 = vst.msk [vmem:[#allocation2 + $0x78] sm:$0xff] %vm349_vm1, %v7431_v31  ;;  %5029 = vmatpush1.bf16.msra.mxu0 %v5028_v53  ;;  %627 = vst.msk [vmem:[#allocation2 + $0x280] sm:$0xff] %vm349_vm1, %v7431_v31  ;;  %v4362_v6 = vld [vmem:[%s5483_s21 + $0x31] sm:$0xff]  ;;  %v4425_v8 = vld [vmem:[%s5483_s21 + $0xe2] sm:$0xff]  ;;  %v5034_v16 = vpack.c.bf16 %v777_v4, %v776_v3 }
  0x5e   : > { %4692 = vmatmul.mubr.f32.gmra.mrb[6].mxu1 %v665_v59  ;;  %5030 = vmatprep.subr.bf16.mxu0 %v5382_v0  ;;  %587 = vst.msk [vmem:[#allocation2 + $0x298] sm:$0xff] %vm306_vm0, %v4424_v5  ;;  %v271_v7 = vld [vmem:[%s5483_s21 + $0x30] sm:$0xff]  ;;  %v671_v9 = vld [vmem:[#allocation2 + $0xe8] sm:$0xff]  ;;  %441 = vst.msk [vmem:[#allocation2 + $0x98] sm:$0xff] %vm306_vm0, %v4362_v6 }
  0x5f   : > { %4694 = vmatprep.mubr.f32.mxu1 %v668_v62  ;;  %5085 = vmatpush1.bf16.msra.mxu1 %v5084_v60  ;;  %v1482_v11 = vld [vmem:[#allocation4 + $0x1d0] sm:$0xff]  ;;  %v1483_v12 = vld [vmem:[#allocation4 + $0x1d8] sm:$0xff]  ;;  %628 = vst.msk [vmem:[#allocation2 + $0x298] sm:$0xff] %vm349_vm1, %v7431_v31  ;;  %v674_v13 = vld [vmem:[#allocation2 + $0x100] sm:$0xff] }
  0x60   : > { %313 = vst.msk [vmem:[#allocation2 + $0x90] sm:$0xff] %vm306_vm0, %v271_v7  ;;  %588 = vst.msk [vmem:[#allocation2 + $0x2b0] sm:$0xff] %vm306_vm0, %v4425_v8  ;;  %5086 = vmatprep.subr.bf16.mxu1 %v5382_v0  ;;  %v4426_v14 = vld [vmem:[%s5483_s21 + $0xea] sm:$0xff]  ;;  %v4363_v15 = vld [vmem:[%s5483_s21 + $0x39] sm:$0xff]  ;;  %v5090_v23 = vpack.c.bf16 %v1483_v12, %v1482_v11 }
  0x61   : > { %482 = vst.msk [vmem:[#allocation2 + $0x98] sm:$0xff] %vm349_vm1, %v7431_v31  ;;  %356 = vst.msk [vmem:[#allocation2 + $0x90] sm:$0xff] %vm349_vm1, %v7431_v31  ;;  %5032 = vmatpush1.bf16.msra.mxu0 %v5031_v2  ;;  %v272_v17 = vld [vmem:[%s5483_s21 + $0x38] sm:$0xff]  ;;  %v779_v20 = vld [vmem:[#allocation4 + $0xe8] sm:$0xff] }
  0x62   : > { %629 = vst.msk [vmem:[#allocation2 + $0x2b0] sm:$0xff] %vm349_vm1, %v7431_v31  ;;  %v4427_v18 = vld [vmem:[%s5483_s21 + $0xf2] sm:$0xff]  ;;  %4695 = vmatmul.mubr.f32.gmra.mrb[8].mxu1 %v671_v9  ;;  %5033 = vmatprep.subr.bf16.mxu0 %v5382_v0  ;;  %v4428_v21 = vld [vmem:[%s5483_s21 + $0xfa] sm:$0xff]  ;;  %v780_v30 = vld [vmem:[#allocation4 + $0xf0] sm:$0xff] }
  0x63   : > { %589 = vst.msk [vmem:[#allocation2 + $0x2c8] sm:$0xff] %vm306_vm0, %v4426_v14  ;;  %442 = vst.msk [vmem:[#allocation2 + $0xb0] sm:$0xff] %vm306_vm0, %v4363_v15  ;;  %v778_v19 = vld [vmem:[#allocation4 + $0xe0] sm:$0xff]  ;;  %4697 = vmatprep.mubr.f32.mxu1 %v674_v13  ;;  %5088 = vmatpush1.bf16.msra.mxu1 %v5087_v10  ;;  %v1485_v25 = vld [vmem:[#allocation4 + $0x1e8] sm:$0xff] }
  0x64   : > { %630 = vst.msk [vmem:[#allocation2 + $0x2c8] sm:$0xff] %vm349_vm1, %v7431_v31  ;;  %483 = vst.msk [vmem:[#allocation2 + $0xb0] sm:$0xff] %vm349_vm1, %v7431_v31  ;;  %v677_v22 = vld [vmem:[#allocation2 + $0x118] sm:$0xff]  ;;  %v680_v26 = vld [vmem:[#allocation2 + $0x130] sm:$0xff]  ;;  %5089 = vmatprep.subr.bf16.mxu1 %v5382_v0  ;;  %v5037_v29 = vpack.c.bf16 %v779_v20, %v778_v19 }
  0x65   : > { %314 = vst.msk [vmem:[#allocation2 + $0xa8] sm:$0xff] %vm306_vm0, %v272_v17  ;;  %590 = vst.msk [vmem:[#allocation2 + $0x2e0] sm:$0xff] %vm306_vm0, %v4427_v18  ;;  %v1484_v24 = vld [vmem:[#allocation4 + $0x1e0] sm:$0xff]  ;;  %v4364_v27 = vld [vmem:[%s5483_s21 + $0x41] sm:$0xff]  ;;  %5035 = vmatpush1.bf16.msra.mxu0 %v5034_v16 }
  0x66   : > { %357 = vst.msk [vmem:[#allocation2 + $0xa8] sm:$0xff] %vm349_vm1, %v7431_v31  ;;  %631 = vst.msk [vmem:[#allocation2 + $0x2e0] sm:$0xff] %vm349_vm1, %v7431_v31  ;;  %v273_v28 = vld [vmem:[%s5483_s21 + $0x40] sm:$0xff]  ;;  %v4430_v33 = vld [vmem:[%s5483_s21 + $0x10a] sm:$0xff]  ;;  %4698 = vmatmul.mubr.f32.gmra.mrb[10].mxu1 %v677_v22  ;;  %5036 = vmatprep.subr.bf16.mxu0 %v5382_v0  ;;  %v5093_v39 = vpack.c.bf16 %v1485_v25, %v1484_v24 }
  0x67   : > { %591 = vst.msk [vmem:[#allocation2 + $0x2f8] sm:$0xff] %vm306_vm0, %v4428_v21  ;;  %443 = vst.msk [vmem:[#allocation2 + $0xc8] sm:$0xff] %vm306_vm0, %v4364_v27  ;;  %v4429_v32 = vld [vmem:[%s5483_s21 + $0x102] sm:$0xff]  ;;  %v781_v34 = vld [vmem:[#allocation4 + $0xf8] sm:$0xff]  ;;  %4700 = vmatprep.mubr.f32.mxu1 %v680_v26  ;;  %5091 = vmatpush1.bf16.msra.mxu1 %v5090_v23 }
  0x68   : > { %632 = vst.msk [vmem:[#allocation2 + $0x2f8] sm:$0xff] %vm349_vm1, %v7431_v31  ;;  %v1486_v35 = vld [vmem:[#allocation4 + $0x1f0] sm:$0xff]  ;;  %484 = vst.msk [vmem:[#allocation2 + $0xc8] sm:$0xff] %vm349_vm1, %v7431_v31  ;;  %v686_v38 = vld [vmem:[#allocation2 + $0x160] sm:$0xff]  ;;  %5092 = vmatprep.subr.bf16.mxu1 %v5382_v0  ;;  %v5040_v44 = vpack.c.bf16 %v781_v34, %v780_v30 }
  0x69   : > { %315 = vst.msk [vmem:[#allocation2 + $0xc0] sm:$0xff] %vm306_vm0, %v273_v28  ;;  %592 = vst.msk [vmem:[#allocation2 + $0x310] sm:$0xff] %vm306_vm0, %v4429_v32  ;;  %v4365_v36 = vld [vmem:[%s5483_s21 + $0x49] sm:$0xff]  ;;  %v4431_v42 = vld [vmem:[%s5483_s21 + $0x112] sm:$0xff]  ;;  %5038 = vmatpush1.bf16.msra.mxu0 %v5037_v29 }
  0x6a   : > { %358 = vst.msk [vmem:[#allocation2 + $0xc0] sm:$0xff] %vm349_vm1, %v7431_v31  ;;  %v683_v37 = vld [vmem:[#allocation2 + $0x148] sm:$0xff]  ;;  %v1487_v40 = vld [vmem:[#allocation4 + $0x1f8] sm:$0xff]  ;;  %633 = vst.msk [vmem:[#allocation2 + $0x310] sm:$0xff] %vm349_vm1, %v7431_v31  ;;  %5039 = vmatprep.subr.bf16.mxu0 %v5382_v0 }
  0x6b   : > { %593 = vst.msk [vmem:[#allocation2 + $0x328] sm:$0xff] %vm306_vm0, %v4430_v33  ;;  %444 = vst.msk [vmem:[#allocation2 + $0xe0] sm:$0xff] %vm306_vm0, %v4365_v36  ;;  %v274_v41 = vld [vmem:[%s5483_s21 + $0x48] sm:$0xff]  ;;  %v4432_v43 = vld [vmem:[%s5483_s21 + $0x11a] sm:$0xff]  ;;  %4701 = vmatmul.mubr.f32.gmra.mrb[12].mxu1 %v683_v37  ;;  %v5096_v46 = vpack.c.bf16 %v1487_v40, %v1486_v35 }
  0x6c   : > { %634 = vst.msk [vmem:[#allocation2 + $0x328] sm:$0xff] %vm349_vm1, %v7431_v31  ;;  %485 = vst.msk [vmem:[#allocation2 + $0xe0] sm:$0xff] %vm349_vm1, %v7431_v31  ;;  %4703 = vmatprep.mubr.f32.mxu1 %v686_v38  ;;  %v689_v45 = vld [vmem:[#allocation2 + $0x178] sm:$0xff]  ;;  %5094 = vmatpush1.bf16.msra.mxu1 %v5093_v39  ;;  %v275_v48 = vld [vmem:[%s5483_s21 + $0x50] sm:$0xff] }
  0x6d   : > { %316 = vst.msk [vmem:[#allocation2 + $0xd8] sm:$0xff] %vm306_vm0, %v274_v41  ;;  %594 = vst.msk [vmem:[#allocation2 + $0x340] sm:$0xff] %vm306_vm0, %v4431_v42  ;;  %v4366_v47 = vld [vmem:[%s5483_s21 + $0x51] sm:$0xff]  ;;  %5095 = vmatprep.subr.bf16.mxu1 %v5382_v0  ;;  %v1489_v51 = vld [vmem:[#allocation4 + $0x208] sm:$0xff]  ;;  %5041 = vmatpush1.bf16.msra.mxu0 %v5040_v44 }
  0x6e   : > { %595 = vst.msk [vmem:[#allocation2 + $0x358] sm:$0xff] %vm306_vm0, %v4432_v43  ;;  %v692_v49 = vld [vmem:[#allocation2 + $0x190] sm:$0xff]  ;;  %v1488_v50 = vld [vmem:[#allocation4 + $0x200] sm:$0xff]  ;;  %445 = vst.msk [vmem:[#allocation2 + $0xf8] sm:$0xff] %vm306_vm0, %v4366_v47 }
  0x6f   : > { %359 = vst.msk [vmem:[#allocation2 + $0xd8] sm:$0xff] %vm349_vm1, %v7431_v31  ;;  %635 = vst.msk [vmem:[#allocation2 + $0x340] sm:$0xff] %vm349_vm1, %v7431_v31  ;;  %v642_v52 = vld [vmem:[#allocation2] sm:$0xff]  ;;  %4704 = vmatmul.mubr.f32.gmra.mrb[14].mxu1 %v689_v45  ;;  %v5757_v54 = vld [vmem:[#allocation4 + $0x210] sm:$0xff]  ;;  %v5099_v58 = vpack.c.bf16 %v1489_v51, %v1488_v50 }
  0x70   : > { %636 = vst.msk [vmem:[#allocation2 + $0x358] sm:$0xff] %vm349_vm1, %v7431_v31  ;;  %486 = vst.msk [vmem:[#allocation2 + $0xf8] sm:$0xff] %vm349_vm1, %v7431_v31  ;;  %v646_v53 = vld [vmem:[#allocation2 + $0x20] sm:$0xff]  ;;  %v5759_v55 = vld [vmem:[#allocation4 + $0x218] sm:$0xff]  ;;  %4706 = vmatprep.mubr.f32.mxu1 %v692_v49  ;;  %5097 = vmatpush1.bf16.msra.mxu1 %v5096_v46 }
  0x71   : > { %317 = vst.msk [vmem:[#allocation2 + $0xf0] sm:$0xff] %vm306_vm0, %v275_v48  ;;  %v4367_v56 = vld [vmem:[%s5483_s21 + $0x59] sm:$0xff]  ;;  %v695_v57 = vld [vmem:[#allocation2 + $0x1a8] sm:$0xff]  ;;  %863 = vmatmul.mubr.f32.vlgmr.msra.gmra.mrb[0].mxu0 %v642_v52  ;;  %5098 = vmatprep.subr.bf16.mxu1 %v5382_v0  ;;  %v4370_v6 = vld [vmem:[%s5483_s21 + $0x71] sm:$0xff]  ;;  %v5102_v7 = vpack.c.bf16 %v5759_v55, %v5757_v54 }
  0x72   : > { %360 = vst.msk [vmem:[#allocation2 + $0xf0] sm:$0xff] %vm349_vm1, %v7431_v31  ;;  %v276_v59 = vld [vmem:[%s5483_s21 + $0x58] sm:$0xff]  ;;  %v4368_v60 = vld [vmem:[%s5483_s21 + $0x61] sm:$0xff]  ;;  %v4369_v63 = vld [vmem:[%s5483_s21 + $0x69] sm:$0xff]  ;;  %867 = vmatprep.mubr.f32.mxu0 %v646_v53 }
  0x73   : > { %446 = vst.msk [vmem:[#allocation2 + $0x110] sm:$0xff] %vm306_vm0, %v4367_v56  ;;  %v698_v61 = vld [vmem:[#allocation2 + $0x1c0] sm:$0xff]  ;;  %318 = vst.msk [vmem:[#allocation2 + $0x108] sm:$0xff] %vm306_vm0, %v276_v59  ;;  %v645_v1 = vld [vmem:[#allocation2 + $0x18] sm:$0xff]  ;;  %4707 = vmatmul.mubr.f32.gmra.mrb[16].mxu1 %v695_v57 }
  0x74   : > { %487 = vst.msk [vmem:[#allocation2 + $0x110] sm:$0xff] %vm349_vm1, %v7431_v31  ;;  %v277_v62 = vld [vmem:[%s5483_s21 + $0x60] sm:$0xff]  ;;  %v701_v2 = vld [vmem:[#allocation2 + $0x1d8] sm:$0xff]  ;;  %361 = vst.msk [vmem:[#allocation2 + $0x108] sm:$0xff] %vm349_vm1, %v7431_v31  ;;  %4709 = vmatprep.mubr.f32.mxu1 %v698_v61  ;;  %5100 = vmatpush1.bf16.msra.mxu1 %v5099_v58 }
  0x75   : > { %447 = vst.msk [vmem:[#allocation2 + $0x128] sm:$0xff] %vm306_vm0, %v4368_v60  ;;  %319 = vst.msk [vmem:[#allocation2 + $0x120] sm:$0xff] %vm306_vm0, %v277_v62  ;;  %v649_v3 = vld [vmem:[#allocation2 + $0x38] sm:$0xff]  ;;  %v278_v5 = vld [vmem:[%s5483_s21 + $0x68] sm:$0xff]  ;;  %868 = vmatmul.mubr.f32.gmra.mrb[2].mxu0 %v645_v1  ;;  %5101 = vmatprep.subr.bf16.mxu1 %v5382_v0 }
  0x76   : > { %488 = vst.msk [vmem:[#allocation2 + $0x128] sm:$0xff] %vm349_vm1, %v7431_v31  ;;  %v5778_v4 = vld [vmem:[#allocation4 + $0x220] sm:$0xff]  ;;  %362 = vst.msk [vmem:[#allocation2 + $0x120] sm:$0xff] %vm349_vm1, %v7431_v31  ;;  %v279_v8 = vld [vmem:[%s5483_s21 + $0x70] sm:$0xff]  ;;  %872 = vmatprep.mubr.f32.mxu0 %v649_v3 }
  0x77   : > { %448 = vst.msk [vmem:[#allocation2 + $0x140] sm:$0xff] %vm306_vm0, %v4369_v63  ;;  %320 = vst.msk [vmem:[#allocation2 + $0x138] sm:$0xff] %vm306_vm0, %v278_v5  ;;  %v1504_v9 = vld [vmem:[#allocation4 + $0x280] sm:$0xff]  ;;  %v1505_v10 = vld [vmem:[#allocation4 + $0x288] sm:$0xff]  ;;  %4710 = vmatmul.mubr.f32.gmra.mrb[18].mxu1 %v701_v2 }
  0x78   : > { %489 = vst.msk [vmem:[#allocation2 + $0x140] sm:$0xff] %vm349_vm1, %v7431_v31  ;;  %v704_v11 = vld [vmem:[#allocation2 + $0x1f0] sm:$0xff]  ;;  %v1493_v12 = vld [vmem:[#allocation4 + $0x228] sm:$0xff]  ;;  %363 = vst.msk [vmem:[#allocation2 + $0x138] sm:$0xff] %vm349_vm1, %v7431_v31  ;;  %v5122_v13 = vpack.c.bf16 %v1505_v10, %v1504_v9  ;;  %5103 = vmatpush1.bf16.msra.mxu1 %v5102_v7 }
  0x79   : > { %449 = vst.msk [vmem:[#allocation2 + $0x158] sm:$0xff] %vm306_vm0, %v4370_v6  ;;  %321 = vst.msk [vmem:[#allocation2 + $0x150] sm:$0xff] %vm306_vm0, %v279_v8  ;;  %v4371_v14 = vld [vmem:[%s5483_s21 + $0x79] sm:$0xff]  ;;  %v648_v15 = vld [vmem:[#allocation2 + $0x30] sm:$0xff]  ;;  %4712 = vmatprep.mubr.f32.mxu1 %v704_v11  ;;  %v5105_v22 = vpack.c.bf16 %v1493_v12, %v5778_v4  ;;  %5104 = vmatprep.subr.bf16.mxu1 %v5382_v0 }
  0x7a   : > { %490 = vst.msk [vmem:[#allocation2 + $0x158] sm:$0xff] %vm349_vm1, %v7431_v31  ;;  %v5798_v16 = vld [vmem:[#allocation2 + $0x50] sm:$0xff]  ;;  %364 = vst.msk [vmem:[#allocation2 + $0x150] sm:$0xff] %vm349_vm1, %v7431_v31  ;;  %v280_v17 = vld [vmem:[%s5483_s21 + $0x78] sm:$0xff]  ;;  %5123 = vmatprep.subr.bf16.mxu0 %v5122_v13  ;;  %873 = vmatmul.mubr.f32.gmra.mrb[4].mxu0 %v648_v15 }
  0x7b   : > { %450 = vst.msk [vmem:[#allocation2 + $0x170] sm:$0xff] %vm306_vm0, %v4371_v14  ;;  %322 = vst.msk [vmem:[#allocation2 + $0x168] sm:$0xff] %vm306_vm0, %v280_v17  ;;  %v4372_v18 = vld [vmem:[%s5483_s21 + $0x81] sm:$0xff]  ;;  %v4373_v20 = vld [vmem:[%s5483_s21 + $0x89] sm:$0xff]  ;;  %877 = vmatprep.mubr.f32.mxu0 %v5798_v16  ;;  %5125 = vmatpush3.bf16.msra.mxu0 %v5122_v13 }
  0x7c   : > { %491 = vst.msk [vmem:[#allocation2 + $0x170] sm:$0xff] %vm349_vm1, %v7431_v31  ;;  %v281_v19 = vld [vmem:[%s5483_s21 + $0x80] sm:$0xff]  ;;  %v707_v21 = vld [vmem:[#allocation2 + $0x208] sm:$0xff]  ;;  %365 = vst.msk [vmem:[#allocation2 + $0x168] sm:$0xff] %vm349_vm1, %v7431_v31  ;;  %5106 = vmatpush1.bf16.msra.mxu1 %v5105_v22 }
  0x7d   : > { %451 = vst.msk [vmem:[#allocation2 + $0x188] sm:$0xff] %vm306_vm0, %v4372_v18  ;;  %323 = vst.msk [vmem:[#allocation2 + $0x180] sm:$0xff] %vm306_vm0, %v281_v19  ;;  %v282_v23 = vld [vmem:[%s5483_s21 + $0x88] sm:$0xff]  ;;  %v710_v24 = vld [vmem:[#allocation2 + $0x220] sm:$0xff]  ;;  %4713 = vmatmul.mubr.f32.gmra.mrb[20].mxu1 %v707_v21  ;;  %5107 = vmatprep.subr.bf16.mxu1 %v5382_v0 }
  0x7e   : > { %452 = vst.msk [vmem:[#allocation2 + $0x1a0] sm:$0xff] %vm306_vm0, %v4373_v20  ;;  %v1494_v25 = vld [vmem:[#allocation4 + $0x230] sm:$0xff]  ;;  %v1495_v26 = vld [vmem:[#allocation4 + $0x238] sm:$0xff]  ;;  %324 = vst.msk [vmem:[#allocation2 + $0x198] sm:$0xff] %vm306_vm0, %v282_v23  ;;  %4715 = vmatprep.mubr.f32.mxu1 %v710_v24 }
  0x7f   : > { %492 = vst.msk [vmem:[#allocation2 + $0x188] sm:$0xff] %vm349_vm1, %v7431_v31  ;;  %366 = vst.msk [vmem:[#allocation2 + $0x180] sm:$0xff] %vm349_vm1, %v7431_v31  ;;  %v5826_v27 = vld [vmem:[#allocation2 + $0x48] sm:$0xff]  ;;  %v4374_v29 = vld [vmem:[%s5483_s21 + $0x91] sm:$0xff]  ;;  %v5108_v35 = vpack.c.bf16 %v1495_v26, %v1494_v25 }
  0x80   : > { %493 = vst.msk [vmem:[#allocation2 + $0x1a0] sm:$0xff] %vm349_vm1, %v7431_v31  ;;  %v5828_v28 = vld [vmem:[#allocation2 + $0x68] sm:$0xff]  ;;  %367 = vst.msk [vmem:[#allocation2 + $0x198] sm:$0xff] %vm349_vm1, %v7431_v31  ;;  %v283_v30 = vld [vmem:[%s5483_s21 + $0x90] sm:$0xff]  ;;  %878 = vmatmul.mubr.f32.gmra.mrb[6].mxu0 %v5826_v27 }
  0x81   : > { %453 = vst.msk [vmem:[#allocation2 + $0x1b8] sm:$0xff] %vm306_vm0, %v4374_v29  ;;  %v4375_v32 = vld [vmem:[%s5483_s21 + $0x99] sm:$0xff]  ;;  %v1506_v33 = vld [vmem:[#allocation4 + $0x290] sm:$0xff]  ;;  %325 = vst.msk [vmem:[#allocation2 + $0x1b0] sm:$0xff] %vm306_vm0, %v283_v30  ;;  %882 = vmatprep.mubr.f32.mxu0 %v5828_v28  ;;  %5109 = vmatpush1.bf16.msra.mxu1 %v5108_v35 }
  0x82   : > { %v713_v34 = vld [vmem:[#allocation2 + $0x238] sm:$0xff]  ;;  %494 = vst.msk [vmem:[#allocation2 + $0x1b8] sm:$0xff] %vm349_vm1, %v7431_v31  ;;  %v1507_v37 = vld [vmem:[#allocation4 + $0x298] sm:$0xff]  ;;  %v1497_v39 = vld [vmem:[#allocation4 + $0x248] sm:$0xff]  ;;  %5110 = vmatprep.subr.bf16.mxu1 %v5382_v0 }
  0x83   : > { %v1496_v36 = vld [vmem:[#allocation4 + $0x240] sm:$0xff]  ;;  %454 = vst.msk [vmem:[#allocation2 + $0x1d0] sm:$0xff] %vm306_vm0, %v4375_v32  ;;  %v716_v38 = vld [vmem:[#allocation2 + $0x250] sm:$0xff]  ;;  %v5126_v40 = vpack.c.bf16 %v1507_v37, %v1506_v33  ;;  %v5848_v42 = vld [vmem:[#allocation2 + $0x60] sm:$0xff]  ;;  %4716 = vmatmul.mubr.f32.gmra.mrb[22].mxu1 %v713_v34 }
  0x84   : > { %368 = vst.msk [vmem:[#allocation2 + $0x1b0] sm:$0xff] %vm349_vm1, %v7431_v31  ;;  %495 = vst.msk [vmem:[#allocation2 + $0x1d0] sm:$0xff] %vm349_vm1, %v7431_v31  ;;  %v284_v41 = vld [vmem:[%s5483_s21 + $0x98] sm:$0xff]  ;;  %v4376_v43 = vld [vmem:[%s5483_s21 + $0xa1] sm:$0xff]  ;;  %4718 = vmatprep.mubr.f32.mxu1 %v716_v38  ;;  %v5111_v48 = vpack.c.bf16 %v1497_v39, %v1496_v36  ;;  %883 = vmatmul.mubr.f32.gmra.mrb[8].mxu0 %v5848_v42 }
  0x85   : > { %326 = vst.msk [vmem:[#allocation2 + $0x1c8] sm:$0xff] %vm306_vm0, %v284_v41  ;;  %v5852_v44 = vld [vmem:[#allocation2 + $0x80] sm:$0xff]  ;;  %5127 = vmatprep.subr.bf16.mxu0 %v5126_v40  ;;  %455 = vst.msk [vmem:[#allocation2 + $0x1e8] sm:$0xff] %vm306_vm0, %v4376_v43  ;;  %v4377_v46 = vld [vmem:[%s5483_s21 + $0xa9] sm:$0xff] }
  0x86   : > { %369 = vst.msk [vmem:[#allocation2 + $0x1c8] sm:$0xff] %vm349_vm1, %v7431_v31  ;;  %v285_v45 = vld [vmem:[%s5483_s21 + $0xa0] sm:$0xff]  ;;  %v719_v47 = vld [vmem:[#allocation2 + $0x268] sm:$0xff]  ;;  %v1499_v50 = vld [vmem:[#allocation4 + $0x258] sm:$0xff]  ;;  %887 = vmatprep.mubr.f32.mxu0 %v5852_v44  ;;  %5129 = vmatpush3.bf16.msra.mxu0 %v5126_v40 }
  0x87   : > { %v1498_v49 = vld [vmem:[#allocation4 + $0x250] sm:$0xff]  ;;  %496 = vst.msk [vmem:[#allocation2 + $0x1e8] sm:$0xff] %vm349_vm1, %v7431_v31  ;;  %v722_v51 = vld [vmem:[#allocation2 + $0x280] sm:$0xff]  ;;  %v4378_v53 = vld [vmem:[%s5483_s21 + $0xb1] sm:$0xff]  ;;  %4719 = vmatmul.mubr.f32.gmra.mrb[24].mxu1 %v719_v47 }
  0x88   : > { %327 = vst.msk [vmem:[#allocation2 + $0x1e0] sm:$0xff] %vm306_vm0, %v285_v45  ;;  %456 = vst.msk [vmem:[#allocation2 + $0x200] sm:$0xff] %vm306_vm0, %v4377_v46  ;;  %v286_v52 = vld [vmem:[%s5483_s21 + $0xa8] sm:$0xff]  ;;  %v5872_v54 = vld [vmem:[#allocation2 + $0x78] sm:$0xff]  ;;  %4721 = vmatprep.mubr.f32.mxu1 %v722_v51  ;;  %5112 = vmatpush1.bf16.msra.mxu1 %v5111_v48  ;;  %v5114_v62 = vpack.c.bf16 %v1499_v50, %v1498_v49  ;;  %v1636_v45 = vrot.slane %v5798_v16, 2 }
  0x89   : > { %370 = vst.msk [vmem:[#allocation2 + $0x1e0] sm:$0xff] %vm349_vm1, %v7431_v31  ;;  %497 = vst.msk [vmem:[#allocation2 + $0x200] sm:$0xff] %vm349_vm1, %v7431_v31  ;;  %v725_v55 = vld [vmem:[#allocation2 + $0x298] sm:$0xff]  ;;  %v287_v56 = vld [vmem:[%s5483_s21 + $0xb0] sm:$0xff]  ;;  %888 = vmatmul.mubr.f32.gmra.mrb[10].mxu0 %v5872_v54  ;;  %5113 = vmatprep.subr.bf16.mxu1 %v5382_v0 }
  0x8a   : > { %328 = vst.msk [vmem:[#allocation2 + $0x1f8] sm:$0xff] %vm306_vm0, %v286_v52  ;;  %457 = vst.msk [vmem:[#allocation2 + $0x218] sm:$0xff] %vm306_vm0, %v4378_v53  ;;  %v5877_v57 = vld [vmem:[#allocation2 + $0x98] sm:$0xff]  ;;  %v728_v61 = vld [vmem:[#allocation2 + $0x2b0] sm:$0xff] }
  0x8b   : > { %v5879_v58 = vld [vmem:[#allocation4 + $0x260] sm:$0xff]  ;;  %371 = vst.msk [vmem:[#allocation2 + $0x1f8] sm:$0xff] %vm349_vm1, %v7431_v31  ;;  %498 = vst.msk [vmem:[#allocation2 + $0x218] sm:$0xff] %vm349_vm1, %v7431_v31  ;;  %v1501_v63 = vld [vmem:[#allocation4 + $0x268] sm:$0xff]  ;;  %892 = vmatprep.mubr.f32.mxu0 %v5877_v57  ;;  %4722 = vmatmul.mubr.f32.gmra.mrb[26].mxu1 %v725_v55 }
  0x8c   : > { %329 = vst.msk [vmem:[#allocation2 + $0x210] sm:$0xff] %vm306_vm0, %v287_v56  ;;  %v4379_v59 = vld [vmem:[%s5483_s21 + $0xb9] sm:$0xff]  ;;  %v4380_v3 = vld [vmem:[%s5483_s21 + $0xc1] sm:$0xff]  ;;  %v5901_v5 = vld [vmem:[#allocation2 + $0x90] sm:$0xff]  ;;  %4724 = vmatprep.mubr.f32.mxu1 %v728_v61  ;;  %5115 = vmatpush1.bf16.msra.mxu1 %v5114_v62  ;;  %v5117_v11 = vpack.c.bf16 %v1501_v63, %v5879_v58  ;;  %v1633_v56 = vrot.slane %v5826_v27, 2  ;;  %v1643_v61 = vrot.slane %v5828_v28, 2 }
  0x8d   : > { %v288_v60 = vld [vmem:[%s5483_s21 + $0xb8] sm:$0xff]  ;;  %372 = vst.msk [vmem:[#allocation2 + $0x210] sm:$0xff] %vm349_vm1, %v7431_v31  ;;  %v1509_v2 = vld [vmem:[#allocation4 + $0x2a8] sm:$0xff]  ;;  %v5905_v7 = vld [vmem:[#allocation2 + $0xb0] sm:$0xff]  ;;  %893 = vmatmul.mubr.f32.gmra.mrb[12].mxu0 %v5901_v5  ;;  %5116 = vmatprep.subr.bf16.mxu1 %v5382_v0 }
  0x8e   : > { %458 = vst.msk [vmem:[#allocation2 + $0x230] sm:$0xff] %vm306_vm0, %v4379_v59  ;;  %330 = vst.msk [vmem:[#allocation2 + $0x228] sm:$0xff] %vm306_vm0, %v288_v60  ;;  %v1508_v1 = vld [vmem:[#allocation4 + $0x2a0] sm:$0xff]  ;;  %v289_v4 = vld [vmem:[%s5483_s21 + $0xc0] sm:$0xff]  ;;  %897 = vmatprep.mubr.f32.mxu0 %v5905_v7 }
  0x8f   : > { %499 = vst.msk [vmem:[#allocation2 + $0x230] sm:$0xff] %vm349_vm1, %v7431_v31  ;;  %373 = vst.msk [vmem:[#allocation2 + $0x228] sm:$0xff] %vm349_vm1, %v7431_v31  ;;  %v5130_v6 = vpack.c.bf16 %v1509_v2, %v1508_v1  ;;  %v4381_v8 = vld [vmem:[%s5483_s21 + $0xc9] sm:$0xff]  ;;  %v4382_v13 = vld [vmem:[%s5483_s21 + $0xd1] sm:$0xff] }
  0x90   : > { %459 = vst.msk [vmem:[#allocation2 + $0x248] sm:$0xff] %vm306_vm0, %v4380_v3  ;;  %331 = vst.msk [vmem:[#allocation2 + $0x240] sm:$0xff] %vm306_vm0, %v289_v4  ;;  %v290_v9 = vld [vmem:[%s5483_s21 + $0xc8] sm:$0xff]  ;;  %v734_v14 = vld [vmem:[#allocation2 + $0x2e0] sm:$0xff]  ;;  %5118 = vmatpush1.bf16.msra.mxu1 %v5117_v11  ;;  %v1641_v11 = vrot.slane %v5848_v42, 2 }
  0x91   : > { %500 = vst.msk [vmem:[#allocation2 + $0x248] sm:$0xff] %vm349_vm1, %v7431_v31  ;;  %374 = vst.msk [vmem:[#allocation2 + $0x240] sm:$0xff] %vm349_vm1, %v7431_v31  ;;  %v731_v10 = vld [vmem:[#allocation2 + $0x2c8] sm:$0xff]  ;;  %v1503_v15 = vld [vmem:[#allocation4 + $0x278] sm:$0xff]  ;;  %5131 = vmatprep.subr.bf16.mxu0 %v5130_v6  ;;  %5119 = vmatprep.subr.bf16.mxu1 %v5382_v0 }
  0x92   : > { %v1502_v12 = vld [vmem:[#allocation4 + $0x270] sm:$0xff]  ;;  %460 = vst.msk [vmem:[#allocation2 + $0x260] sm:$0xff] %vm306_vm0, %v4381_v8  ;;  %332 = vst.msk [vmem:[#allocation2 + $0x258] sm:$0xff] %vm306_vm0, %v290_v9  ;;  %v291_v17 = vld [vmem:[%s5483_s21 + $0xd0] sm:$0xff]  ;;  %4725 = vmatmul.mubr.f32.gmra.mrb[28].mxu1 %v731_v10  ;;  %5133 = vmatpush3.bf16.msra.mxu0 %v5130_v6 }
  0x93   : > { %501 = vst.msk [vmem:[#allocation2 + $0x260] sm:$0xff] %vm349_vm1, %v7431_v31  ;;  %375 = vst.msk [vmem:[#allocation2 + $0x258] sm:$0xff] %vm349_vm1, %v7431_v31  ;;  %v5926_v18 = vld [vmem:[#allocation2 + $0xa8] sm:$0xff]  ;;  %v4383_v19 = vld [vmem:[%s5483_s21 + $0xd9] sm:$0xff]  ;;  %4727 = vmatprep.mubr.f32.mxu1 %v734_v14  ;;  %v5120_v24 = vpack.c.bf16 %v1503_v15, %v1502_v12  ;;  %v1649_v14 = vrot.slane %v5852_v44, 2 }
  0x94   : > { %461 = vst.msk [vmem:[#allocation2 + $0x278] sm:$0xff] %vm306_vm0, %v4382_v13  ;;  %333 = vst.msk [vmem:[#allocation2 + $0x270] sm:$0xff] %vm306_vm0, %v291_v17  ;;  %v5932_v20 = vld [vmem:[#allocation2 + $0xc8] sm:$0xff]  ;;  %v292_v21 = vld [vmem:[%s5483_s21 + $0xd8] sm:$0xff]  ;;  %898 = vmatmul.mubr.f32.gmra.mrb[14].mxu0 %v5926_v18  ;;  %v1644_v13 = vsel %vm1631_vm2, %v1636_v45, %v1643_v61 }
  0x95   : > { %502 = vst.msk [vmem:[#allocation2 + $0x278] sm:$0xff] %vm349_vm1, %v7431_v31  ;;  %376 = vst.msk [vmem:[#allocation2 + $0x270] sm:$0xff] %vm349_vm1, %v7431_v31  ;;  %v4384_v22 = vld [vmem:[%s5483_s21 + $0xe1] sm:$0xff]  ;;  %v737_v23 = vld [vmem:[#allocation2 + $0x2f8] sm:$0xff]  ;;  %902 = vmatprep.mubr.f32.mxu0 %v5932_v20  ;;  %5121 = vmatpush1.bf16.msra.mxu1 %v5120_v24 }
  0x96   : > { %462 = vst.msk [vmem:[#allocation2 + $0x290] sm:$0xff] %vm306_vm0, %v4383_v19  ;;  %334 = vst.msk [vmem:[#allocation2 + $0x288] sm:$0xff] %vm306_vm0, %v292_v21  ;;  %v1510_v25 = vld [vmem:[#allocation4 + $0x2b0] sm:$0xff]  ;;  %v740_v26 = vld [vmem:[#allocation2 + $0x310] sm:$0xff]  ;;  %4728 = vmatmul.mubr.f32.gmra.mrb[30].mxu1 %v737_v23  ;;  %5154 = vmatprep.subr.bf16.mxu1 %v5382_v0 }
  0x97   : > { %503 = vst.msk [vmem:[#allocation2 + $0x290] sm:$0xff] %vm349_vm1, %v7431_v31  ;;  %377 = vst.msk [vmem:[#allocation2 + $0x288] sm:$0xff] %vm349_vm1, %v7431_v31  ;;  %v1511_v29 = vld [vmem:[#allocation4 + $0x2b8] sm:$0xff]  ;;  %v293_v30 = vld [vmem:[%s5483_s21 + $0xe0] sm:$0xff]  ;;  %4730 = vmatprep.mubr.f32.mxu1 %v740_v26  ;;  %v1647_v26 = vrot.slane %v5872_v54, 2 }
  0x98   : > { %463 = vst.msk [vmem:[#allocation2 + $0x2a8] sm:$0xff] %vm306_vm0, %v4384_v22  ;;  %v5951_v32 = vld [vmem:[#allocation2 + $0xc0] sm:$0xff]  ;;  %v1361_v34 = vld [vmem:[#allocation2 + $0x38] sm:$0xfc]  ;;  %v5134_v35 = vpack.c.bf16 %v1511_v29, %v1510_v25  ;;  %335 = vst.msk [vmem:[#allocation2 + $0x2a0] sm:$0xff] %vm306_vm0, %v293_v30  ;;  %v1642_v25 = vsel %vm1631_vm2, %v1633_v56, %v1641_v11 }
  0x99   : > { %504 = vst.msk [vmem:[#allocation2 + $0x2a8] sm:$0xff] %vm349_vm1, %v7431_v31  ;;  %v5953_v33 = vld [vmem:[#allocation2 + $0xe0] sm:$0xff]  ;;  %378 = vst.msk [vmem:[#allocation2 + $0x2a0] sm:$0xff] %vm349_vm1, %v7431_v31  ;;  %v4385_v36 = vld [vmem:[%s5483_s21 + $0xe9] sm:$0xff]  ;;  %903 = vmatmul.mubr.f32.gmra.mrb[16].mxu0 %v5951_v32  ;;  %v1635_v43 = vrot.slane %v1361_v34, 2 }
  0x9a   : > { %v294_v37 = vld [vmem:[%s5483_s21 + $0xe8] sm:$0xff]  ;;  %v4386_v38 = vld [vmem:[%s5483_s21 + $0xf1] sm:$0xff]  ;;  %464 = vst.msk [vmem:[#allocation2 + $0x2c0] sm:$0xff] %vm306_vm0, %v4385_v36  ;;  %v746_v41 = vld [vmem:[#allocation2 + $0x340] sm:$0xff]  ;;  %907 = vmatprep.mubr.f32.mxu0 %v5953_v33  ;;  %5135 = vmatprep.subr.bf16.mxu0 %v5134_v35  ;;  %v1655_v36 = vrot.slane %v5877_v57, 2  ;;  %v1653_v57 = vrot.slane %v5901_v5, 2 }
  0x9b   : > { %v743_v39 = vld [vmem:[#allocation2 + $0x328] sm:$0xff]  ;;  %336 = vst.msk [vmem:[#allocation2 + $0x2b8] sm:$0xff] %vm306_vm0, %v294_v37  ;;  %465 = vst.msk [vmem:[#allocation2 + $0x2d8] sm:$0xff] %vm306_vm0, %v4386_v38  ;;  %v295_v40 = vld [vmem:[%s5483_s21 + $0xf0] sm:$0xff]  ;;  %5137 = vmatpush3.bf16.msra.mxu0 %v5134_v35  ;;  %v1637_v60 = vsel %vm1631_vm2, %v1635_v43, %v1636_v45  ;;  %v1650_v35 = vsel %vm1631_vm2, %v1643_v61, %v1649_v14 }
  0x9c   : > { %v1360_v46 = vld [vmem:[#allocation2 + $0x30] sm:$0xfc]  ;;  %505 = vst.msk [vmem:[#allocation2 + $0x2c0] sm:$0xff] %vm349_vm1, %v7431_v31  ;;  %379 = vst.msk [vmem:[#allocation2 + $0x2b8] sm:$0xff] %vm349_vm1, %v7431_v31  ;;  %v4387_v47 = vld [vmem:[%s5483_s21 + $0xf9] sm:$0xff]  ;;  %4731 = vmatmul.mubr.f32.gmra.mrb[32].mxu1 %v743_v39  ;;  %v1656_v45 = vsel %vm1631_vm2, %v1649_v14, %v1655_v36  ;;  %v1654_v5 = vsel %vm1631_vm2, %v1647_v26, %v1653_v57 }
  0x9d   : > { %506 = vst.msk [vmem:[#allocation2 + $0x2d8] sm:$0xff] %vm349_vm1, %v7431_v31  ;;  %v5977_v16 = vld [vmem:[#allocation2 + $0xd8] sm:$0xff]  ;;  %v4388_v51 = vld [vmem:[%s5483_s21 + $0x101] sm:$0xff]  ;;  %4733 = vmatprep.mubr.f32.mxu1 %v746_v41  ;;  %v1632_v55 = vrot.slane %v1360_v46, 2  ;;  %v4389_v62 = vld [vmem:[%s5483_s21 + $0x109] sm:$0xff]  ;;  %v1648_v41 = vsel %vm1631_vm2, %v1641_v11, %v1647_v26  ;;  %v1661_v46 = vrot.slane %v5905_v7, 2 }
  0x9e   : > { %337 = vst.msk [vmem:[#allocation2 + $0x2d0] sm:$0xff] %vm306_vm0, %v295_v40  ;;  %466 = vst.msk [vmem:[#allocation2 + $0x2f0] sm:$0xff] %vm306_vm0, %v4387_v47  ;;  %v296_v48 = vld [vmem:[%s5483_s21 + $0xf8] sm:$0xff]  ;;  %v297_v52 = vld [vmem:[%s5483_s21 + $0x100] sm:$0xff]  ;;  %908 = vmatmul.mubr.f32.gmra.mrb[18].mxu0 %v5977_v16 }
  0x9f   : > { %380 = vst.msk [vmem:[#allocation2 + $0x2d0] sm:$0xff] %vm349_vm1, %v7431_v31  ;;  %v5983_v49 = vld [vmem:[#allocation2 + $0xf8] sm:$0xff]  ;;  %507 = vst.msk [vmem:[#allocation2 + $0x2f0] sm:$0xff] %vm349_vm1, %v7431_v31  ;;  %v2670_v58 = vld [vmem:[#allocation4 + $0x308] sm:$0xff]  ;;  %v1634_v9 = vsel %vm1631_vm2, %v1632_v55, %v1633_v56  ;;  %v1667_v55 = vrot.slane %v5932_v20, 2  ;;  %v1665_v20 = vrot.slane %v5951_v32, 2 }
  0xa0   : > { %v5985_v50 = vld [vmem:[#allocation4 + $0x300] sm:$0xff]  ;;  %338 = vst.msk [vmem:[#allocation2 + $0x2e8] sm:$0xff] %vm306_vm0, %v296_v48  ;;  %467 = vst.msk [vmem:[#allocation2 + $0x308] sm:$0xff] %vm306_vm0, %v4388_v51  ;;  %v1513_v27 = vld [vmem:[#allocation4 + $0x2c8] sm:$0xff]  ;;  %912 = vmatprep.mubr.f32.mxu0 %v5983_v49 }
  0xa1   : > { %v749_v53 = vld [vmem:[#allocation2 + $0x358] sm:$0xff]  ;;  %381 = vst.msk [vmem:[#allocation2 + $0x2e8] sm:$0xff] %vm349_vm1, %v7431_v31  ;;  %508 = vst.msk [vmem:[#allocation2 + $0x308] sm:$0xff] %vm349_vm1, %v7431_v31  ;;  %v298_v63 = vld [vmem:[%s5483_s21 + $0x108] sm:$0xff]  ;;  %v5155_v10 = vpack.c.bf16 %v2670_v58, %v5985_v50 }
  0xa2   : > { %339 = vst.msk [vmem:[#allocation2 + $0x300] sm:$0xff] %vm306_vm0, %v297_v52  ;;  %v1512_v59 = vld [vmem:[#allocation4 + $0x2c0] sm:$0xff]  ;;  %v6007_v1 = vld [vmem:[#allocation2 + $0xf0] sm:$0xff]  ;;  %468 = vst.msk [vmem:[#allocation2 + $0x320] sm:$0xff] %vm306_vm0, %v4389_v62  ;;  %4734 = vmatmul.mubr.f32.gmra.mrb[34].mxu1 %v749_v53  ;;  %v1659_v52 = vrot.slane %v5926_v18, 2  ;;  %v1662_v53 = vsel %vm1631_vm2, %v1655_v36, %v1661_v46 }
  0xa3   : > { %382 = vst.msk [vmem:[#allocation2 + $0x300] sm:$0xff] %vm349_vm1, %v7431_v31  ;;  %v5138_v2 = vpack.c.bf16 %v1513_v27, %v1512_v59  ;;  %v1514_v28 = vld [vmem:[#allocation4 + $0x2d0] sm:$0xff]  ;;  %v1515_v3 = vld [vmem:[#allocation4 + $0x2d8] sm:$0xff]  ;;  %509 = vst.msk [vmem:[#allocation2 + $0x320] sm:$0xff] %vm349_vm1, %v7431_v31  ;;  %2023 = vmatprep.mubr.f32.mxu1 %v1637_v60  ;;  %913 = vmatmul.mubr.f32.gmra.mrb[20].mxu0 %v6007_v1 }
  0xa4   : > { %340 = vst.msk [vmem:[#allocation2 + $0x318] sm:$0xff] %vm306_vm0, %v298_v63  ;;  %v6011_v4 = vld [vmem:[#allocation2 + $0x110] sm:$0xff]  ;;  %v5142_v6 = vpack.c.bf16 %v1515_v3, %v1514_v28  ;;  %v2671_v12 = vld [vmem:[#allocation4 + $0x310] sm:$0xff]  ;;  %v1516_v19 = vld [vmem:[#allocation4 + $0x2e0] sm:$0xff]  ;;  %v1660_v61 = vsel %vm1631_vm2, %v1653_v57, %v1659_v52  ;;  %v1673_v28 = vrot.slane %v5953_v33, 2  ;;  %v1666_v11 = vsel %vm1631_vm2, %v1659_v52, %v1665_v20 }
  0xa5   : > { %383 = vst.msk [vmem:[#allocation2 + $0x318] sm:$0xff] %vm349_vm1, %v7431_v31  ;;  %v4390_v8 = vld [vmem:[%s5483_s21 + $0x111] sm:$0xff]  ;;  %5139 = vmatprep.subr.bf16.mxu0 %v5138_v2  ;;  %917 = vmatprep.mubr.f32.mxu0 %v6011_v4  ;;  %v6029_v42 = vld [vmem:[#allocation2 + $0x108] sm:$0xff]  ;;  %v1517_v21 = vld [vmem:[#allocation4 + $0x2e8] sm:$0xff] }
  0xa6   : > { %469 = vst.msk [vmem:[#allocation2 + $0x338] sm:$0xff] %vm306_vm0, %v4390_v8  ;;  %v2672_v15 = vld [vmem:[#allocation4 + $0x318] sm:$0xff]  ;;  %5141 = vmatpush3.bf16.msra.mxu0 %v5138_v2  ;;  %v4391_v22 = vld [vmem:[%s5483_s21 + $0x119] sm:$0xff]  ;;  %2024 = vmatmul.mubr.f32.vlgmr.msra.gmra.mrb[36].mxu1 %v1634_v9  ;;  %v6033_v23 = vld [vmem:[#allocation2 + $0x128] sm:$0xff]  ;;  %v5146_v44 = vpack.c.bf16 %v1517_v21, %v1516_v19  ;;  %v1668_v2 = vsel %vm1631_vm2, %v1661_v46, %v1667_v55 }
  0xa7   : > { %510 = vst.msk [vmem:[#allocation2 + $0x338] sm:$0xff] %vm349_vm1, %v7431_v31  ;;  %v299_v17 = vld [vmem:[%s5483_s21 + $0x110] sm:$0xff]  ;;  %5143 = vmatprep.subr.bf16.mxu0 %v5142_v6  ;;  %v300_v24 = vld [vmem:[%s5483_s21 + $0x118] sm:$0xff]  ;;  %5156 = vmatpush1.bf16.msra.mxu1 %v5155_v10  ;;  %v5158_v29 = vpack.c.bf16 %v2672_v15, %v2671_v12  ;;  %v1518_v30 = vld [vmem:[#allocation4 + $0x2f0] sm:$0xff]  ;;  %v1671_v12 = vrot.slane %v5977_v16, 2  ;;  %v1674_v15 = vsel %vm1631_vm2, %v1667_v55, %v1673_v28 }
  0xa8   : > { %341 = vst.msk [vmem:[#allocation2 + $0x330] sm:$0xff] %vm306_vm0, %v299_v17  ;;  %470 = vst.msk [vmem:[#allocation2 + $0x350] sm:$0xff] %vm306_vm0, %v4391_v22  ;;  %2028 = vmatprep.mubr.f32.mxu1 %v1644_v13  ;;  %v1519_v34 = vld [vmem:[#allocation4 + $0x2f8] sm:$0xff]  ;;  %918 = vmatmul.mubr.f32.gmra.mrb[22].mxu0 %v6029_v42  ;;  %v2673_v37 = vld [vmem:[#allocation4 + $0x320] sm:$0xff]  ;;  %v1679_v17 = vrot.slane %v5983_v49, 2 }
  0xa9   : > { %384 = vst.msk [vmem:[#allocation2 + $0x330] sm:$0xff] %vm349_vm1, %v7431_v31  ;;  %511 = vst.msk [vmem:[#allocation2 + $0x350] sm:$0xff] %vm349_vm1, %v7431_v31  ;;  %5157 = vmatprep.subr.bf16.mxu1 %v5382_v0  ;;  %v2674_v38 = vld [vmem:[#allocation4 + $0x328] sm:$0xff]  ;;  %922 = vmatprep.mubr.f32.mxu0 %v6033_v23  ;;  %v5150_v40 = vpack.c.bf16 %v1519_v34, %v1518_v30  ;;  %v2675_v47 = vld [vmem:[#allocation4 + $0x330] sm:$0xff]  ;;  %v1672_v49 = vsel %vm1631_vm2, %v1665_v20, %v1671_v12  ;;  %v1685_v30 = vrot.slane %v6011_v4, 2 }
  0xaa   : > { %342 = vst.msk [vmem:[#allocation2 + $0x348] sm:$0xff] %vm306_vm0, %v300_v24  ;;  %v6051_v54 = vld [vmem:[#allocation2 + $0x120] sm:$0xff]  ;;  %5145 = vmatpush3.bf16.msra.mxu0 %v5142_v6  ;;  %2029 = vmatmul.mubr.f32.gmra.mrb[38].mxu1 %v1642_v25  ;;  %v5161_v43 = vpack.c.bf16 %v2674_v38, %v2673_v37  ;;  %v2676_v48 = vld [vmem:[#allocation4 + $0x338] sm:$0xff]  ;;  %v6062_v50 = vld [vmem:[#allocation2 + $0x138] sm:$0xff]  ;;  %v1677_v25 = vrot.slane %v6007_v1, 2  ;;  %v1683_v38 = vrot.slane %v6029_v42, 2 }
  0xab   : > { %385 = vst.msk [vmem:[#allocation2 + $0x348] sm:$0xff] %vm349_vm1, %v7431_v31  ;;  %v6053_v39 = vld [vmem:[#allocation2 + $0x140] sm:$0xff]  ;;  %5147 = vmatprep.subr.bf16.mxu0 %v5146_v44  ;;  %2033 = vmatprep.mubr.f32.mxu1 %v1650_v35  ;;  %v6064_v51 = vld [vmem:[#allocation2 + $0x158] sm:$0xff]  ;;  %v5164_v7 = vpack.c.bf16 %v2676_v48, %v2675_v47  ;;  %v6073_v59 = vld [vmem:[#allocation2 + $0x150] sm:$0xff]  ;;  %v1689_v47 = vrot.slane %v6051_v54, 2 }
  0xac   : > { %5159 = vmatpush1.bf16.msra.mxu1 %v5158_v29  ;;  %923 = vmatmul.mubr.f32.gmra.mrb[24].mxu0 %v6051_v54  ;;  %v2677_v56 = vld [vmem:[#allocation4 + $0x340] sm:$0xff]  ;;  %v2678_v58 = vld [vmem:[#allocation4 + $0x348] sm:$0xff]  ;;  %v6075_v18 = vld [vmem:[#allocation2 + $0x170] sm:$0xff]  ;;  %v1680_v29 = vsel %vm1631_vm2, %v1673_v28, %v1679_v17  ;;  %v1678_v37 = vsel %vm1631_vm2, %v1671_v12, %v1677_v25  ;;  %v1684_v46 = vsel %vm1631_vm2, %v1677_v25, %v1683_v38 }
  0xad   : > { %5160 = vmatprep.subr.bf16.mxu1 %v5382_v0  ;;  %927 = vmatprep.mubr.f32.mxu0 %v6053_v39  ;;  %v4392_v60 = vld [vmem:[%s5483_s21 + $0x121] sm:$0xff]  ;;  %v5167_v27 = vpack.c.bf16 %v2678_v58, %v2677_v56  ;;  %v4393_v63 = vld [vmem:[%s5483_s21 + $0x129] sm:$0xff]  ;;  %v4394_v33 = vld [vmem:[%s5483_s21 + $0x131] sm:$0xff]  ;;  %v1690_v58 = vsel %vm1631_vm2, %v1683_v38, %v1689_v47 }
  0xae   : > { %5149 = vmatpush3.bf16.msra.mxu0 %v5146_v44  ;;  %2034 = vmatmul.mubr.f32.gmra.mrb[40].mxu1 %v1648_v41  ;;  %471 = vst.msk [vmem:[#allocation2 + $0x368] sm:$0xff] %vm306_vm0, %v4392_v60  ;;  %v301_v62 = vld [vmem:[%s5483_s21 + $0x120] sm:$0xff]  ;;  %v2679_v3 = vld [vmem:[#allocation4 + $0x350] sm:$0xff]  ;;  %v2680_v6 = vld [vmem:[#allocation4 + $0x358] sm:$0xff]  ;;  %v1691_v41 = vrot.slane %v6033_v23, 2  ;;  %v1695_v60 = vrot.slane %v6062_v50, 2 }
  0xaf   : > { %5151 = vmatprep.subr.bf16.mxu0 %v5150_v40  ;;  %2038 = vmatprep.mubr.f32.mxu1 %v1656_v45  ;;  %512 = vst.msk [vmem:[#allocation2 + $0x368] sm:$0xff] %vm349_vm1, %v7431_v31  ;;  %v302_v32 = vld [vmem:[%s5483_s21 + $0x128] sm:$0xff]  ;;  %v303_v10 = vld [vmem:[%s5483_s21 + $0x130] sm:$0xff]  ;;  %v5170_v13 = vpack.c.bf16 %v2680_v6, %v2679_v3  ;;  %v2681_v14 = vld [vmem:[#allocation4 + $0x360] sm:$0xff]  ;;  %v1701_v3 = vrot.slane %v6073_v59, 2 }
  0xb0   : > { %5162 = vmatpush1.bf16.msra.mxu1 %v5161_v43  ;;  %928 = vmatmul.mubr.f32.gmra.mrb[26].mxu0 %v6062_v50  ;;  %343 = vst.msk [vmem:[#allocation2 + $0x360] sm:$0xff] %vm306_vm0, %v301_v62  ;;  %472 = vst.msk [vmem:[#allocation2 + $0x380] sm:$0xff] %vm306_vm0, %v4393_v63  ;;  %v6093_v8 = vld [vmem:[#allocation2 + $0x168] sm:$0xff]  ;;  %v2682_v19 = vld [vmem:[#allocation4 + $0x368] sm:$0xff]  ;;  %v1692_v52 = vsel %vm1631_vm2, %v1685_v30, %v1691_v41  ;;  %v1696_v50 = vsel %vm1631_vm2, %v1689_v47, %v1695_v60 }
  0xb1   : > { %5163 = vmatprep.subr.bf16.mxu1 %v5382_v0  ;;  %932 = vmatprep.mubr.f32.mxu0 %v6064_v51  ;;  %386 = vst.msk [vmem:[#allocation2 + $0x360] sm:$0xff] %vm349_vm1, %v7431_v31  ;;  %513 = vst.msk [vmem:[#allocation2 + $0x380] sm:$0xff] %vm349_vm1, %v7431_v31  ;;  %v6101_v9 = vld [vmem:[#allocation2 + $0x188] sm:$0xff]  ;;  %v2701_v16 = vld [vmem:[#allocation4 + $0x400] sm:$0xff]  ;;  %v5173_v26 = vpack.c.bf16 %v2682_v19, %v2681_v14 }
  0xb2   : > { %5153 = vmatpush3.bf16.msra.mxu0 %v5150_v40  ;;  %2039 = vmatmul.mubr.f32.gmra.mrb[42].mxu1 %v1654_v5  ;;  %344 = vst.msk [vmem:[#allocation2 + $0x378] sm:$0xff] %vm306_vm0, %v302_v32  ;;  %473 = vst.msk [vmem:[#allocation2 + $0x398] sm:$0xff] %vm306_vm0, %v4394_v33  ;;  %v2702_v21 = vld [vmem:[#allocation4 + $0x408] sm:$0xff]  ;;  %v2683_v34 = vld [vmem:[#allocation4 + $0x370] sm:$0xff]  ;;  %v1686_v40 = vsel %vm1631_vm2, %v1679_v17, %v1685_v30  ;;  %v1709_v32 = vrot.slane %v6075_v18, 2 }
  0xb3   : > { %2043 = vmatprep.mubr.f32.mxu1 %v1662_v53  ;;  %387 = vst.msk [vmem:[#allocation2 + $0x378] sm:$0xff] %vm349_vm1, %v7431_v31  ;;  %514 = vst.msk [vmem:[#allocation2 + $0x398] sm:$0xff] %vm349_vm1, %v7431_v31  ;;  %v6119_v22 = vld [vmem:[#allocation2 + $0x180] sm:$0xff]  ;;  %v6123_v24 = vpack.c.bf16 %v2702_v21, %v2701_v16  ;;  %v2684_v35 = vld [vmem:[#allocation4 + $0x378] sm:$0xff] }
  0xb4   : > { %5165 = vmatpush1.bf16.msra.mxu1 %v5164_v7  ;;  %933 = vmatmul.mubr.f32.gmra.mrb[28].mxu0 %v6073_v59  ;;  %345 = vst.msk [vmem:[#allocation2 + $0x390] sm:$0xff] %vm306_vm0, %v303_v10  ;;  %v6121_v44 = vld [vmem:[#allocation2 + $0x1a0] sm:$0xff]  ;;  %v6132_v36 = vld [vmem:[#allocation2 + $0x198] sm:$0xff]  ;;  %v5176_v4 = vpack.c.bf16 %v2684_v35, %v2683_v34  ;;  %v6144_v45 = vld [vmem:[#allocation2 + $0x1b0] sm:$0xff]  ;;  %v1697_v7 = vrot.slane %v6053_v39, 2  ;;  %v1702_v59 = vsel %vm1631_vm2, %v1695_v60, %v1701_v3 }
  0xb5   : > { %5166 = vmatprep.subr.bf16.mxu1 %v5382_v0  ;;  %937 = vmatprep.mubr.f32.mxu0 %v6075_v18  ;;  %388 = vst.msk [vmem:[#allocation2 + $0x390] sm:$0xff] %vm349_vm1, %v7431_v31  ;;  %v6135_v1 = vld [vmem:[#allocation2 + $0x1b8] sm:$0xff]  ;;  %v2686_v43 = vld [vmem:[#allocation4 + $0x388] sm:$0xff]  ;;  %v6146_v42 = vld [vmem:[#allocation2 + $0x1d0] sm:$0xff]  ;;  %v1721_v35 = vrot.slane %v6121_v44, 2  ;;  %v1719_v47 = vrot.slane %v6132_v36, 2 }
  0xb6   : > { %2044 = vmatmul.mubr.f32.gmra.mrb[44].mxu1 %v1660_v61  ;;  %5203 = vmatprep.subr.bf16.mxu0 %v6123_v24  ;;  %v2685_v57 = vld [vmem:[#allocation4 + $0x380] sm:$0xff]  ;;  %v4433_v23 = vld [vmem:[%s5483_s21 + $0x122] sm:$0xff]  ;;  %v4434_v5 = vld [vmem:[%s5483_s21 + $0x12a] sm:$0xff]  ;;  %v1698_v20 = vsel %vm1631_vm2, %v1691_v41, %v1697_v7 }
  0xb7   : > { %2048 = vmatprep.mubr.f32.mxu1 %v1668_v2  ;;  %v5179_v48 = vpack.c.bf16 %v2686_v43, %v2685_v57  ;;  %v2687_v53 = vld [vmem:[#allocation4 + $0x390] sm:$0xff]  ;;  %v2688_v55 = vld [vmem:[#allocation4 + $0x398] sm:$0xff]  ;;  %596 = vst.msk [vmem:[#allocation2 + $0x370] sm:$0xff] %vm306_vm0, %v4433_v23  ;;  %597 = vst.msk [vmem:[#allocation2 + $0x388] sm:$0xff] %vm306_vm0, %v4434_v5 }
  0xb8   : > { %5168 = vmatpush1.bf16.msra.mxu1 %v5167_v27  ;;  %938 = vmatmul.mubr.f32.gmra.mrb[30].mxu0 %v6093_v8  ;;  %v4435_v56 = vld [vmem:[%s5483_s21 + $0x132] sm:$0xff]  ;;  %v6160_v54 = vld [vmem:[#allocation2 + $0x1c8] sm:$0xff]  ;;  %637 = vst.msk [vmem:[#allocation2 + $0x370] sm:$0xff] %vm349_vm1, %v7431_v31  ;;  %638 = vst.msk [vmem:[#allocation2 + $0x388] sm:$0xff] %vm349_vm1, %v7431_v31  ;;  %v5182_v61 = vpack.c.bf16 %v2688_v55, %v2687_v53  ;;  %v1703_v27 = vrot.slane %v6064_v51, 2 }
  0xb9   : > { %5169 = vmatprep.subr.bf16.mxu1 %v5382_v0  ;;  %942 = vmatprep.mubr.f32.mxu0 %v6101_v9  ;;  %598 = vst.msk [vmem:[#allocation2 + $0x3a0] sm:$0xff] %vm306_vm0, %v4435_v56  ;;  %v6167_v39 = vld [vmem:[#allocation2 + $0x1e8] sm:$0xff]  ;;  %v2689_v62 = vld [vmem:[#allocation4 + $0x3a0] sm:$0xff]  ;;  %v2690_v63 = vld [vmem:[#allocation4 + $0x3a8] sm:$0xff] }
  0xba   : > { %2049 = vmatmul.mubr.f32.gmra.mrb[46].mxu1 %v1666_v11  ;;  %639 = vst.msk [vmem:[#allocation2 + $0x3a0] sm:$0xff] %vm349_vm1, %v7431_v31  ;;  %v6178_v2 = vld [vmem:[#allocation2 + $0x1e0] sm:$0xff]  ;;  %v5185_v6 = vpack.c.bf16 %v2690_v63, %v2689_v62  ;;  %v1704_v51 = vsel %vm1631_vm2, %v1697_v7, %v1703_v27  ;;  %v2691_v33 = vld [vmem:[#allocation4 + $0x3b0] sm:$0xff]  ;;  %v2692_v10 = vld [vmem:[#allocation4 + $0x3b8] sm:$0xff]  ;;  %v1710_v18 = vsel %vm1631_vm2, %v1703_v27, %v1709_v32  ;;  %v1725_v27 = vrot.slane %v6144_v45, 2 }
  0xbb   : > { %2053 = vmatprep.mubr.f32.mxu1 %v1674_v15  ;;  %v6180_v28 = vld [vmem:[#allocation2 + $0x200] sm:$0xff]  ;;  %v6189_v11 = vld [vmem:[#allocation2 + $0x1f8] sm:$0xff]  ;;  %v5188_v14 = vpack.c.bf16 %v2692_v10, %v2691_v33  ;;  %v1715_v15 = vrot.slane %v6101_v9, 2  ;;  %v6199_v17 = vld [vmem:[#allocation2 + $0x88] sm:$0xff] }
  0xbc   : > { %5171 = vmatpush1.bf16.msra.mxu1 %v5170_v13  ;;  %943 = vmatmul.mubr.f32.gmra.mrb[32].mxu0 %v6119_v22  ;;  %v6191_v12 = vld [vmem:[#allocation2 + $0x218] sm:$0xff]  ;;  %v1707_v13 = vrot.slane %v6093_v8, 2  ;;  %v2694_v16 = vld [vmem:[#allocation4 + $0x3c8] sm:$0xff]  ;;  %v6202_v21 = vld [vmem:[#allocation2 + $0x210] sm:$0xff]  ;;  %v7430_v8 = vrot.slane %v6199_v17, 4 }
  0xbd   : > { %5172 = vmatprep.subr.bf16.mxu1 %v5382_v0  ;;  %947 = vmatprep.mubr.f32.mxu0 %v6121_v44  ;;  %v2693_v19 = vld [vmem:[#allocation4 + $0x3c0] sm:$0xff]  ;;  %v6207_v25 = vld [vmem:[#allocation2 + $0x230] sm:$0xff]  ;;  %v1716_v34 = vsel %vm1631_vm2, %v1709_v32, %v1715_v15  ;;  %v2695_v38 = vld [vmem:[#allocation4 + $0x3d0] sm:$0xff]  ;;  %v1722_v5 = vsel %vm1631_vm2, %v1715_v15, %v1721_v35 }
  0xbe   : > { %2054 = vmatmul.mubr.f32.gmra.mrb[48].mxu1 %v1672_v49  ;;  %v6204_v49 = vld [vmem:[#allocation2 + $0xa0] sm:$0xff]  ;;  %v1708_v9 = vsel %vm1631_vm2, %v1701_v3, %v1707_v13  ;;  %v5191_v30 = vpack.c.bf16 %v2694_v16, %v2693_v19  ;;  %v6226_v41 = vld [vmem:[#allocation2 + $0xd0] sm:$0xff]  ;;  %v6229_v44 = vld [vmem:[#allocation2 + $0x248] sm:$0xff]  ;;  %v1733_v3 = vrot.slane %v6146_v42, 2 }
  0xbf   : > { %2058 = vmatprep.mubr.f32.mxu1 %v1680_v29  ;;  %v1713_v29 = vrot.slane %v6119_v22, 2  ;;  %v6224_v22 = vld [vmem:[#allocation2 + $0x228] sm:$0xff]  ;;  %v2854_v43 = vrot.slane %v6226_v41, 4  ;;  %v2697_v53 = vld [vmem:[#allocation4 + $0x3e0] sm:$0xff]  ;;  %v2698_v55 = vld [vmem:[#allocation4 + $0x3e8] sm:$0xff] }
  0xc0   : > { %5174 = vmatpush1.bf16.msra.mxu1 %v5173_v26  ;;  %948 = vmatmul.mubr.f32.gmra.mrb[34].mxu0 %v6132_v36  ;;  %v2842_v26 = vrot.slane %v6204_v49, 4  ;;  %v6240_v7 = vld [vmem:[#allocation2 + $0xe8] sm:$0xff]  ;;  %v6247_v36 = vld [vmem:[#allocation2 + $0x240] sm:$0xff]  ;;  %v5197_v62 = vpack.c.bf16 %v2698_v55, %v2697_v53  ;;  %v2700_v32 = vld [vmem:[#allocation4 + $0x3f8] sm:$0xff]  ;;  %v1743_v55 = vrot.slane %v6189_v11, 2 }
  0xc1   : > { %5175 = vmatprep.subr.bf16.mxu1 %v5382_v0  ;;  %952 = vmatprep.mubr.f32.mxu0 %v6135_v1  ;;  %v2860_v60 = vrot.slane %v6240_v7, 4  ;;  %v6272_v10 = vld [vmem:[#allocation2 + $0x130] sm:$0xff] }
  0xc2   : > { %2059 = vmatmul.mubr.f32.gmra.mrb[50].mxu1 %v1678_v37  ;;  %v6216_v37 = vld [vmem:[#allocation2 + $0xb8] sm:$0xff] }
  0xc3   : > { %2063 = vmatprep.mubr.f32.mxu1 %v1686_v40  ;;  %v6221_v40 = vsel %vm2828_vm3, %v7430_v8, %v2842_v26  ;;  %v2848_v57 = vrot.slane %v6216_v37, 4  ;;  %v6258_v63 = vsel %vm2828_vm3, %v2854_v43, %v2860_v60  ;;  %v6434_v8 = vld [vmem:[#allocation2 + $0x330] sm:$0xff] }
  0xc4   : > { %5177 = vmatpush1.bf16.msra.mxu1 %v5176_v4  ;;  %953 = vmatmul.mubr.f32.gmra.mrb[36].mxu0 %v6144_v45  ;;  %v2696_v4 = vld [vmem:[#allocation4 + $0x3d8] sm:$0xff]  ;;  %v6270_v45 = vld [vmem:[#allocation2 + $0x258] sm:$0xff] }
  0xc5   : > { %5178 = vmatprep.subr.bf16.mxu1 %v5382_v0  ;;  %957 = vmatprep.mubr.f32.mxu0 %v6146_v42  ;;  %v6235_v23 = vsel %vm2828_vm3, %v2842_v26, %v2848_v57  ;;  %v6244_v56 = vsel %vm2828_vm3, %v2848_v57, %v2854_v43  ;;  %v2878_v42 = vrot.slane %v6272_v10, 4  ;;  %v1739_v26 = vrot.slane %v6167_v39, 2 }
  0xc6   : > { %2064 = vmatmul.mubr.f32.gmra.mrb[52].mxu1 %v1684_v46  ;;  %v1714_v46 = vsel %vm1631_vm2, %v1707_v13, %v1713_v29  ;;  %v6275_v13 = vld [vmem:[#allocation2 + $0x278] sm:$0xff]  ;;  %v1745_v43 = vrot.slane %v6180_v28, 2 }
  0xc7   : > { %2068 = vmatprep.mubr.f32.mxu1 %v1692_v52  ;;  %v1727_v52 = vrot.slane %v6135_v1, 2  ;;  %v1740_v57 = vsel %vm1631_vm2, %v1733_v3, %v1739_v26 }
  0xc8   : > { %5180 = vmatpush1.bf16.msra.mxu1 %v5179_v48  ;;  %958 = vmatmul.mubr.f32.gmra.mrb[38].mxu0 %v6160_v54  ;;  %v5194_v48 = vpack.c.bf16 %v2696_v4, %v2695_v38 }
  0xc9   : > { %5181 = vmatprep.subr.bf16.mxu1 %v5382_v0  ;;  %962 = vmatprep.mubr.f32.mxu0 %v6167_v39  ;;  %v1734_v16 = vsel %vm1631_vm2, %v1727_v52, %v1733_v3  ;;  %v6340_v3 = vld [vmem:[#allocation2 + $0x1c0] sm:$0xff] }
  0xca   : > { %2069 = vmatmul.mubr.f32.gmra.mrb[54].mxu1 %v1690_v58  ;;  %v6249_v58 = vld [vmem:[#allocation2 + $0x100] sm:$0xff] }
  0xcb   : > { %2073 = vmatprep.mubr.f32.mxu1 %v1698_v20  ;;  %v2866_v1 = vrot.slane %v6249_v58, 4  ;;  %v1720_v20 = vsel %vm1631_vm2, %v1713_v29, %v1719_v47 }
  0xcc   : > { %5183 = vmatpush1.bf16.msra.mxu1 %v5182_v61  ;;  %963 = vmatmul.mubr.f32.gmra.mrb[40].mxu0 %v6178_v2  ;;  %v6252_v61 = vld [vmem:[#allocation2 + $0x260] sm:$0xff] }
  0xcd   : > { %5184 = vmatprep.subr.bf16.mxu1 %v5382_v0  ;;  %967 = vmatprep.mubr.f32.mxu0 %v6180_v28  ;;  %v6267_v33 = vsel %vm2828_vm3, %v2860_v60, %v2866_v1 }
  0xce   : > { %2074 = vmatmul.mubr.f32.gmra.mrb[56].mxu1 %v1696_v50  ;;  %v1728_v50 = vsel %vm1631_vm2, %v1721_v35, %v1727_v52  ;;  %v6298_v35 = vld [vmem:[#allocation2 + $0x290] sm:$0xff]  ;;  %v6321_v52 = vld [vmem:[#allocation2 + $0x2a8] sm:$0xff] }
  0xcf   : > { %2078 = vmatprep.mubr.f32.mxu1 %v1704_v51  ;;  %v2699_v51 = vld [vmem:[#allocation4 + $0x3f0] sm:$0xff] }
  0xd0   : > { %5186 = vmatpush1.bf16.msra.mxu1 %v5185_v6  ;;  %968 = vmatmul.mubr.f32.gmra.mrb[42].mxu0 %v6189_v11  ;;  %v6263_v6 = vld [vmem:[#allocation2 + $0x118] sm:$0xff]  ;;  %v5200_v15 = vpack.c.bf16 %v2700_v32, %v2699_v51  ;;  %v6343_v51 = vld [vmem:[#allocation2 + $0x2c0] sm:$0xff]  ;;  %v2914_v32 = vrot.slane %v6340_v3, 4 }
  0xd1   : > { %5187 = vmatprep.subr.bf16.mxu1 %v5382_v0  ;;  %972 = vmatprep.mubr.f32.mxu0 %v6191_v12 }
  0xd2   : > { %2079 = vmatmul.mubr.f32.gmra.mrb[58].mxu1 %v1702_v59  ;;  %v2872_v59 = vrot.slane %v6263_v6, 4 }
  0xd3   : > { %2083 = vmatprep.mubr.f32.mxu1 %v1710_v18  ;;  %v1731_v18 = vrot.slane %v6160_v54, 2  ;;  %v6293_v54 = vld [vmem:[#allocation2 + $0x270] sm:$0xff] }
  0xd4   : > { %5189 = vmatpush1.bf16.msra.mxu1 %v5188_v14  ;;  %973 = vmatmul.mubr.f32.gmra.mrb[44].mxu0 %v6202_v21  ;;  %v1726_v14 = vsel %vm1631_vm2, %v1719_v47, %v1725_v27  ;;  %v6281_v19 = vsel %vm2828_vm3, %v2866_v1, %v2872_v59  ;;  %v6290_v29 = vsel %vm2828_vm3, %v2872_v59, %v2878_v42  ;;  %v1749_v59 = vrot.slane %v6202_v21, 2 }
  0xd5   : > { %5190 = vmatprep.subr.bf16.mxu1 %v5382_v0  ;;  %977 = vmatprep.mubr.f32.mxu0 %v6207_v25  ;;  %v1732_v38 = vsel %vm1631_vm2, %v1725_v27, %v1731_v18  ;;  %v1746_v1 = vsel %vm1631_vm2, %v1739_v26, %v1745_v43  ;;  %v6332_v27 = vld [vmem:[#allocation2 + $0x1a8] sm:$0xff]  ;;  %v6360_v26 = vld [vmem:[#allocation2 + $0x2b8] sm:$0xff] }
  0xd6   : > { %2084 = vmatmul.mubr.f32.gmra.mrb[60].mxu1 %v1708_v9  ;;  %v6286_v9 = vld [vmem:[#allocation2 + $0x148] sm:$0xff]  ;;  %v2908_v11 = vrot.slane %v6332_v27, 4 }
  0xd7   : > { %2088 = vmatprep.mubr.f32.mxu1 %v1716_v34  ;;  %v2884_v34 = vrot.slane %v6286_v9, 4 }
  0xd8   : > { %5192 = vmatpush1.bf16.msra.mxu1 %v5191_v30  ;;  %978 = vmatmul.mubr.f32.gmra.mrb[46].mxu0 %v6224_v22  ;;  %v6295_v30 = vld [vmem:[#allocation2 + $0x160] sm:$0xff] }
  0xd9   : > { %5193 = vmatprep.subr.bf16.mxu1 %v5382_v0  ;;  %982 = vmatprep.mubr.f32.mxu0 %v6229_v44  ;;  %v2890_v39 = vrot.slane %v6295_v30, 4  ;;  %v6304_v4 = vsel %vm2828_vm3, %v2878_v42, %v2884_v34 }
  0xda   : > { %2089 = vmatmul.mubr.f32.gmra.mrb[62].mxu1 %v1714_v46  ;;  %v6309_v46 = vld [vmem:[#allocation2 + $0x178] sm:$0xff] }
  0xdb   : > { %2093 = vmatprep.mubr.f32.mxu1 %v1722_v5  ;;  %v6313_v47 = vsel %vm2828_vm3, %v2884_v34, %v2890_v39  ;;  %v2896_v5 = vrot.slane %v6309_v46, 4  ;;  %v6362_v34 = vld [vmem:[#allocation2 + $0x1f0] sm:$0xff] }
  0xdc   : > { %5195 = vmatpush1.bf16.msra.mxu1 %v5194_v48  ;;  %983 = vmatmul.mubr.f32.gmra.mrb[48].mxu0 %v6247_v36  ;;  %v6318_v48 = vld [vmem:[#allocation2 + $0x190] sm:$0xff] }
  0xdd   : > { %5196 = vmatprep.subr.bf16.mxu1 %v5382_v0  ;;  %987 = vmatprep.mubr.f32.mxu0 %v6252_v61  ;;  %v2902_v28 = vrot.slane %v6318_v48, 4  ;;  %v6327_v60 = vsel %vm2828_vm3, %v2890_v39, %v2896_v5  ;;  %v6365_v39 = vld [vmem:[#allocation2 + $0x2d8] sm:$0xff] }
  0xde   : > { %2094 = vmatmul.mubr.f32.gmra.mrb[64].mxu1 %v1720_v20  ;;  %v1751_v20 = vrot.slane %v6191_v12, 2 }
  0xdf   : > { %2098 = vmatprep.mubr.f32.mxu1 %v1728_v50  ;;  %v6338_v50 = vld [vmem:[#allocation2 + $0x2a0] sm:$0xff]  ;;  %v6349_v42 = vsel %vm2828_vm3, %v2902_v28, %v2908_v11 }
  0xe0   : > { %5198 = vmatpush1.bf16.msra.mxu1 %v5197_v62  ;;  %988 = vmatmul.mubr.f32.gmra.mrb[50].mxu0 %v6270_v45  ;;  %v6335_v62 = vsel %vm2828_vm3, %v2896_v5, %v2902_v28  ;;  %v1763_v5 = vrot.slane %v6229_v44, 2  ;;  %v6376_v28 = vld [vmem:[#allocation2 + $0x208] sm:$0xff] }
  0xe1   : > { %5199 = vmatprep.subr.bf16.mxu1 %v5382_v0  ;;  %992 = vmatprep.mubr.f32.mxu0 %v6275_v13  ;;  %v1737_v0 = vrot.slane %v6178_v2, 2  ;;  %v6316_v2 = vld [vmem:[#allocation2 + $0x288] sm:$0xff] }
  0xe2   : > { %2099 = vmatmul.mubr.f32.gmra.mrb[66].mxu1 %v1726_v14  ;;  %v1752_v14 = vsel %vm1631_vm2, %v1745_v43, %v1751_v20 }
  0xe3   : > { %2103 = vmatprep.mubr.f32.mxu1 %v1734_v16  ;;  %v1738_v53 = vsel %vm1631_vm2, %v1731_v18, %v1737_v0  ;;  %v1744_v12 = vsel %vm1631_vm2, %v1737_v0, %v1743_v55  ;;  %v1757_v18 = vrot.slane %v6207_v25, 2  ;;  %v6357_v16 = vsel %vm2828_vm3, %v2908_v11, %v2914_v32  ;;  %v6387_v11 = vld [vmem:[#allocation2 + $0x2f0] sm:$0xff] }
  0xe4   : > { %5201 = vmatpush1.bf16.msra.mxu1 %v5200_v15  ;;  %993 = vmatmul.mubr.f32.gmra.mrb[52].mxu0 %v6293_v54  ;;  %v6354_v15 = vld [vmem:[#allocation2 + $0x1d8] sm:$0xff]  ;;  %7439 = vst [vmem:[#allocation7_spill] sm:$0xff] %v6357_v16  ;;  %v1750_v25 = vsel %vm1631_vm2, %v1743_v55, %v1749_v59  ;;  %v1755_v0 = vrot.slane %v6224_v22, 2  ;;  %v6384_v55 = vld [vmem:[#allocation2 + $0x220] sm:$0xff]  ;;  %v2932_v22 = vrot.slane %v6376_v28, 4 }
  0xe5   : > { %5266 = vmatprep.subr.bf16.mxu1 %v6123_v24  ;;  %997 = vmatprep.mubr.f32.mxu0 %v6298_v35  ;;  %v2920_v21 = vrot.slane %v6354_v15, 4  ;;  %v1758_v43 = vsel %vm1631_vm2, %v1751_v20, %v1757_v18  ;;  %v7429_v20 = vrot.slane %v6384_v55, 4  ;;  %v2706_v16 = vld [vmem:[#allocation4 + $0x428] sm:$0xff] }
  0xe6   : > { %2104 = vmatmul.mubr.f32.gmra.mrb[68].mxu1 %v1732_v38  ;;  %v2926_v38 = vrot.slane %v6362_v34, 4  ;;  %v1756_v44 = vsel %vm1631_vm2, %v1749_v59, %v1755_v0 }
  0xe7   : > { %2108 = vmatprep.mubr.f32.mxu1 %v1740_v57  ;;  %v6371_v57 = vsel %vm2828_vm3, %v2914_v32, %v2920_v21  ;;  %v1761_v32 = vrot.slane %v6247_v36, 2  ;;  %v6406_v36 = vld [vmem:[#allocation2 + $0x308] sm:$0xff] }
  0xe8   : > { %998 = vmatmul.mubr.f32.gmra.mrb[54].mxu0 %v6316_v2  ;;  %7440 = vst [vmem:[#allocation8_spill] sm:$0xff] %v6371_v57 }
  0xe9   : > { %1002 = vmatprep.mubr.f32.mxu0 %v6321_v52  ;;  %v1762_v59 = vsel %vm1631_vm2, %v1755_v0, %v1761_v32  ;;  %v1773_v0 = vrot.slane %v6293_v54, 2  ;;  %v1365_v54 = vld [vmem:[#allocation2 + $0x58] sm:$0xff] }
  0xea   : > { %2109 = vmatmul.mubr.f32.gmra.mrb[70].mxu1 %v1738_v53  ;;  %v6379_v53 = vsel %vm2828_vm3, %v2920_v21, %v2926_v38  ;;  %v1769_v21 = vrot.slane %v6252_v61, 2  ;;  %v1639_v31 = vrot.slane %v1365_v54, 2  ;;  %v1651_v54 = vrot.slane %v6199_v17, 2 }
  0xeb   : > { %2113 = vmatprep.mubr.f32.mxu1 %v1746_v1  ;;  %7441 = vst [vmem:[#allocation9_spill] sm:$0xff] %v6379_v53  ;;  %v6382_v1 = vld [vmem:[#allocation2 + $0x2d0] sm:$0xff] }
  0xec   : > { %1003 = vmatmul.mubr.f32.gmra.mrb[56].mxu0 %v6338_v50  ;;  %v1770_v61 = vsel %vm1631_vm2, %v1763_v5, %v1769_v21  ;;  %v2704_v53 = vld [vmem:[#allocation4 + $0x418] sm:$0xff]  ;;  %v1797_v57 = vrot.slane %v6382_v1, 2 }
  0xed   : > { %1007 = vmatprep.mubr.f32.mxu0 %v6343_v51 }
  0xee   : > { %2114 = vmatmul.mubr.f32.gmra.mrb[72].mxu1 %v1744_v12  ;;  %v6393_v12 = vsel %vm2828_vm3, %v2926_v38, %v2932_v22  ;;  %v1767_v38 = vrot.slane %v6270_v45, 2 }
  0xef   : > { %2118 = vmatprep.mubr.f32.mxu1 %v1752_v14  ;;  %7442 = vst [vmem:[#allocation10_spill] sm:$0xff] %v6393_v12  ;;  %v1764_v14 = vsel %vm1631_vm2, %v1757_v18, %v1763_v5  ;;  %v1775_v18 = vrot.slane %v6275_v13, 2  ;;  %v1781_v5 = vrot.slane %v6298_v35, 2  ;;  %v6424_v13 = vld [vmem:[#allocation2 + $0x318] sm:$0xff]  ;;  %v1787_v35 = vrot.slane %v6321_v52, 2  ;;  %v6444_v12 = vld [vmem:[#allocation2 + $0x348] sm:$0xff] }
  0xf0   : > { %1008 = vmatmul.mubr.f32.gmra.mrb[58].mxu0 %v6360_v26  ;;  %v1793_v52 = vrot.slane %v6343_v51, 2 }
  0xf1   : > { %1012 = vmatprep.mubr.f32.mxu0 %v6365_v39  ;;  %v1776_v45 = vsel %vm1631_vm2, %v1769_v21, %v1775_v18  ;;  %v1782_v21 = vsel %vm1631_vm2, %v1775_v18, %v1781_v5  ;;  %v1788_v18 = vsel %vm1631_vm2, %v1781_v5, %v1787_v35  ;;  %v1799_v5 = vrot.slane %v6365_v39, 2 }
  0xf2   : > { %2119 = vmatmul.mubr.f32.gmra.mrb[74].mxu1 %v1750_v25  ;;  %v6401_v25 = vsel %vm2828_vm3, %v2932_v22, %v7429_v20  ;;  %v6414_v22 = vld [vmem:[#allocation2 + $0x300] sm:$0xff]  ;;  %v1794_v51 = vsel %vm1631_vm2, %v1787_v35, %v1793_v52  ;;  %v2705_v35 = vld [vmem:[#allocation4 + $0x420] sm:$0xff] }
  0xf3   : > { %2123 = vmatprep.mubr.f32.mxu1 %v1758_v43  ;;  %7443 = vst [vmem:[#allocation11_spill] sm:$0xff] %v6401_v25  ;;  %v6404_v43 = vld [vmem:[#allocation2 + $0x2e8] sm:$0xff]  ;;  %v6416_v20 = vld [vmem:[#allocation2 + $0x320] sm:$0xff]  ;;  %v1785_v25 = vrot.slane %v6338_v50, 2  ;;  %v1791_v50 = vrot.slane %v6360_v26, 2  ;;  %v1800_v39 = vsel %vm1631_vm2, %v1793_v52, %v1799_v5 }
  0xf4   : > { %1013 = vmatmul.mubr.f32.gmra.mrb[60].mxu0 %v6382_v1  ;;  %v6469_v1 = vpack.c.bf16 %v2706_v16, %v2705_v35  ;;  %v2707_v52 = vld [vmem:[#allocation4 + $0x430] sm:$0xff]  ;;  %v2712_v35 = vld [vmem:[#allocation4 + $0x458] sm:$0xff] }
  0xf5   : > { %1017 = vmatprep.mubr.f32.mxu0 %v6387_v11  ;;  %v1792_v26 = vsel %vm1631_vm2, %v1785_v25, %v1791_v50 }
  0xf6   : > { %2124 = vmatmul.mubr.f32.gmra.mrb[76].mxu1 %v1756_v44  ;;  %v1768_v44 = vsel %vm1631_vm2, %v1761_v32, %v1767_v38  ;;  %v1779_v32 = vrot.slane %v6316_v2, 2 }
  0xf7   : > { %2128 = vmatprep.mubr.f32.mxu1 %v1764_v14  ;;  %v6426_v14 = vld [vmem:[#allocation2 + $0x338] sm:$0xff] }
  0xf8   : > { %1018 = vmatmul.mubr.f32.gmra.mrb[62].mxu0 %v6404_v43  ;;  %v1780_v2 = vsel %vm1631_vm2, %v1773_v0, %v1779_v32 }
  0xf9   : > { %1022 = vmatprep.mubr.f32.mxu0 %v6406_v36 }
  0xfa   : > { %2129 = vmatmul.mubr.f32.gmra.mrb[78].mxu1 %v1762_v59  ;;  %v1774_v59 = vsel %vm1631_vm2, %v1767_v38, %v1773_v0  ;;  %v1368_v38 = vld [vmem:[#allocation2 + $0x70] sm:$0xff]  ;;  %v1786_v0 = vsel %vm1631_vm2, %v1779_v32, %v1785_v25  ;;  %v1663_v32 = vrot.slane %v6216_v37, 2  ;;  %v1798_v25 = vsel %vm1631_vm2, %v1791_v50, %v1797_v57 }
  0xfb   : > { %2133 = vmatprep.mubr.f32.mxu1 %v1770_v61  ;;  %v1362_v61 = vld [vmem:[#allocation2 + $0x40] sm:$0xfc]  ;;  %v1687_v50 = vrot.slane %v6263_v6, 2  ;;  %v1693_v6 = vrot.slane %v6272_v10, 2 }
  0xfc   : > { %1023 = vmatmul.mubr.f32.gmra.mrb[64].mxu0 %v6414_v22 }
  0xfd   : > { %1027 = vmatprep.mubr.f32.mxu0 %v6416_v20 }
  0xfe   : > { %2134 = vmatmul.mubr.f32.gmra.mrb[80].mxu1 %v1768_v44  ;;  %v6436_v44 = vld [vmem:[#allocation2 + $0x350] sm:$0xff] }
  0xff   : > { %2138 = vmatprep.mubr.f32.mxu1 %v1776_v45  ;;  %v1638_v45 = vrot.slane %v1362_v61, 2 }
 0x100   : > { %1028 = vmatmul.mubr.f32.gmra.mrb[66].mxu0 %v6424_v13 }
 0x101   : > { %1032 = vmatprep.mubr.f32.mxu0 %v6426_v14  ;;  %v1640_v61 = vsel %vm1631_vm2, %v1638_v45, %v1639_v31  ;;  %v1657_v45 = vrot.slane %v6204_v49, 2 }
 0x102   : > { %2139 = vmatmul.mubr.f32.gmra.mrb[82].mxu1 %v1774_v59  ;;  %v1645_v59 = vrot.slane %v1368_v38, 2 }
 0x103   : > { %2143 = vmatprep.mubr.f32.mxu1 %v1782_v21  ;;  %v2703_v21 = vld [vmem:[#allocation4 + $0x410] sm:$0xff]  ;;  %v1658_v49 = vsel %vm1631_vm2, %v1651_v54, %v1657_v45  ;;  %v1664_v37 = vsel %vm1631_vm2, %v1657_v45, %v1663_v32 }
 0x104   : > { %1033 = vmatmul.mubr.f32.gmra.mrb[68].mxu0 %v6434_v8  ;;  %v1646_v38 = vsel %vm1631_vm2, %v1639_v31, %v1645_v59  ;;  %v1805_v31 = vrot.slane %v6387_v11, 2  ;;  %v1803_v11 = vrot.slane %v6404_v43, 2 }
 0x105   : > { %1037 = vmatprep.mubr.f32.mxu0 %v6436_v44 }
 0x106   : > { %2144 = vmatmul.mubr.f32.gmra.mrb[84].mxu1 %v1780_v2  ;;  %v1652_v2 = vsel %vm1631_vm2, %v1645_v59, %v1651_v54  ;;  %v1669_v59 = vrot.slane %v6226_v41, 2  ;;  %v1806_v41 = vsel %vm1631_vm2, %v1799_v5, %v1805_v31  ;;  %v1811_v54 = vrot.slane %v6406_v36, 2  ;;  %v2710_v5 = vld [vmem:[#allocation4 + $0x448] sm:$0xff] }
 0x107   : > { %2148 = vmatprep.mubr.f32.mxu1 %v1788_v18  ;;  %v6457_v18 = vpack.c.bf16 %v2704_v53, %v2703_v21  ;;  %v1675_v53 = vrot.slane %v6240_v7, 2  ;;  %v1681_v7 = vrot.slane %v6249_v58, 2  ;;  %v1804_v21 = vsel %vm1631_vm2, %v1797_v57, %v1803_v11 }
 0x108   : > { %1038 = vmatmul.mubr.f32.gmra.mrb[70].mxu0 %v6444_v12  ;;  %v1809_v36 = vrot.slane %v6414_v22, 2  ;;  %v1812_v58 = vsel %vm1631_vm2, %v1805_v31, %v1811_v54  ;;  %v1699_v57 = vrot.slane %v6286_v9, 2  ;;  %v1694_v31 = vsel %vm1631_vm2, %v1687_v50, %v1693_v6 }
 0x109   : > { %4768 = vmatprep.mubr.f32.mxu0 %v1640_v61  ;;  %v2708_v61 = vld [vmem:[#allocation4 + $0x438] sm:$0xff]  ;;  %v1676_v16 = vsel %vm1631_vm2, %v1669_v59, %v1675_v53  ;;  %v1682_v45 = vsel %vm1631_vm2, %v1675_v53, %v1681_v7  ;;  %v1705_v9 = vrot.slane %v6295_v30, 2  ;;  %v2713_v53 = vld [vmem:[#allocation4 + $0x460] sm:$0xff] }
 0x10a   : > { %2149 = vmatmul.mubr.f32.gmra.mrb[86].mxu1 %v1786_v0  ;;  %v1670_v0 = vsel %vm1631_vm2, %v1663_v32, %v1669_v59  ;;  %v6481_v43 = vpack.c.bf16 %v2708_v61, %v2707_v52  ;;  %v1810_v32 = vsel %vm1631_vm2, %v1803_v11, %v1809_v36  ;;  %v1711_v59 = vrot.slane %v6309_v46, 2  ;;  %v1463_v61 = vld [vmem:[#allocation2 + $0x368] sm:$0xff] }
 0x10b   : > { %2153 = vmatprep.mubr.f32.mxu1 %v1794_v51  ;;  %v2709_v51 = vld [vmem:[#allocation4 + $0x440] sm:$0xff]  ;;  %v1829_v11 = vrot.slane %v6436_v44, 2  ;;  %v1706_v52 = vsel %vm1631_vm2, %v1699_v57, %v1705_v9  ;;  %v1717_v46 = vrot.slane %v6318_v48, 2 }
 0x10c   : > { %4769 = vmatmul.mubr.f32.vlgmr.msra.gmra.mrb[72].mxu0 %v1646_v38  ;;  %v1817_v38 = vrot.slane %v6416_v20, 2  ;;  %v6493_v22 = vpack.c.bf16 %v2710_v5, %v2709_v51  ;;  %v1815_v20 = vrot.slane %v6424_v13, 2  ;;  %v1466_v51 = vld [vmem:[#allocation2 + $0x380] sm:$0xff] }
 0x10d   : > { %4771 = vmatprep.mubr.f32.mxu0 %v1652_v2  ;;  %5205 = vmatpush3.bf16.msra.mxu0 %v6123_v24  ;;  %v1688_v2 = vsel %vm1631_vm2, %v1681_v7, %v1687_v50  ;;  %v2715_v7 = vld [vmem:[#allocation4 + $0x470] sm:$0xff]  ;;  %v1835_v50 = vrot.slane %v1463_v61, 2 }
 0x10e   : > { %2154 = vmatmul.mubr.f32.gmra.mrb[88].mxu1 %v1792_v26  ;;  %5207 = vmatprep.subr.bf16.mxu0 %v6457_v18  ;;  %v2711_v26 = vld [vmem:[#allocation4 + $0x450] sm:$0xff]  ;;  %v1818_v10 = vsel %vm1631_vm2, %v1811_v54, %v1817_v38 }
 0x10f   : > { %2158 = vmatprep.mubr.f32.mxu1 %v1800_v39  ;;  %v1823_v39 = vrot.slane %v6426_v14, 2  ;;  %v6505_v13 = vpack.c.bf16 %v2712_v35, %v2711_v26  ;;  %v1821_v14 = vrot.slane %v6434_v8, 2  ;;  %v1723_v8 = vrot.slane %v6332_v27, 2 }
 0x110   : > { %4772 = vmatmul.mubr.f32.gmra.mrb[74].mxu0 %v1658_v49  ;;  %v1700_v49 = vsel %vm1631_vm2, %v1693_v6, %v1699_v57  ;;  %v1729_v27 = vrot.slane %v6340_v3, 2  ;;  %v1836_v6 = vsel %vm1631_vm2, %v1829_v11, %v1835_v50  ;;  %v1841_v3 = vrot.slane %v1466_v51, 2 }
 0x111   : > { %4774 = vmatprep.mubr.f32.mxu0 %v1664_v37  ;;  %5209 = vmatpush3.bf16.msra.mxu0 %v6457_v18  ;;  %v1816_v37 = vsel %vm1631_vm2, %v1809_v36, %v1815_v20  ;;  %v1824_v30 = vsel %vm1631_vm2, %v1817_v38, %v1823_v39  ;;  %v1822_v44 = vsel %vm1631_vm2, %v1815_v20, %v1821_v14  ;;  %v1469_v20 = vld [vmem:[#allocation2 + $0x398] sm:$0x3]  ;;  %v1747_v26 = vrot.slane %v6376_v28, 2  ;;  %v2561_v28 = vld [vmem:[#allocation2 + $0x80] sm:$0xff] }
 0x112   : > { %2159 = vmatmul.mubr.f32.gmra.mrb[90].mxu1 %v1798_v25  ;;  %5211 = vmatprep.subr.bf16.mxu0 %v6469_v1  ;;  %v2714_v25 = vld [vmem:[#allocation4 + $0x468] sm:$0xff]  ;;  %v1830_v48 = vsel %vm1631_vm2, %v1823_v39, %v1829_v11  ;;  %v1718_v36 = vsel %vm1631_vm2, %v1711_v59, %v1717_v46  ;;  %v1724_v5 = vsel %vm1631_vm2, %v1717_v46, %v1723_v8  ;;  %v6539_v39 = vld [vmem:[#allocation2 + $0x238] sm:$0xff] }
 0x113   : > { %2163 = vmatprep.mubr.f32.mxu1 %v1806_v41  ;;  %v1712_v41 = vsel %vm1631_vm2, %v1705_v9, %v1711_v59  ;;  %v6517_v54 = vpack.c.bf16 %v2714_v25, %v2713_v53  ;;  %v1730_v57 = vsel %vm1631_vm2, %v1723_v8, %v1729_v27  ;;  %v1468_v9 = vld [vmem:[#allocation2 + $0x390] sm:$0x3]  ;;  %v1753_v59 = vrot.slane %v6384_v55, 2  ;;  %v2557_v8 = vld [vmem:[#allocation2 + $0x60] sm:$0xf0] }
 0x114   : > { %4775 = vmatmul.mubr.f32.gmra.mrb[76].mxu0 %v1670_v0  ;;  %v1827_v0 = vrot.slane %v6444_v12, 2  ;;  %v1735_v12 = vrot.slane %v6354_v15, 2  ;;  %v1759_v53 = vrot.slane %v6539_v39, 2  ;;  %v6547_v25 = vld [vmem:[#allocation2 + $0x250] sm:$0xff]  ;;  %v1845_v11 = vrot.slane %v1468_v9, 2 }
 0x115   : > { %4777 = vmatprep.mubr.f32.mxu0 %v1676_v16  ;;  %5213 = vmatpush3.bf16.msra.mxu0 %v6469_v1  ;;  %v2716_v16 = vld [vmem:[#allocation4 + $0x478] sm:$0xff] }
 0x116   : > { %2164 = vmatmul.mubr.f32.gmra.mrb[92].mxu1 %v1804_v21  ;;  %5215 = vmatprep.subr.bf16.mxu0 %v6481_v43  ;;  %v1462_v21 = vld [vmem:[#allocation2 + $0x360] sm:$0xff]  ;;  %v1828_v38 = vsel %vm1631_vm2, %v1821_v14, %v1827_v0  ;;  %v1736_v15 = vsel %vm1631_vm2, %v1729_v27, %v1735_v12  ;;  %v2829_v27 = vrot.slane %v2557_v8, 4 }
 0x117   : > { %2168 = vmatprep.mubr.f32.mxu1 %v1812_v58  ;;  %v6528_v58 = vpack.c.bf16 %v2716_v16, %v2715_v7  ;;  %v1765_v7 = vrot.slane %v6547_v25, 2  ;;  %v6557_v16 = vld [vmem:[#allocation2 + $0x98] sm:$0xff] }
 0x118   : > { %4778 = vmatmul.mubr.f32.gmra.mrb[78].mxu0 %v1682_v45  ;;  %v1833_v45 = vrot.slane %v1462_v21, 2  ;;  %v6561_v21 = vld [vmem:[#allocation2 + $0x280] sm:$0xff] }
 0x119   : > { %4780 = vmatprep.mubr.f32.mxu0 %v1688_v2  ;;  %5217 = vmatpush3.bf16.msra.mxu0 %v6481_v43  ;;  %v1465_v2 = vld [vmem:[#allocation2 + $0x378] sm:$0xff] }
 0x11a   : > { %2169 = vmatmul.mubr.f32.gmra.mrb[94].mxu1 %v1810_v32  ;;  %5219 = vmatprep.subr.bf16.mxu0 %v6493_v22  ;;  %v1741_v32 = vrot.slane %v6362_v34, 2  ;;  %v1834_v35 = vsel %vm1631_vm2, %v1827_v0, %v1833_v45  ;;  %v1847_v34 = vrot.slane %v1469_v20, 2  ;;  %v1754_v0 = vsel %vm1631_vm2, %v1747_v26, %v1753_v59  ;;  %v304_v20 = vld [vmem:[%s5483_s21 + $0x138] sm:$0xff] }
 0x11b   : > { %2173 = vmatprep.mubr.f32.mxu1 %v1818_v10  ;;  %v1839_v10 = vrot.slane %v1465_v2, 2  ;;  %v1766_v2 = vsel %vm1631_vm2, %v1759_v53, %v1765_v7  ;;  %346 = vst.msk [vmem:[#allocation2 + $0x3a8] sm:$0xff] %vm306_vm0, %v304_v20 }
 0x11c   : > { %4781 = vmatmul.mubr.f32.gmra.mrb[80].mxu0 %v1694_v31  ;;  %v1842_v31 = vsel %vm1631_vm2, %v1835_v50, %v1841_v3  ;;  %v1748_v14 = vsel %vm1631_vm2, %v1741_v32, %v1747_v26  ;;  %v1848_v46 = vsel %vm1631_vm2, %v1841_v3, %v1847_v34 }
 0x11d   : > { %4783 = vmatprep.mubr.f32.mxu0 %v1700_v49  ;;  %5221 = vmatpush3.bf16.msra.mxu0 %v6493_v22  ;;  %v1742_v49 = vsel %vm1631_vm2, %v1735_v12, %v1741_v32  ;;  %v6576_v32 = vld [vmem:[#allocation2 + $0xb0] sm:$0xff] }
 0x11e   : > { %2174 = vmatmul.mubr.f32.gmra.mrb[96].mxu1 %v1816_v37  ;;  %5223 = vmatprep.subr.bf16.mxu0 %v6505_v13  ;;  %v2558_v37 = vld [vmem:[#allocation2 + $0x68] sm:$0xf0] }
 0x11f   : > { %2178 = vmatprep.mubr.f32.mxu1 %v1824_v30  ;;  %v1840_v30 = vsel %vm1631_vm2, %v1833_v45, %v1839_v10  ;;  %v2832_v61 = vrot.slane %v2558_v37, 4  ;;  %v6569_v45 = vld [vmem:[#allocation2 + $0x90] sm:$0xff]  ;;  %v2846_v37 = vrot.slane %v6576_v32, 4 }
 0x120   : > { %4784 = vmatmul.mubr.f32.gmra.mrb[82].mxu0 %v1706_v52  ;;  %v6550_v52 = vld [vmem:[#allocation2 + $0x268] sm:$0xff]  ;;  %v2838_v9 = vrot.slane %v6569_v45, 4  ;;  %v2573_v45 = vld [vmem:[#allocation2 + $0xe0] sm:$0xff] }
 0x121   : > { %4786 = vmatprep.mubr.f32.mxu0 %v1712_v41  ;;  %5225 = vmatpush3.bf16.msra.mxu0 %v6505_v13  ;;  %v2833_v41 = vrot.slane %v2561_v28, 4  ;;  %v1771_v50 = vrot.slane %v6550_v52, 2  ;;  %v2566_v28 = vld [vmem:[#allocation2 + $0xa8] sm:$0xff] }
 0x122   : > { %2179 = vmatmul.mubr.f32.gmra.mrb[98].mxu1 %v1822_v44  ;;  %5227 = vmatprep.subr.bf16.mxu0 %v6517_v54  ;;  %v6553_v44 = vld [vmem:[#allocation2 + $0x78] sm:$0xff] }
 0x123   : > { %2183 = vmatprep.mubr.f32.mxu1 %v1830_v48  ;;  %v1760_v48 = vsel %vm1631_vm2, %v1753_v59, %v1759_v53  ;;  %v2830_v51 = vrot.slane %v6553_v44, 4  ;;  %v2834_v12 = vsel %vm2828_vm3, %v2832_v61, %v2833_v41  ;;  %v1772_v26 = vsel %vm1631_vm2, %v1765_v7, %v1771_v50  ;;  %v305_v61 = vld [vmem:[%s5483_s21 + $0x140] sm:$0xf] }
 0x124   : > { %4787 = vmatmul.mubr.f32.gmra.mrb[84].mxu0 %v1718_v36  ;;  %v1846_v36 = vsel %vm1631_vm2, %v1839_v10, %v1845_v11  ;;  %v6584_v10 = vld [vmem:[#allocation2 + $0x2b0] sm:$0xff]  ;;  %348 = vst.msk [vmem:[#allocation2 + $0x3c0] sm:$0xf] %vm347_vm4, %v305_v61  ;;  %v1458_v61 = vld [vmem:[#allocation2 + $0x340] sm:$0xff] }
 0x125   : > { %4789 = vmatprep.mubr.f32.mxu0 %v1724_v5  ;;  %5229 = vmatpush3.bf16.msra.mxu0 %v6517_v54  ;;  %v6565_v5 = vld [vmem:[#allocation2 + $0x298] sm:$0xff]  ;;  %v6572_v3 = vpop.f32.mrb[0].mxu1  ;;  %v2831_v34 = vsel %vm2828_vm3, %v2829_v27, %v2830_v51  ;;  %v1789_v11 = vrot.slane %v6584_v10, 2  ;;  %v2839_v7 = vsel %vm2828_vm3, %v2830_v51, %v2838_v9  ;;  %v2569_v27 = vld [vmem:[#allocation2 + $0xc0] sm:$0xff] }
 0x126   : > { %2184 = vmatmul.mubr.f32.gmra.mrb[100].mxu1 %v1828_v38  ;;  %5231 = vmatprep.subr.bf16.mxu0 %v6528_v58  ;;  %v2840_v38 = vrot.slane %v6557_v16, 4  ;;  %v2844_v16 = vrot.slane %v2566_v28, 4  ;;  %v2850_v20 = vrot.slane %v2569_v27, 4  ;;  %v2575_v27 = vld [vmem:[#allocation2 + $0xf0] sm:$0xff] }
 0x127   : > { %2188 = vmatprep.mubr.f32.mxu1 %v1836_v6  ;;  %v4395_v6 = vld [vmem:[%s5483_s21 + $0x139] sm:$0xff] }
 0x128   : > { %4790 = vmatmul.mubr.f32.gmra.mrb[86].mxu0 %v1730_v57  ;;  %v1777_v57 = vrot.slane %v6561_v21, 2  ;;  %474 = vst.msk [vmem:[#allocation2 + $0x3b0] sm:$0xff] %vm306_vm0, %v4395_v6  ;;  %v2841_v59 = vsel %vm2828_vm3, %v2833_v41, %v2840_v38  ;;  %v2845_v32 = vsel %vm2828_vm3, %v2838_v9, %v2844_v16 }
 0x129   : > { %4792 = vmatprep.mubr.f32.mxu0 %v1736_v15  ;;  %5233 = vmatpush3.bf16.msra.mxu0 %v6528_v58  ;;  %v6580_v15 = vpop.f32.mrb[1].mxu1 }
 0x12a   : > { %2189 = vmatmul.mubr.f32.gmra.mrb[102].mxu1 %v1834_v35  ;;  %v1783_v35 = vrot.slane %v6565_v5, 2  ;;  %v6598_v53 = vpop.f32.mrb[2].mxu1 }
 0x12b   : > { %2193 = vmatprep.mubr.f32.mxu1 %v1842_v31  ;;  %v7444_v31 = vmov 0.0   ;;  %v6604_v8 = vpop.f32.mrb[3].mxu1 }
 0x12c   : > { %4793 = vmatmul.mubr.f32.gmra.mrb[88].mxu0 %v1742_v49  ;;  %515 = vst.msk [vmem:[#allocation2 + $0x3b0] sm:$0xff] %vm349_vm1, %v7444_v31  ;;  %v6591_v49 = vld [vmem:[#allocation2 + $0x2c8] sm:$0xff]  ;;  %389 = vst.msk [vmem:[#allocation2 + $0x3a8] sm:$0xff] %vm349_vm1, %v7444_v31  ;;  %v1784_v41 = vsel %vm1631_vm2, %v1777_v57, %v1783_v35 }
 0x12d   : > { %4795 = vmatprep.mubr.f32.mxu0 %v1748_v14  ;;  %v4396_v14 = vld [vmem:[%s5483_s21 + $0x141] sm:$0xf]  ;;  %v1795_v44 = vrot.slane %v6591_v49, 2  ;;  %391 = vst.msk [vmem:[#allocation2 + $0x3c0] sm:$0xf] %vm390_vm5, %v7444_v31 }
 0x12e   : > { %2194 = vmatmul.mubr.f32.gmra.mrb[104].mxu1 %v1840_v30  ;;  %v1778_v30 = vsel %vm1631_vm2, %v1771_v50, %v1777_v57  ;;  %475 = vst.msk [vmem:[#allocation2 + $0x3c8] sm:$0xf] %vm347_vm4, %v4396_v14  ;;  %v2847_v50 = vsel %vm2828_vm3, %v2840_v38, %v2846_v37  ;;  %v6629_v38 = vld [vmem:[#allocation2 + $0x310] sm:$0xff] }
 0x12f   : > { %2198 = vmatprep.mubr.f32.mxu1 %v1848_v46  ;;  %v2570_v46 = vld [vmem:[#allocation2 + $0xc8] sm:$0xff]  ;;  %516 = vst.msk [vmem:[#allocation2 + $0x3c8] sm:$0xf] %vm390_vm5, %v7444_v31 }
 0x130   : > { %4796 = vmatmul.mubr.f32.gmra.mrb[90].mxu0 %v1754_v0  ;;  %v6608_v0 = vld [vmem:[#allocation2 + $0x2e0] sm:$0xff] }
 0x131   : > { %4798 = vmatprep.mubr.f32.mxu0 %v1760_v48  ;;  %v6615_v48 = vld [vmem:[#allocation2 + $0x2f8] sm:$0xff]  ;;  %v1801_v51 = vrot.slane %v6608_v0, 2 }
 0x132   : > { %2199 = vmatmul.mubr.f32.gmra.mrb[106].mxu1 %v1846_v36  ;;  %v2852_v36 = vrot.slane %v2570_v46, 4  ;;  %v1807_v57 = vrot.slane %v6615_v48, 2 }
 0x133   : > { %3220 = vmatprep.mubr.f32.mxu1 %v2834_v12  ;;  %v6621_v12 = vpop.f32.mrb[4].mxu1  ;;  %v1802_v14 = vsel %vm1631_vm2, %v1795_v44, %v1801_v51 }
 0x134   : > { %4799 = vmatmul.mubr.f32.gmra.mrb[92].mxu0 %v1766_v2  ;;  %v6625_v6 = vpop.f32.mrb[5].mxu1  ;;  %v1796_v2 = vsel %vm1631_vm2, %v1789_v11, %v1795_v44 }
 0x135   : > { %4801 = vmatprep.mubr.f32.mxu0 %v1772_v26  ;;  %v1455_v26 = vld [vmem:[#allocation2 + $0x328] sm:$0xff]  ;;  %v6635_v28 = vpop.f32.mrb[6].mxu1 }
 0x136   : > { %3221 = vmatmul.mubr.f32.vlgmr.msra.gmra.mrb[108].mxu1 %v2831_v34  ;;  %v2858_v34 = vrot.slane %v2573_v45, 4  ;;  %v6639_v9 = vpop.f32.mrb[7].mxu1  ;;  %v1819_v46 = vrot.slane %v1455_v26, 2  ;;  %v1825_v45 = vrot.slane %v1458_v61, 2  ;;  %v1464_v26 = vld [vmem:[#allocation2 + $0x370] sm:$0xff] }
 0x137   : > { %5274 = vmatpush3.bf16.msra.mxu1 %v6123_v24  ;;  %3225 = vmatprep.mubr.f32.mxu1 %v2841_v59  ;;  %v1790_v24 = vsel %vm1631_vm2, %v1783_v35, %v1789_v11  ;;  %v2853_v35 = vsel %vm2828_vm3, %v2846_v37, %v2852_v36  ;;  %v2572_v59 = vld [vmem:[#allocation2 + $0xd8] sm:$0xff]  ;;  %v2851_v37 = vsel %vm2828_vm3, %v2844_v16, %v2850_v20 }
 0x138   : > { %4802 = vmatmul.mubr.f32.gmra.mrb[94].mxu0 %v1778_v30  ;;  %5267 = vmatprep.subr.bf16.mxu1 %v6457_v18  ;;  %v1813_v30 = vrot.slane %v6629_v38, 2  ;;  %v2576_v11 = vld [vmem:[#allocation2 + $0xf8] sm:$0xff]  ;;  %v2859_v44 = vsel %vm2828_vm3, %v2852_v36, %v2858_v34 }
 0x139   : > { %4804 = vmatprep.mubr.f32.mxu0 %v1784_v41  ;;  %v2856_v41 = vrot.slane %v2572_v59, 4  ;;  %v1467_v59 = vld [vmem:[#allocation2 + $0x388] sm:$0xff] }
 0x13a   : > { %3226 = vmatmul.mubr.f32.gmra.mrb[110].mxu1 %v2839_v7  ;;  %v1461_v7 = vld [vmem:[#allocation2 + $0x358] sm:$0xff] }
 0x13b   : > { %3230 = vmatprep.mubr.f32.mxu1 %v2847_v50  ;;  %5275 = vmatpush3.bf16.msra.mxu1 %v6457_v18  ;;  %v1808_v18 = vsel %vm1631_vm2, %v1801_v51, %v1807_v57  ;;  %v2864_v50 = vrot.slane %v2576_v11, 4  ;;  %v1814_v51 = vsel %vm1631_vm2, %v1807_v57, %v1813_v30  ;;  %v2857_v36 = vsel %vm2828_vm3, %v2850_v20, %v2856_v41  ;;  %v2578_v11 = vld [vmem:[#allocation2 + $0x108] sm:$0xff] }
 0x13c   : > { %4805 = vmatmul.mubr.f32.gmra.mrb[96].mxu0 %v1790_v24  ;;  %5268 = vmatprep.subr.bf16.mxu1 %v6469_v1  ;;  %v6646_v24 = vpop.f32.mrb[8].mxu1  ;;  %v2582_v20 = vld [vmem:[#allocation2 + $0x128] sm:$0xff] }
 0x13d   : > { %4807 = vmatprep.mubr.f32.mxu0 %v1796_v2  ;;  %v2579_v2 = vld [vmem:[#allocation2 + $0x110] sm:$0xff]  ;;  %v6649_v16 = vpop.f32.mrb[9].mxu1  ;;  %v2865_v57 = vsel %vm2828_vm3, %v2858_v34, %v2864_v50  ;;  %v1843_v34 = vrot.slane %v1467_v59, 2 }
 0x13e   : > { %3231 = vmatmul.mubr.f32.gmra.mrb[112].mxu1 %v2845_v32  ;;  %v1831_v32 = vrot.slane %v1461_v7, 2  ;;  %v6657_v61 = vpop.f32.mrb[10].mxu1  ;;  %v4437_v7 = vld [vmem:[%s5483_s21 + $0x142] sm:$0xf] }
 0x13f   : > { %3235 = vmatprep.mubr.f32.mxu1 %v2853_v35  ;;  %5276 = vmatpush3.bf16.msra.mxu1 %v6469_v1  ;;  %v1820_v1 = vsel %vm1631_vm2, %v1813_v30, %v1819_v46  ;;  %v2862_v35 = vrot.slane %v2575_v27, 4  ;;  %v1826_v30 = vsel %vm1631_vm2, %v1819_v46, %v1825_v45  ;;  %v1470_v27 = vld [vmem:[#allocation2 + $0x3a0] sm:$0x3]  ;;  %600 = vst.msk [vmem:[#allocation2 + $0x3d0] sm:$0xf] %vm347_vm4, %v4437_v7  ;;  %v2584_v7 = vld [vmem:[#allocation2 + $0x138] sm:$0xff] }
 0x140   : > { %4808 = vmatmul.mubr.f32.gmra.mrb[98].mxu0 %v1802_v14  ;;  %5269 = vmatprep.subr.bf16.mxu1 %v6481_v43  ;;  %v2870_v14 = vrot.slane %v2579_v2, 4  ;;  %v2559_v2 = vld [vmem:[#allocation2 + $0x70] sm:$0xf0]  ;;  %641 = vst.msk [vmem:[#allocation2 + $0x3d0] sm:$0xf] %vm390_vm5, %v7444_v31 }
 0x141   : > { %4810 = vmatprep.mubr.f32.mxu0 %v1808_v18  ;;  %v4436_v18 = vld [vmem:[%s5483_s21 + $0x13a] sm:$0xff]  ;;  %v2863_v46 = vsel %vm2828_vm3, %v2856_v41, %v2862_v35  ;;  %v1849_v41 = vrot.slane %v1470_v27, 2 }
 0x142   : > { %3236 = vmatmul.mubr.f32.gmra.mrb[114].mxu1 %v2851_v37  ;;  %v1837_v37 = vrot.slane %v1464_v26, 2  ;;  %599 = vst.msk [vmem:[#allocation2 + $0x3b8] sm:$0xff] %vm306_vm0, %v4436_v18  ;;  %v2581_v26 = vld [vmem:[#allocation2 + $0x120] sm:$0xff] }
 0x143   : > { %3240 = vmatprep.mubr.f32.mxu1 %v2859_v44  ;;  %5277 = vmatpush3.bf16.msra.mxu1 %v6481_v43  ;;  %v6662_v44 = vpop.f32.mrb[11].mxu1  ;;  %v1832_v43 = vsel %vm1631_vm2, %v1825_v45, %v1831_v32  ;;  %640 = vst.msk [vmem:[#allocation2 + $0x3b8] sm:$0xff] %vm349_vm1, %v7444_v31  ;;  %v2871_v45 = vsel %vm2828_vm3, %v2864_v50, %v2870_v14  ;;  %v2835_v31 = vrot.slane %v2559_v2, 4  ;;  %v2874_v18 = vrot.slane %v2581_v26, 4 }
 0x144   : > { %4811 = vmatmul.mubr.f32.gmra.mrb[100].mxu0 %v1814_v51  ;;  %5270 = vmatprep.subr.bf16.mxu1 %v6493_v22  ;;  %v2868_v51 = vrot.slane %v2578_v11, 4  ;;  %v1838_v59 = vsel %vm1631_vm2, %v1831_v32, %v1837_v37  ;;  %v2880_v2 = vrot.slane %v2584_v7, 4  ;;  %v2590_v7 = vld [vmem:[#allocation2 + $0x168] sm:$0xff] }
 0x145   : > { %4813 = vmatprep.mubr.f32.mxu0 %v1820_v1  ;;  %v2876_v1 = vrot.slane %v2582_v20, 4 }
 0x146   : > { %3241 = vmatmul.mubr.f32.gmra.mrb[116].mxu1 %v2857_v36  ;;  %v6674_v36 = vpop.f32.mrb[12].mxu1  ;;  %v2869_v50 = vsel %vm2828_vm3, %v2862_v35, %v2868_v51  ;;  %v7445_v35 = vrot.slane %v6199_v17, 4 }
 0x147   : > { %3245 = vmatprep.mubr.f32.mxu1 %v2865_v57  ;;  %5278 = vmatpush3.bf16.msra.mxu1 %v6493_v22  ;;  %v2585_v57 = vld [vmem:[#allocation2 + $0x140] sm:$0xff]  ;;  %v6677_v11 = vpop.f32.mrb[13].mxu1  ;;  %v1844_v22 = vsel %vm1631_vm2, %v1837_v37, %v1843_v34  ;;  %v2588_v37 = vld [vmem:[#allocation2 + $0x158] sm:$0xff] }
 0x148   : > { %4814 = vmatmul.mubr.f32.gmra.mrb[102].mxu0 %v1826_v30  ;;  %5271 = vmatprep.subr.bf16.mxu1 %v6505_v13  ;;  %v2877_v30 = vsel %vm2828_vm3, %v2870_v14, %v2876_v1  ;;  %v2882_v20 = vrot.slane %v2585_v57, 4  ;;  %v6684_v32 = vpop.f32.mrb[14].mxu1  ;;  %v2875_v14 = vsel %vm2828_vm3, %v2868_v51, %v2874_v18  ;;  %v2591_v57 = vld [vmem:[#allocation2 + $0x170] sm:$0xff] }
 0x149   : > { %4816 = vmatprep.mubr.f32.mxu0 %v1832_v43  ;;  %v1850_v43 = vsel %vm1631_vm2, %v1843_v34, %v1849_v41  ;;  %v6687_v27 = vpop.f32.mrb[15].mxu1  ;;  %v2587_v41 = vld [vmem:[#allocation2 + $0x150] sm:$0xff] }
 0x14a   : > { %3246 = vmatmul.mubr.f32.gmra.mrb[118].mxu1 %v2863_v46  ;;  %v864_v46 = vpop.f32.mrb[0].mxu0  ;;  %v2883_v26 = vsel %vm2828_vm3, %v2876_v1, %v2882_v20  ;;  %v6699_v17 = vpop.f32.mrb[16].mxu1 }
 0x14b   : > { %3250 = vmatprep.mubr.f32.mxu1 %v2871_v45  ;;  %5279 = vmatpush3.bf16.msra.mxu1 %v6505_v13  ;;  %v2837_v13 = vsel %vm2828_vm3, %v2835_v31, %v7445_v35  ;;  %v6695_v45 = vadd.f32 %v6580_v15, %v864_v46  ;;  %v866_v34 = vpop.f32.mrb[1].mxu0  ;;  %v2886_v15 = vrot.slane %v2587_v41, 4 }
 0x14c   : > { %4817 = vmatmul.mubr.f32.gmra.mrb[104].mxu0 %v1838_v59  ;;  %5272 = vmatprep.subr.bf16.mxu1 %v6517_v54  ;;  %v2888_v59 = vrot.slane %v2588_v37, 4  ;;  %v869_v51 = vpop.f32.mrb[2].mxu0  ;;  %v2594_v37 = vld [vmem:[#allocation2 + $0x188] sm:$0xff]  ;;  %v2597_v34 = vld [vmem:[#allocation2 + $0x1a0] sm:$0xff] }
 0x14d   : > { %4819 = vmatprep.mubr.f32.mxu0 %v1844_v22  ;;  %v6701_v22 = vpop.f32.mrb[17].mxu1  ;;  %v6706_v1 = vadd.f32 %v6572_v3, %v869_v51  ;;  %v871_v31 = vpop.f32.mrb[3].mxu0  ;;  %v2892_v3 = vrot.slane %v2590_v7, 4  ;;  %v2900_v46 = vrot.slane %v2594_v37, 4  ;;  %v2906_v51 = vrot.slane %v2597_v34, 4 }
 0x14e   : > { %3251 = vmatmul.mubr.f32.gmra.mrb[120].mxu1 %v2869_v50  ;;  %v2889_v50 = vsel %vm2828_vm3, %v2882_v20, %v2888_v59  ;;  %v2600_v31 = vld [vmem:[#allocation2 + $0x1b8] sm:$0xff] }
 0x14f   : > { %3255 = vmatprep.mubr.f32.mxu1 %v2877_v30  ;;  %5280 = vmatpush3.bf16.msra.mxu1 %v6517_v54  ;;  %v2881_v54 = vsel %vm2828_vm3, %v2874_v18, %v2880_v2  ;;  %v2894_v30 = vrot.slane %v2591_v57, 4  ;;  %v874_v18 = vpop.f32.mrb[4].mxu0  ;;  %v2907_v37 = vsel %vm2828_vm3, %v2900_v46, %v2906_v51 }
 0x150   : > { %4820 = vmatmul.mubr.f32.gmra.mrb[106].mxu0 %v1850_v43  ;;  %5273 = vmatprep.subr.bf16.mxu1 %v6528_v58  ;;  %v6710_v43 = vpop.f32.mrb[18].mxu1  ;;  %v876_v20 = vpop.f32.mrb[5].mxu0 }
 0x151   : > { %4854 = vmatprep.mubr.f32.mxu0 %v2837_v13  ;;  %v6713_v35 = vpop.f32.mrb[19].mxu1  ;;  %v2895_v13 = vsel %vm2828_vm3, %v2888_v59, %v2894_v30  ;;  %v2901_v57 = vsel %vm2828_vm3, %v2894_v30, %v2900_v46  ;;  %v2603_v20 = vld [vmem:[#allocation2 + $0x1d0] sm:$0xff] }
 0x152   : > { %3256 = vmatmul.mubr.f32.gmra.mrb[122].mxu1 %v2875_v14  ;;  %v2593_v14 = vld [vmem:[#allocation2 + $0x180] sm:$0xff] }
 0x153   : > { %3260 = vmatprep.mubr.f32.mxu1 %v2883_v26  ;;  %5281 = vmatpush3.bf16.msra.mxu1 %v6528_v58  ;;  %v2887_v58 = vsel %vm2828_vm3, %v2880_v2, %v2886_v15  ;;  %v879_v2 = vpop.f32.mrb[6].mxu0  ;;  %v2898_v41 = vrot.slane %v2593_v14, 4 }
 0x154   : > { %4855 = vmatmul.mubr.f32.vlgmr.msra.gmra.mrb[108].mxu0 %v6221_v40  ;;  %v6717_v40 = vadd.f32 %v6604_v8, %v874_v18  ;;  %v2893_v8 = vsel %vm2828_vm3, %v2886_v15, %v2892_v3  ;;  %v881_v59 = vpop.f32.mrb[7].mxu0  ;;  %v2912_v18 = vrot.slane %v2600_v31, 4 }
 0x155   : > { %4857 = vmatprep.mubr.f32.mxu0 %v6235_v23  ;;  %v6721_v23 = vpop.f32.mrb[20].mxu1  ;;  %v2606_v59 = vld [vmem:[#allocation2 + $0x1e8] sm:$0xff] }
 0x156   : > { %3261 = vmatmul.mubr.f32.gmra.mrb[124].mxu1 %v2881_v54  ;;  %v6724_v26 = vpop.f32.mrb[21].mxu1  ;;  %v2596_v54 = vld [vmem:[#allocation2 + $0x198] sm:$0xff]  ;;  %v2913_v34 = vsel %vm2828_vm3, %v2906_v51, %v2912_v18 }
 0x157   : > { %3265 = vmatprep.mubr.f32.mxu1 %v2889_v50  ;;  %v884_v15 = vpop.f32.mrb[8].mxu0  ;;  %v2904_v7 = vrot.slane %v2596_v54, 4 }
 0x158   : > { %4858 = vmatmul.mubr.f32.gmra.mrb[110].mxu0 %v6244_v56  ;;  %v6728_v56 = vadd.f32 %v6598_v53, %v879_v2  ;;  %v2899_v53 = vsel %vm2828_vm3, %v2892_v3, %v2898_v41  ;;  %v886_v30 = vpop.f32.mrb[9].mxu0  ;;  %v2918_v2 = vrot.slane %v2603_v20, 4  ;;  %v7446_v20 = vld [vmem:[#allocation7_spill] sm:$0xff] }
 0x159   : > { %4860 = vmatprep.mubr.f32.mxu0 %v6258_v63  ;;  %v6732_v63 = vpop.f32.mrb[22].mxu1  ;;  %v2609_v30 = vld [vmem:[#allocation2 + $0x200] sm:$0xff] }
 0x15a   : > { %3266 = vmatmul.mubr.f32.gmra.mrb[126].mxu1 %v2887_v58  ;;  %v6735_v50 = vpop.f32.mrb[23].mxu1  ;;  %v2599_v58 = vld [vmem:[#allocation2 + $0x1b0] sm:$0xff]  ;;  %v2919_v31 = vsel %vm2828_vm3, %v2912_v18, %v2918_v2 }
 0x15b   : > { %3270 = vmatprep.mubr.f32.mxu1 %v2895_v13  ;;  %v2910_v14 = vrot.slane %v2599_v58, 4 }
 0x15c   : > { %4861 = vmatmul.mubr.f32.gmra.mrb[112].mxu0 %v6267_v33  ;;  %v6739_v33 = vadd.f32 %v6625_v6, %v884_v15  ;;  %v889_v3 = vpop.f32.mrb[10].mxu0  ;;  %v2905_v6 = vsel %vm2828_vm3, %v2898_v41, %v2904_v7  ;;  %v2924_v15 = vrot.slane %v2606_v59, 4 }
 0x15d   : > { %4863 = vmatprep.mubr.f32.mxu0 %v6281_v19  ;;  %v6743_v19 = vpop.f32.mrb[24].mxu1  ;;  %v891_v46 = vpop.f32.mrb[11].mxu0 }
 0x15e   : > { %3271 = vmatmul.mubr.f32.gmra.mrb[128].mxu1 %v2893_v8  ;;  %v6746_v13 = vpop.f32.mrb[25].mxu1  ;;  %v2602_v8 = vld [vmem:[#allocation2 + $0x1c8] sm:$0xff]  ;;  %v2608_v46 = vld [vmem:[#allocation2 + $0x1f8] sm:$0xff] }
 0x15f   : > { %3275 = vmatprep.mubr.f32.mxu1 %v2901_v57  ;;  %v2916_v54 = vrot.slane %v2602_v8, 4  ;;  %v2612_v8 = vld [vmem:[#allocation2 + $0x218] sm:$0xff] }
 0x160   : > { %4864 = vmatmul.mubr.f32.gmra.mrb[114].mxu0 %v6290_v29  ;;  %v6750_v29 = vadd.f32 %v6621_v12, %v889_v3  ;;  %v894_v41 = vpop.f32.mrb[12].mxu0  ;;  %v2911_v12 = vsel %vm2828_vm3, %v2904_v7, %v2910_v14  ;;  %v2925_v3 = vsel %vm2828_vm3, %v2918_v2, %v2924_v15  ;;  %v7449_v2 = vld [vmem:[#allocation9_spill] sm:$0xff] }
 0x161   : > { %4866 = vmatprep.mubr.f32.mxu0 %v6304_v4  ;;  %v6754_v4 = vpop.f32.mrb[26].mxu1  ;;  %v896_v51 = vpop.f32.mrb[13].mxu0 }
 0x162   : > { %3276 = vmatmul.mubr.f32.gmra.mrb[130].mxu1 %v2899_v53  ;;  %v6757_v57 = vpop.f32.mrb[27].mxu1  ;;  %v2605_v53 = vld [vmem:[#allocation2 + $0x1e0] sm:$0xff] }
 0x163   : > { %3280 = vmatprep.mubr.f32.mxu1 %v2907_v37  ;;  %v2922_v58 = vrot.slane %v2605_v53, 4 }
 0x164   : > { %4867 = vmatmul.mubr.f32.gmra.mrb[116].mxu0 %v6313_v47  ;;  %v6761_v47 = vadd.f32 %v6639_v9, %v894_v41  ;;  %v2917_v9 = vsel %vm2828_vm3, %v2910_v14, %v2916_v54  ;;  %v2944_v14 = vrot.slane %v6539_v39, 4  ;;  %v2615_v39 = vld [vmem:[#allocation2 + $0x230] sm:$0xff] }
 0x165   : > { %4869 = vmatprep.mubr.f32.mxu0 %v6327_v60  ;;  %v6765_v60 = vpop.f32.mrb[28].mxu1 }
 0x166   : > { %3281 = vmatmul.mubr.f32.gmra.mrb[132].mxu1 %v2905_v6  ;;  %v6768_v37 = vpop.f32.mrb[29].mxu1  ;;  %v2930_v6 = vrot.slane %v2609_v30, 4  ;;  %v2936_v30 = vrot.slane %v2612_v8, 4 }
 0x167   : > { %3285 = vmatprep.mubr.f32.mxu1 %v2913_v34  ;;  %v899_v7 = vpop.f32.mrb[14].mxu0  ;;  %v7447_v34 = vld [vmem:[#allocation8_spill] sm:$0xff] }
 0x168   : > { %4870 = vmatmul.mubr.f32.gmra.mrb[118].mxu0 %v6335_v62  ;;  %v6772_v62 = vadd.f32 %v6635_v28, %v899_v7  ;;  %v901_v18 = vpop.f32.mrb[15].mxu0  ;;  %v2923_v28 = vsel %vm2828_vm3, %v2916_v54, %v2922_v58  ;;  %v2931_v53 = vsel %vm2828_vm3, %v2924_v15, %v2930_v6  ;;  %v2611_v7 = vld [vmem:[#allocation2 + $0x210] sm:$0xff] }
 0x169   : > { %4872 = vmatprep.mubr.f32.mxu0 %v6349_v42  ;;  %v6776_v42 = vpop.f32.mrb[30].mxu1  ;;  %v2950_v18 = vrot.slane %v6547_v25, 4  ;;  %v2934_v8 = vrot.slane %v2611_v7, 4  ;;  %v2968_v7 = vrot.slane %v6565_v5, 4 }
 0x16a   : > { %3286 = vmatmul.mubr.f32.gmra.mrb[134].mxu1 %v2911_v12  ;;  %v6779_v59 = vpop.f32.mrb[31].mxu1  ;;  %v2928_v12 = vrot.slane %v2608_v46, 4  ;;  %v2956_v46 = vrot.slane %v6550_v52, 4 }
 0x16b   : > { %3290 = vmatprep.mubr.f32.mxu1 %v2919_v31  ;;  %v2951_v52 = vsel %vm2828_vm3, %v2944_v14, %v2950_v18 }
 0x16c   : > { %4873 = vmatmul.mubr.f32.gmra.mrb[120].mxu0 %v7446_v20  ;;  %v904_v41 = vpop.f32.mrb[16].mxu0  ;;  %v2929_v15 = vsel %vm2828_vm3, %v2922_v58, %v2928_v12 }
 0x16d   : > { %4875 = vmatprep.mubr.f32.mxu0 %v7447_v34  ;;  %v6784_v51 = vadd.f32 %v6649_v16, %v904_v41  ;;  %v906_v31 = vpop.f32.mrb[17].mxu0  ;;  %v7451_v16 = vrot.slane %v6384_v55, 4 }
 0x16e   : > { %3291 = vmatmul.mubr.f32.gmra.mrb[136].mxu1 %v2917_v9  ;;  %v7450_v9 = vld [vmem:[#allocation10_spill] sm:$0xff]  ;;  %v2937_v31 = vsel %vm2828_vm3, %v2930_v6, %v2936_v30  ;;  %v2935_v6 = vsel %vm2828_vm3, %v2928_v12, %v2934_v8 }
 0x16f   : > { %3295 = vmatprep.mubr.f32.mxu1 %v2925_v3  ;;  %7448 = vst [vmem:[#allocation7_spill] sm:$0xff] %v6784_v51  ;;  %v6788_v20 = vpop.f32.mrb[32].mxu1  ;;  %v2945_v54 = vsel %vm2828_vm3, %v7451_v16, %v2944_v14  ;;  %v2618_v16 = vld [vmem:[#allocation2 + $0x248] sm:$0xff] }
 0x170   : > { %4876 = vmatmul.mubr.f32.gmra.mrb[122].mxu0 %v7449_v2  ;;  %v6792_v3 = vpop.f32.mrb[33].mxu1  ;;  %v7452_v2 = vld [vmem:[#allocation11_spill] sm:$0xff] }
 0x171   : > { %4878 = vmatprep.mubr.f32.mxu0 %v7450_v9  ;;  %v909_v34 = vpop.f32.mrb[18].mxu0  ;;  %v2614_v9 = vld [vmem:[#allocation2 + $0x228] sm:$0xff] }
 0x172   : > { %3296 = vmatmul.mubr.f32.gmra.mrb[138].mxu1 %v2923_v28  ;;  %v6800_v41 = vadd.f32 %v6646_v24, %v909_v34  ;;  %v911_v25 = vpop.f32.mrb[19].mxu0  ;;  %v2942_v28 = vrot.slane %v2615_v39, 4  ;;  %v2957_v24 = vsel %vm2828_vm3, %v2950_v18, %v2956_v46  ;;  %v2940_v39 = vrot.slane %v2614_v9, 4  ;;  %v2621_v18 = vld [vmem:[#allocation2 + $0x260] sm:$0xff] }
 0x173   : > { %3300 = vmatprep.mubr.f32.mxu1 %v2931_v53  ;;  %v2962_v53 = vrot.slane %v6561_v21, 4  ;;  %v2948_v21 = vrot.slane %v2618_v16, 4  ;;  %v2617_v25 = vld [vmem:[#allocation2 + $0x240] sm:$0xff] }
 0x174   : > { %4879 = vmatmul.mubr.f32.gmra.mrb[124].mxu0 %v7452_v2  ;;  %v2943_v14 = vsel %vm2828_vm3, %v2936_v30, %v2942_v28  ;;  %v2941_v30 = vsel %vm2828_vm3, %v2934_v8, %v2940_v39 }
 0x175   : > { %v6804_v55 = vpop.f32.mrb[34].mxu1  ;;  %4881 = vmatprep.mubr.f32.mxu0 %v2945_v54  ;;  %v2963_v5 = vsel %vm2828_vm3, %v2956_v46, %v2962_v53  ;;  %v2969_v12 = vsel %vm2828_vm3, %v2962_v53, %v2968_v7  ;;  %v2954_v46 = vrot.slane %v2621_v18, 4  ;;  %v2986_v53 = vrot.slane %v6608_v0, 4 }
 0x176   : > { %v6808_v58 = vpop.f32.mrb[35].mxu1  ;;  %3301 = vmatmul.mubr.f32.gmra.mrb[140].mxu1 %v2929_v15  ;;  %v914_v34 = vpop.f32.mrb[20].mxu0  ;;  %v2974_v15 = vrot.slane %v6584_v10, 4  ;;  %v2620_v10 = vld [vmem:[#allocation2 + $0x258] sm:$0xff] }
 0x177   : > { %3305 = vmatprep.mubr.f32.mxu1 %v2937_v31  ;;  %v6814_v2 = vadd.f32 %v6662_v44, %v914_v34  ;;  %v916_v54 = vpop.f32.mrb[21].mxu0  ;;  %v2980_v44 = vrot.slane %v6591_v49, 4  ;;  %v2949_v34 = vsel %vm2828_vm3, %v2942_v28, %v2948_v21  ;;  %v2952_v18 = vrot.slane %v2620_v10, 4 }
 0x178   : > { %4882 = vmatmul.mubr.f32.gmra.mrb[126].mxu0 %v2951_v52  ;;  %v2946_v52 = vrot.slane %v2617_v25, 4  ;;  %v2975_v49 = vsel %vm2828_vm3, %v2968_v7, %v2974_v15 }
 0x179   : > { %v6817_v51 = vpop.f32.mrb[36].mxu1  ;;  %4884 = vmatprep.mubr.f32.mxu0 %v2957_v24  ;;  %v2981_v8 = vsel %vm2828_vm3, %v2974_v15, %v2980_v44  ;;  %v7433_v15 = vrot.slane %v6629_v38, 4 }
 0x17a   : > { %v2027_v31 = vpop.f32.mrb[37].mxu1  ;;  %3306 = vmatmul.mubr.f32.gmra.mrb[142].mxu1 %v2935_v6  ;;  %v2624_v6 = vld [vmem:[#allocation2 + $0x278] sm:$0xff]  ;;  %v2947_v28 = vsel %vm2828_vm3, %v2940_v39, %v2946_v52 }
 0x17b   : > { %v919_v9 = vpop.f32.mrb[22].mxu0  ;;  %3310 = vmatprep.mubr.f32.mxu1 %v2943_v14  ;;  %v2960_v7 = vrot.slane %v2624_v6, 4 }
 0x17c   : > { %v6825_v16 = vadd.f32 %v6657_v61, %v919_v9  ;;  %v921_v24 = vpop.f32.mrb[23].mxu0  ;;  %4885 = vmatmul.mubr.f32.gmra.mrb[128].mxu0 %v2963_v5  ;;  %v2992_v61 = vrot.slane %v6615_v48, 4  ;;  %v2623_v9 = vld [vmem:[#allocation2 + $0x270] sm:$0xff]  ;;  %v2987_v48 = vsel %vm2828_vm3, %v2980_v44, %v2986_v53 }
 0x17d   : > { %v6828_v54 = vpop.f32.mrb[38].mxu1  ;;  %4887 = vmatprep.mubr.f32.mxu0 %v2969_v12  ;;  %v2955_v12 = vsel %vm2828_vm3, %v2948_v21, %v2954_v46  ;;  %v2958_v21 = vrot.slane %v2623_v9, 4 }
 0x17e   : > { %v2032_v14 = vpop.f32.mrb[39].mxu1  ;;  %3311 = vmatmul.mubr.f32.gmra.mrb[144].mxu1 %v2941_v30  ;;  %v2627_v30 = vld [vmem:[#allocation2 + $0x290] sm:$0xff]  ;;  %v2993_v39 = vsel %vm2828_vm3, %v2986_v53, %v2992_v61  ;;  %v2999_v53 = vsel %vm2828_vm3, %v2992_v61, %v7433_v15 }
 0x17f   : > { %v924_v25 = vpop.f32.mrb[24].mxu0  ;;  %3315 = vmatprep.mubr.f32.mxu1 %v2949_v34  ;;  %v2953_v34 = vsel %vm2828_vm3, %v2946_v52, %v2952_v18  ;;  %v2966_v14 = vrot.slane %v2627_v30, 4 }
 0x180   : > { %v6836_v5 = vadd.f32 %v6677_v11, %v924_v25  ;;  %v926_v31 = vpop.f32.mrb[25].mxu0  ;;  %4888 = vmatmul.mubr.f32.gmra.mrb[130].mxu0 %v2975_v49  ;;  %v2961_v49 = vsel %vm2828_vm3, %v2954_v46, %v2960_v7  ;;  %v2630_v25 = vld [vmem:[#allocation2 + $0x2a8] sm:$0xff] }
 0x181   : > { %v6839_v0 = vpop.f32.mrb[40].mxu1  ;;  %4890 = vmatprep.mubr.f32.mxu0 %v2981_v8  ;;  %v2626_v8 = vld [vmem:[#allocation2 + $0x288] sm:$0xff]  ;;  %v2967_v9 = vsel %vm2828_vm3, %v2960_v7, %v2966_v14  ;;  %v2972_v30 = vrot.slane %v2630_v25, 4 }
 0x182   : > { %v2037_v24 = vpop.f32.mrb[41].mxu1  ;;  %3316 = vmatmul.mubr.f32.gmra.mrb[146].mxu1 %v2947_v28  ;;  %v2964_v31 = vrot.slane %v2626_v8, 4  ;;  %v2632_v8 = vld [vmem:[#allocation2 + $0x2b8] sm:$0xff] }
 0x183   : > { %v929_v11 = vpop.f32.mrb[26].mxu0  ;;  %3320 = vmatprep.mubr.f32.mxu1 %v2955_v12 }
 0x184   : > { %v6846_v10 = vadd.f32 %v6674_v36, %v929_v11  ;;  %v931_v6 = vpop.f32.mrb[27].mxu0  ;;  %4891 = vmatmul.mubr.f32.gmra.mrb[132].mxu0 %v2987_v48  ;;  %v2959_v36 = vsel %vm2828_vm3, %v2952_v18, %v2958_v21  ;;  %v2629_v48 = vld [vmem:[#allocation2 + $0x2a0] sm:$0xff] }
 0x185   : > { %v6849_v44 = vpop.f32.mrb[42].mxu1  ;;  %4893 = vmatprep.mubr.f32.mxu0 %v2993_v39  ;;  %v2633_v39 = vld [vmem:[#allocation2 + $0x2c0] sm:$0xff]  ;;  %v2970_v18 = vrot.slane %v2629_v48, 4 }
 0x186   : > { %v2042_v28 = vpop.f32.mrb[43].mxu1  ;;  %3321 = vmatmul.mubr.f32.gmra.mrb[148].mxu1 %v2953_v34  ;;  %v2965_v34 = vsel %vm2828_vm3, %v2958_v21, %v2964_v31  ;;  %v2978_v7 = vrot.slane %v2633_v39, 4 }
 0x187   : > { %v934_v52 = vpop.f32.mrb[28].mxu0  ;;  %3325 = vmatprep.mubr.f32.mxu1 %v2961_v49  ;;  %v2973_v49 = vsel %vm2828_vm3, %v2966_v14, %v2972_v30  ;;  %v2635_v14 = vld [vmem:[#allocation2 + $0x2d0] sm:$0xff] }
 0x188   : > { %v6856_v46 = vadd.f32 %v6687_v27, %v934_v52  ;;  %v936_v12 = vpop.f32.mrb[29].mxu0  ;;  %4894 = vmatmul.mubr.f32.gmra.mrb[134].mxu0 %v2999_v53  ;;  %v2636_v53 = vld [vmem:[#allocation2 + $0x2d8] sm:$0xff] }
 0x189   : > { %v6859_v24 = vpop.f32.mrb[44].mxu1  ;;  %v2976_v12 = vrot.slane %v2632_v8, 4  ;;  %v2984_v48 = vrot.slane %v2636_v53, 4 }
 0x18a   : > { %v2047_v61 = vpop.f32.mrb[45].mxu1  ;;  %3326 = vmatmul.mubr.f32.gmra.mrb[150].mxu1 %v2959_v36  ;;  %v2971_v36 = vsel %vm2828_vm3, %v2964_v31, %v2970_v18  ;;  %v3870_v31 = vld [vmem:[%s7423_s3 + $0x8] sm:$0xff] }
 0x18b   : > { %v939_v11 = vpop.f32.mrb[30].mxu0  ;;  %3330 = vmatprep.mubr.f32.mxu1 %v2967_v9  ;;  %v2979_v9 = vsel %vm2828_vm3, %v2972_v30, %v2978_v7  ;;  %v2639_v61 = vld [vmem:[#allocation2 + $0x2f0] sm:$0xff]  ;;  %v2982_v30 = vrot.slane %v2635_v14, 4 }
 0x18c   : > { %v6863_v6 = vadd.f32 %v6684_v32, %v939_v11  ;;  %v941_v27 = vpop.f32.mrb[31].mxu0 }
 0x18d   : > { %v6866_v25 = vpop.f32.mrb[46].mxu1  ;;  %v2977_v27 = vsel %vm2828_vm3, %v2970_v18, %v2976_v12  ;;  %v3871_v18 = vld [vmem:[%s7423_s3 + $0x10] sm:$0xff] }
 0x18e   : > { %v2052_v28 = vpop.f32.mrb[47].mxu1  ;;  %3331 = vmatmul.mubr.f32.gmra.mrb[152].mxu1 %v2965_v34  ;;  %v3869_v34 = vld [vmem:[%s7423_s3] sm:$0xff] }
 0x18f   : > { %v944_v52 = vpop.f32.mrb[32].mxu0  ;;  %3335 = vmatprep.mubr.f32.mxu1 %v2973_v49  ;;  %v5234_v49 = vpack.c.bf16 %v3870_v31, %v3869_v34  ;;  %v2985_v28 = vsel %vm2828_vm3, %v2978_v7, %v2984_v48  ;;  %v2983_v7 = vsel %vm2828_vm3, %v2976_v12, %v2982_v30  ;;  %v3873_v12 = vld [vmem:[%s7423_s3 + $0x20] sm:$0xff] }
 0x190   : > { %v6870_v21 = vadd.f32 %v6701_v22, %v944_v52  ;;  %v946_v32 = vpop.f32.mrb[33].mxu0  ;;  %v2990_v52 = vrot.slane %v2639_v61, 4 }
 0x191   : > { %v6873_v39 = vpop.f32.mrb[48].mxu1  ;;  %5235 = vmatprep.subr.bf16.mxu0 %v5234_v49 }
 0x192   : > { %7453 = vst [vmem:[#allocation8_spill] sm:$0xff] %v6870_v21  ;;  %v2057_v11 = vpop.f32.mrb[49].mxu1  ;;  %3336 = vmatmul.mubr.f32.gmra.mrb[154].mxu1 %v2971_v36  ;;  %v2638_v36 = vld [vmem:[#allocation2 + $0x2e8] sm:$0xff]  ;;  %5237 = vmatpush3.bf16.msra.mxu0 %v5234_v49  ;;  %v2991_v31 = vsel %vm2828_vm3, %v2984_v48, %v2990_v52 }
 0x193   : > { %v949_v22 = vpop.f32.mrb[34].mxu0  ;;  %3340 = vmatprep.mubr.f32.mxu1 %v2979_v9  ;;  %v2642_v11 = vld [vmem:[#allocation2 + $0x308] sm:$0xff]  ;;  %v2988_v14 = vrot.slane %v2638_v36, 4 }
 0x194   : > { %v6883_v8 = vadd.f32 %v6699_v17, %v949_v22  ;;  %v951_v53 = vpop.f32.mrb[35].mxu0  ;;  %v3872_v17 = vld [vmem:[%s7423_s3 + $0x18] sm:$0xff]  ;;  %v2996_v22 = vrot.slane %v2642_v11, 4 }
 0x195   : > { %v6886_v32 = vpop.f32.mrb[50].mxu1  ;;  %v5238_v61 = vpack.c.bf16 %v3872_v17, %v3871_v18  ;;  %v2645_v53 = vld [vmem:[#allocation2 + $0x320] sm:$0xff]  ;;  %v2989_v48 = vsel %vm2828_vm3, %v2982_v30, %v2988_v14  ;;  %v3875_v30 = vld [vmem:[%s7423_s3 + $0x30] sm:$0xff] }
 0x196   : > { %v2062_v15 = vpop.f32.mrb[51].mxu1  ;;  %3341 = vmatmul.mubr.f32.gmra.mrb[156].mxu1 %v2977_v27  ;;  %v2641_v27 = vld [vmem:[#allocation2 + $0x300] sm:$0xff]  ;;  %v2997_v17 = vsel %vm2828_vm3, %v2990_v52, %v2996_v22 }
 0x197   : > { %v954_v9 = vpop.f32.mrb[36].mxu0  ;;  %3345 = vmatprep.mubr.f32.mxu1 %v2985_v28  ;;  %5239 = vmatprep.subr.bf16.mxu0 %v5238_v61  ;;  %v2994_v36 = vrot.slane %v2641_v27, 4 }
 0x198   : > { %v6896_v34 = vadd.f32 %v6713_v35, %v954_v9  ;;  %v956_v15 = vpop.f32.mrb[37].mxu0  ;;  %5241 = vmatpush3.bf16.msra.mxu0 %v5238_v61  ;;  %v3874_v35 = vld [vmem:[%s7423_s3 + $0x28] sm:$0xff]  ;;  %v3002_v9 = vrot.slane %v2645_v53, 4 }
 0x199   : > { %v6899_v49 = vpop.f32.mrb[52].mxu1  ;;  %v5242_v11 = vpack.c.bf16 %v3874_v35, %v3873_v12  ;;  %v2648_v15 = vld [vmem:[#allocation2 + $0x338] sm:$0xff]  ;;  %v2995_v52 = vsel %vm2828_vm3, %v2988_v14, %v2994_v36  ;;  %v3877_v14 = vld [vmem:[%s7423_s3 + $0x40] sm:$0xff] }
 0x19a   : > { %7454 = vst [vmem:[#allocation9_spill] sm:$0xff] %v6896_v34  ;;  %v2067_v21 = vpop.f32.mrb[53].mxu1  ;;  %3346 = vmatmul.mubr.f32.gmra.mrb[158].mxu1 %v2983_v7  ;;  %v2644_v7 = vld [vmem:[#allocation2 + $0x318] sm:$0xff]  ;;  %v3003_v35 = vsel %vm2828_vm3, %v2996_v22, %v3002_v9 }
 0x19b   : > { %v959_v28 = vpop.f32.mrb[38].mxu0  ;;  %3350 = vmatprep.mubr.f32.mxu1 %v2991_v31  ;;  %5243 = vmatprep.subr.bf16.mxu0 %v5242_v11  ;;  %v3000_v27 = vrot.slane %v2644_v7, 4 }
 0x19c   : > { %v6909_v18 = vadd.f32 %v6710_v43, %v959_v28  ;;  %v961_v21 = vpop.f32.mrb[39].mxu0  ;;  %5245 = vmatpush3.bf16.msra.mxu0 %v5242_v11  ;;  %v3876_v43 = vld [vmem:[%s7423_s3 + $0x38] sm:$0xff]  ;;  %v3008_v28 = vrot.slane %v2648_v15, 4 }
 0x19d   : > { %v6912_v61 = vpop.f32.mrb[54].mxu1  ;;  %v5246_v53 = vpack.c.bf16 %v3876_v43, %v3875_v30  ;;  %v2651_v21 = vld [vmem:[#allocation2 + $0x350] sm:$0xff]  ;;  %v3001_v22 = vsel %vm2828_vm3, %v2994_v36, %v3000_v27 }
 0x19e   : > { %7455 = vst [vmem:[#allocation10_spill] sm:$0xff] %v6909_v18  ;;  %v2072_v34 = vpop.f32.mrb[55].mxu1  ;;  %3351 = vmatmul.mubr.f32.gmra.mrb[160].mxu1 %v2989_v48  ;;  %v2647_v48 = vld [vmem:[#allocation2 + $0x330] sm:$0xff]  ;;  %v3009_v43 = vsel %vm2828_vm3, %v3002_v9, %v3008_v28 }
 0x19f   : > { %v964_v31 = vpop.f32.mrb[40].mxu0  ;;  %3355 = vmatprep.mubr.f32.mxu1 %v2997_v17  ;;  %5247 = vmatprep.subr.bf16.mxu0 %v5246_v53  ;;  %v3006_v7 = vrot.slane %v2647_v48, 4  ;;  %v3879_v36 = vld [vmem:[%s7423_s3 + $0x50] sm:$0xff] }
 0x1a0   : > { %v6922_v12 = vadd.f32 %v6724_v26, %v964_v31  ;;  %v966_v34 = vpop.f32.mrb[41].mxu0  ;;  %5249 = vmatpush3.bf16.msra.mxu0 %v5246_v53  ;;  %v3878_v26 = vld [vmem:[%s7423_s3 + $0x48] sm:$0xff]  ;;  %v3014_v31 = vrot.slane %v2651_v21, 4 }
 0x1a1   : > { %v6925_v11 = vpop.f32.mrb[56].mxu1  ;;  %v5250_v15 = vpack.c.bf16 %v3878_v26, %v3877_v14  ;;  %v2654_v34 = vld [vmem:[#allocation2 + $0x368] sm:$0xff]  ;;  %v3007_v9 = vsel %vm2828_vm3, %v3000_v27, %v3006_v7  ;;  %v3881_v27 = vld [vmem:[%s7423_s3 + $0x60] sm:$0xff] }
 0x1a2   : > { %7456 = vst [vmem:[#allocation11_spill] sm:$0xff] %v6922_v12  ;;  %v2077_v18 = vpop.f32.mrb[57].mxu1  ;;  %3356 = vmatmul.mubr.f32.gmra.mrb[162].mxu1 %v2995_v52  ;;  %v2650_v52 = vld [vmem:[#allocation2 + $0x348] sm:$0xff]  ;;  %v3015_v26 = vsel %vm2828_vm3, %v3008_v28, %v3014_v31 }
 0x1a3   : > { %v969_v17 = vpop.f32.mrb[42].mxu0  ;;  %3360 = vmatprep.mubr.f32.mxu1 %v3003_v35  ;;  %5251 = vmatprep.subr.bf16.mxu0 %v5250_v15  ;;  %v3012_v48 = vrot.slane %v2650_v52, 4 }
 0x1a4   : > { %v6935_v30 = vadd.f32 %v6721_v23, %v969_v17  ;;  %v971_v18 = vpop.f32.mrb[43].mxu0  ;;  %5253 = vmatpush3.bf16.msra.mxu0 %v5250_v15  ;;  %v3880_v23 = vld [vmem:[%s7423_s3 + $0x58] sm:$0xff]  ;;  %v3020_v17 = vrot.slane %v2654_v34, 4 }
 0x1a5   : > { %v6938_v53 = vpop.f32.mrb[58].mxu1  ;;  %v5254_v21 = vpack.c.bf16 %v3880_v23, %v3879_v36  ;;  %v2657_v18 = vld [vmem:[#allocation2 + $0x380] sm:$0xff]  ;;  %v3013_v28 = vsel %vm2828_vm3, %v3006_v7, %v3012_v48  ;;  %v3883_v7 = vld [vmem:[%s7423_s3 + $0x70] sm:$0xff] }
 0x1a6   : > { %7457 = vst [vmem:[#allocation12_spill] sm:$0xff] %v6935_v30  ;;  %v2082_v12 = vpop.f32.mrb[59].mxu1  ;;  %3361 = vmatmul.mubr.f32.gmra.mrb[164].mxu1 %v3001_v22  ;;  %v2653_v22 = vld [vmem:[#allocation2 + $0x360] sm:$0xff]  ;;  %v3021_v23 = vsel %vm2828_vm3, %v3014_v31, %v3020_v17 }
 0x1a7   : > { %v974_v35 = vpop.f32.mrb[44].mxu0  ;;  %3365 = vmatprep.mubr.f32.mxu1 %v3009_v43  ;;  %5255 = vmatprep.subr.bf16.mxu0 %v5254_v21  ;;  %v3018_v52 = vrot.slane %v2653_v22, 4 }
 0x1a8   : > { %v6948_v14 = vadd.f32 %v6735_v50, %v974_v35  ;;  %v976_v12 = vpop.f32.mrb[45].mxu0  ;;  %5257 = vmatpush3.bf16.msra.mxu0 %v5254_v21  ;;  %v3882_v50 = vld [vmem:[%s7423_s3 + $0x68] sm:$0xff]  ;;  %v3026_v35 = vrot.slane %v2657_v18, 4 }
 0x1a9   : > { %v6951_v15 = vpop.f32.mrb[60].mxu1  ;;  %v5258_v34 = vpack.c.bf16 %v3882_v50, %v3881_v27  ;;  %v2660_v12 = vld [vmem:[#allocation2 + $0x398] sm:$0xff]  ;;  %v3019_v31 = vsel %vm2828_vm3, %v3012_v48, %v3018_v52 }
 0x1aa   : > { %7458 = vst [vmem:[#allocation13_spill] sm:$0xff] %v6948_v14  ;;  %v2087_v30 = vpop.f32.mrb[61].mxu1  ;;  %3366 = vmatmul.mubr.f32.gmra.mrb[166].mxu1 %v3007_v9  ;;  %v2656_v9 = vld [vmem:[#allocation2 + $0x378] sm:$0xff]  ;;  %v3027_v50 = vsel %vm2828_vm3, %v3020_v17, %v3026_v35 }
 0x1ab   : > { %v979_v43 = vpop.f32.mrb[46].mxu0  ;;  %3370 = vmatprep.mubr.f32.mxu1 %v3015_v26  ;;  %5259 = vmatprep.subr.bf16.mxu0 %v5258_v34  ;;  %v3024_v22 = vrot.slane %v2656_v9, 4 }
 0x1ac   : > { %v6961_v36 = vadd.f32 %v6732_v63, %v979_v43  ;;  %v981_v30 = vpop.f32.mrb[47].mxu0  ;;  %5261 = vmatpush3.bf16.msra.mxu0 %v5258_v34  ;;  %v3884_v63 = vld [vmem:[%s7423_s3 + $0x78] sm:$0xff]  ;;  %v3032_v43 = vrot.slane %v2660_v12, 4 }
 0x1ad   : > { %v6964_v21 = vpop.f32.mrb[62].mxu1  ;;  %v5262_v18 = vpack.c.bf16 %v3884_v63, %v3883_v7  ;;  %v2663_v30 = vld [vmem:[#allocation2 + $0x3b0] sm:$0xff]  ;;  %v3025_v48 = vsel %vm2828_vm3, %v3018_v52, %v3024_v22  ;;  %v2662_v63 = vld [vmem:[#allocation2 + $0x3a8] sm:$0xff] }
 0x1ae   : > { %7459 = vst [vmem:[#allocation14_spill] sm:$0xff] %v6961_v36  ;;  %v2092_v14 = vpop.f32.mrb[63].mxu1  ;;  %3371 = vmatmul.mubr.f32.gmra.mrb[168].mxu1 %v3013_v28  ;;  %v2659_v28 = vld [vmem:[#allocation2 + $0x390] sm:$0xff]  ;;  %v3033_v17 = vsel %vm2828_vm3, %v3026_v35, %v3032_v43  ;;  %v3038_v12 = vrot.slane %v2663_v30, 4  ;;  %v2665_v35 = vld [vmem:[#allocation2 + $0x3c0] sm:$0xf] }
 0x1af   : > { %v984_v26 = vpop.f32.mrb[48].mxu0  ;;  %3375 = vmatprep.mubr.f32.mxu1 %v3021_v23  ;;  %5263 = vmatprep.subr.bf16.mxu0 %v5262_v18  ;;  %v3030_v9 = vrot.slane %v2659_v28, 4 }
 0x1b0   : > { %v6974_v27 = vadd.f32 %v6746_v13, %v984_v26  ;;  %v986_v14 = vpop.f32.mrb[49].mxu0  ;;  %5265 = vmatpush3.bf16.msra.mxu0 %v5262_v18  ;;  %v3036_v18 = vrot.slane %v2662_v63, 4 }
 0x1b1   : > { %v6977_v34 = vpop.f32.mrb[64].mxu1  ;;  %v2666_v14 = vld [vmem:[#allocation2 + $0x3c8] sm:$0xf] }
 0x1b2   : > { %7460 = vst [vmem:[#allocation15_spill] sm:$0xff] %v6974_v27  ;;  %v2097_v36 = vpop.f32.mrb[65].mxu1  ;;  %3376 = vmatmul.mubr.f32.gmra.mrb[170].mxu1 %v3019_v31  ;;  %v3031_v31 = vsel %vm2828_vm3, %v3024_v22, %v3030_v9  ;;  %v3044_v28 = vrot.slane %v2666_v14, 4 }
 0x1b3   : > { %v989_v23 = vpop.f32.mrb[50].mxu0  ;;  %3380 = vmatprep.mubr.f32.mxu1 %v3027_v50  ;;  %v3039_v50 = vsel %vm2828_vm3, %v3032_v43, %v3038_v12  ;;  %v2649_v43 = vld [vmem:[#allocation2 + $0x340] sm:$0xff] }
 0x1b4   : > { %v6981_v13 = vadd.f32 %v6743_v19, %v989_v23  ;;  %v991_v7 = vpop.f32.mrb[51].mxu0  ;;  %v2646_v23 = vld [vmem:[#allocation2 + $0x328] sm:$0xff]  ;;  %v3045_v63 = vsel %vm2828_vm3, %v3038_v12, %v3044_v28 }
 0x1b5   : > { %v6984_v26 = vpop.f32.mrb[66].mxu1 }
 0x1b6   : > { %v2102_v27 = vpop.f32.mrb[67].mxu1  ;;  %3381 = vmatmul.mubr.f32.gmra.mrb[172].mxu1 %v3025_v48  ;;  %v3037_v48 = vsel %vm2828_vm3, %v3030_v9, %v3036_v18 }
 0x1b7   : > { %v994_v36 = vpop.f32.mrb[52].mxu0  ;;  %3385 = vmatprep.mubr.f32.mxu1 %v3033_v17  ;;  %v3042_v17 = vrot.slane %v2665_v35, 4  ;;  %v7463_v35 = vrot.slane %v6629_v38, 4 }
 0x1b8   : > { %v6988_v52 = vadd.f32 %v6757_v57, %v994_v36  ;;  %v996_v19 = vpop.f32.mrb[53].mxu0  ;;  %v3004_v36 = vrot.slane %v2646_v23, 4  ;;  %v2655_v23 = vld [vmem:[#allocation2 + $0x370] sm:$0xff] }
 0x1b9   : > { %v6991_v30 = vpop.f32.mrb[68].mxu1  ;;  %v2652_v19 = vld [vmem:[#allocation2 + $0x358] sm:$0xff] }
 0x1ba   : > { %7461 = vst [vmem:[#allocation16_spill] sm:$0xff] %v6988_v52  ;;  %v2107_v7 = vpop.f32.mrb[69].mxu1  ;;  %3386 = vmatmul.mubr.f32.gmra.mrb[174].mxu1 %v3031_v31  ;;  %v3043_v31 = vsel %vm2828_vm3, %v3036_v18, %v3042_v17  ;;  %v3005_v12 = vsel %vm2828_vm3, %v7463_v35, %v3004_v36  ;;  %v3016_v28 = vrot.slane %v2652_v19, 4  ;;  %v3022_v17 = vrot.slane %v2655_v23, 4 }
 0x1bb   : > { %v999_v27 = vpop.f32.mrb[54].mxu0  ;;  %3390 = vmatprep.mubr.f32.mxu1 %v3039_v50  ;;  %v3010_v50 = vrot.slane %v2649_v43, 4 }
 0x1bc   : > { %v6995_v22 = vadd.f32 %v6754_v4, %v999_v27  ;;  %v1001_v57 = vpop.f32.mrb[55].mxu0 }
 0x1bd   : > { %v6998_v14 = vpop.f32.mrb[70].mxu1  ;;  %v2658_v57 = vld [vmem:[#allocation2 + $0x388] sm:$0xff]  ;;  %v3011_v18 = vsel %vm2828_vm3, %v3004_v36, %v3010_v50  ;;  %v3017_v38 = vsel %vm2828_vm3, %v3010_v50, %v3016_v28  ;;  %v2667_v50 = vld [vmem:[#allocation2 + $0x3d0] sm:$0xf] }
 0x1be   : > { %v2112_v52 = vpop.f32.mrb[71].mxu1  ;;  %3391 = vmatmul.mubr.f32.gmra.mrb[176].mxu1 %v3037_v48  ;;  %v3028_v43 = vrot.slane %v2658_v57, 4 }
 0x1bf   : > { %v1004_v7 = vpop.f32.mrb[56].mxu0  ;;  %3395 = vmatprep.mubr.f32.mxu1 %v3045_v63 }
 0x1c0   : > { %v7002_v9 = vadd.f32 %v6768_v37, %v1004_v7  ;;  %v1006_v4 = vpop.f32.mrb[57].mxu0  ;;  %v2661_v7 = vld [vmem:[#allocation2 + $0x3a0] sm:$0xff]  ;;  %v3029_v23 = vsel %vm2828_vm3, %v3022_v17, %v3028_v43 }
 0x1c1   : > { %v7007_v27 = vpop.f32.mrb[72].mxu1  ;;  %v2664_v4 = vld [vmem:[#allocation2 + $0x3b8] sm:$0xff] }
 0x1c2   : > { %7462 = vst [vmem:[#allocation17_spill] sm:$0xff] %v7002_v9  ;;  %v2117_v52 = vpop.f32.mrb[73].mxu1  ;;  %3396 = vmatmul.mubr.f32.gmra.mrb[178].mxu1 %v3043_v31  ;;  %v3023_v31 = vsel %vm2828_vm3, %v3016_v28, %v3022_v17 }
 0x1c3   : > { %v1009_v48 = vpop.f32.mrb[58].mxu0  ;;  %4896 = vmatprep.mubr.f32.mxu1 %v3005_v12  ;;  %v3034_v12 = vrot.slane %v2661_v7, 4 }
 0x1c4   : > { %v7011_v37 = vadd.f32 %v6765_v60, %v1009_v48  ;;  %v1011_v63 = vpop.f32.mrb[59].mxu0  ;;  %v3040_v48 = vrot.slane %v2664_v4, 4 }
 0x1c5   : > { %v7014_v19 = vpop.f32.mrb[74].mxu1 }
 0x1c6   : > { %v2122_v35 = vpop.f32.mrb[75].mxu1  ;;  %4897 = vmatmul.mubr.f32.vlgmr.msra.gmra.mrb[180].mxu1 %v3011_v18  ;;  %v3035_v18 = vsel %vm2828_vm3, %v3028_v43, %v3034_v12 }
 0x1c7   : > { %v1014_v52 = vpop.f32.mrb[60].mxu0  ;;  %4899 = vmatprep.mubr.f32.mxu1 %v3017_v38  ;;  %v3046_v38 = vrot.slane %v2667_v50, 4 }
 0x1c8   : > { %v7018_v36 = vadd.f32 %v6779_v59, %v1014_v52  ;;  %v1016_v60 = vpop.f32.mrb[61].mxu0  ;;  %v3041_v59 = vsel %vm2828_vm3, %v3034_v12, %v3040_v48 }
 0x1c9   : > { %v7021_v57 = vpop.f32.mrb[76].mxu1  ;;  %v3047_v52 = vsel %vm2828_vm3, %v3040_v48, %v3046_v38 }
 0x1ca   : > { %v2127_v63 = vpop.f32.mrb[77].mxu1  ;;  %4900 = vmatmul.mubr.f32.gmra.mrb[182].mxu1 %v3023_v31 }
 0x1cb   : > { %v1019_v9 = vpop.f32.mrb[62].mxu0  ;;  %4902 = vmatprep.mubr.f32.mxu1 %v3029_v23 }
 0x1cc   : > { %v7025_v28 = vadd.f32 %v6776_v42, %v1019_v9  ;;  %v1021_v7 = vpop.f32.mrb[63].mxu0 }
 0x1cd   : > { %v7028_v35 = vpop.f32.mrb[78].mxu1 }
 0x1ce   : > { %v2132_v17 = vpop.f32.mrb[79].mxu1  ;;  %4903 = vmatmul.mubr.f32.gmra.mrb[184].mxu1 %v3035_v18 }
 0x1cf   : > { %v1024_v4 = vpop.f32.mrb[64].mxu0  ;;  %4905 = vmatprep.mubr.f32.mxu1 %v3041_v59 }
 0x1d0   : > { %v7032_v31 = vadd.f32 %v6792_v3, %v1024_v4  ;;  %v1026_v60 = vpop.f32.mrb[65].mxu0 }
 0x1d1   : > { %v7034_v43 = vpop.f32.mrb[80].mxu1 }
 0x1d2   : > { %v2137_v23 = vpop.f32.mrb[81].mxu1  ;;  %4906 = vmatmul.mubr.f32.gmra.mrb[186].mxu1 %v3047_v52 }
 0x1d3   : > { %v1029_v42 = vpop.f32.mrb[66].mxu0 }
 0x1d4   : > { %v7037_v9 = vadd.f32 %v6788_v20, %v1029_v42  ;;  %v1031_v12 = vpop.f32.mrb[67].mxu0 }
 0x1d5   : > { %v7039_v50 = vpop.f32.mrb[82].mxu1 }
 0x1d6   : > { %v2142_v63 = vpop.f32.mrb[83].mxu1 }
 0x1d7   : > { %v1034_v18 = vpop.f32.mrb[68].mxu0 }
 0x1d8   : > { %v7042_v7 = vadd.f32 %v6808_v58, %v1034_v18  ;;  %v1036_v48 = vpop.f32.mrb[69].mxu0 }
 0x1d9   : > { %v7044_v3 = vpop.f32.mrb[84].mxu1 }
 0x1da   : > { %v2147_v38 = vpop.f32.mrb[85].mxu1 }
 0x1db   : > { %v1039_v59 = vpop.f32.mrb[70].mxu0 }
 0x1dc   : > { %v7047_v17 = vadd.f32 %v6804_v55, %v1039_v59  ;;  %v1041_v4 = vpop.f32.mrb[71].mxu0 }
 0x1dd   : > { %v7049_v52 = vpop.f32.mrb[86].mxu1 }
 0x1de   : > { %v2152_v20 = vpop.f32.mrb[87].mxu1 }
 0x1df   : > { %v4770_v60 = vpop.f32.mrb[72].mxu0 }
 0x1e0   : > { %v2276_v23 = vadd.f32 %v4770_v60, %v6828_v54  ;;  %v2270_v42 = vpop.f32.mrb[73].mxu0 }
 0x1e1   : > { %v7052_v12 = vpop.f32.mrb[88].mxu1  ;;  %v2271_v58 = vadd.f32 %v2270_v42, %v6817_v51 }
 0x1e2   : > { %v7056_v63 = vadd.f32 %v2276_v23, %v6706_v1  ;;  %v2157_v18 = vpop.f32.mrb[89].mxu1 }
 0x1e3   : > { %v7059_v48 = vadd.f32 %v2271_v58, %v6695_v45  ;;  %v4773_v55 = vpop.f32.mrb[74].mxu0 }
 0x1e4   : > { %v2286_v38 = vadd.f32 %v4773_v55, %v6849_v44  ;;  %v2280_v59 = vpop.f32.mrb[75].mxu0 }
 0x1e5   : > { %v7062_v4 = vpop.f32.mrb[90].mxu1  ;;  %v2281_v54 = vadd.f32 %v2280_v59, %v6839_v0 }
 0x1e6   : > { %v7066_v20 = vadd.f32 %v2286_v38, %v6728_v56  ;;  %v2162_v60 = vpop.f32.mrb[91].mxu1 }
 0x1e7   : > { %v7069_v51 = vadd.f32 %v2281_v54, %v6717_v40  ;;  %v4776_v1 = vpop.f32.mrb[76].mxu0 }
 0x1e8   : > { %v2296_v23 = vadd.f32 %v4776_v1, %v6866_v25  ;;  %v2290_v45 = vpop.f32.mrb[77].mxu0 }
 0x1e9   : > { %v7072_v42 = vpop.f32.mrb[92].mxu1  ;;  %v2291_v44 = vadd.f32 %v2290_v45, %v6859_v24 }
 0x1ea   : > { %v7076_v58 = vadd.f32 %v2296_v23, %v6750_v29  ;;  %v2167_v18 = vpop.f32.mrb[93].mxu1 }
 0x1eb   : > { %v7079_v0 = vadd.f32 %v2291_v44, %v6739_v33  ;;  %v4779_v56 = vpop.f32.mrb[78].mxu0 }
 0x1ec   : > { %v2306_v55 = vadd.f32 %v4779_v56, %v6886_v32  ;;  %v2300_v40 = vpop.f32.mrb[79].mxu0 }
 0x1ed   : > { %v7082_v38 = vpop.f32.mrb[94].mxu1  ;;  %v2301_v25 = vadd.f32 %v2300_v40, %v6873_v39  ;;  %v7464_v39 = vld [vmem:[#allocation7_spill] sm:$0xff] }
 0x1ee   : > { %v7086_v59 = vadd.f32 %v2306_v55, %v6772_v62  ;;  %v2172_v54 = vpop.f32.mrb[95].mxu1 }
 0x1ef   : > { %v7089_v24 = vadd.f32 %v2301_v25, %v6761_v47  ;;  %v4782_v29 = vpop.f32.mrb[80].mxu0 }
 0x1f0   : > { %v2316_v60 = vadd.f32 %v4782_v29, %v6912_v61  ;;  %v2310_v33 = vpop.f32.mrb[81].mxu0 }
 0x1f1   : > { %v7092_v1 = vpop.f32.mrb[96].mxu1  ;;  %v2311_v32 = vadd.f32 %v2310_v33, %v6899_v49 }
 0x1f2   : > { %v7096_v23 = vadd.f32 %v2316_v60, %v6800_v41  ;;  %v2177_v45 = vpop.f32.mrb[97].mxu1 }
 0x1f3   : > { %v7099_v44 = vadd.f32 %v2311_v32, %v7464_v39  ;;  %v4785_v62 = vpop.f32.mrb[82].mxu0 }
 0x1f4   : > { %v2326_v18 = vadd.f32 %v4785_v62, %v6938_v53  ;;  %v2320_v47 = vpop.f32.mrb[83].mxu0 }
 0x1f5   : > { %v7102_v56 = vpop.f32.mrb[98].mxu1  ;;  %v2321_v61 = vadd.f32 %v2320_v47, %v6925_v11 }
 0x1f6   : > { %v7106_v55 = vadd.f32 %v2326_v18, %v6825_v16  ;;  %v2182_v40 = vpop.f32.mrb[99].mxu1 }
 0x1f7   : > { %v7109_v49 = vadd.f32 %v2321_v61, %v6814_v2  ;;  %v4788_v41 = vpop.f32.mrb[84].mxu0 }
 0x1f8   : > { %v2336_v25 = vadd.f32 %v4788_v41, %v6964_v21  ;;  %v2330_v54 = vpop.f32.mrb[85].mxu0 }
 0x1f9   : > { %v7112_v29 = vpop.f32.mrb[100].mxu1  ;;  %v2331_v53 = vadd.f32 %v2330_v54, %v6951_v15 }
 0x1fa   : > { %v7116_v60 = vadd.f32 %v2336_v25, %v6846_v10  ;;  %v2187_v33 = vpop.f32.mrb[101].mxu1 }
 0x1fb   : > { %v7119_v11 = vadd.f32 %v2331_v53, %v6836_v5  ;;  %v4791_v16 = vpop.f32.mrb[86].mxu0 }
 0x1fc   : > { %v2346_v32 = vadd.f32 %v4791_v16, %v6984_v26  ;;  %v2340_v2 = vpop.f32.mrb[87].mxu0 }
 0x1fd   : > { %v7122_v45 = vpop.f32.mrb[102].mxu1  ;;  %v2341_v21 = vadd.f32 %v2340_v2, %v6977_v34  ;;  %v7465_v34 = vld [vmem:[#allocation8_spill] sm:$0xff] }
 0x1fe   : > { %v7126_v39 = vadd.f32 %v2346_v32, %v6863_v6  ;;  %v2192_v62 = vpop.f32.mrb[103].mxu1  ;;  %v7467_v32 = vld [vmem:[#allocation9_spill] sm:$0xff] }
 0x1ff   : > { %v7129_v15 = vadd.f32 %v2341_v21, %v6856_v46  ;;  %v4794_v10 = vpop.f32.mrb[88].mxu0 }
 0x200   : > { %v2356_v18 = vadd.f32 %v4794_v10, %v6998_v14  ;;  %v2350_v5 = vpop.f32.mrb[89].mxu0  ;;  %v7466_v14 = vld [vmem:[#allocation10_spill] sm:$0xff] }
 0x201   : > { %v7132_v47 = vpop.f32.mrb[104].mxu1  ;;  %v2351_v26 = vadd.f32 %v2350_v5, %v6991_v30 }
 0x202   : > { %v7136_v61 = vadd.f32 %v2356_v18, %v6883_v8  ;;  %v2197_v40 = vpop.f32.mrb[105].mxu1 }
 0x203   : > { %v7139_v41 = vadd.f32 %v2351_v26, %v7465_v34  ;;  %v4797_v6 = vpop.f32.mrb[90].mxu0 }
 0x204   : > { %v2366_v25 = vadd.f32 %v4797_v6, %v7014_v19  ;;  %v2360_v46 = vpop.f32.mrb[91].mxu0  ;;  %v7468_v19 = vld [vmem:[#allocation12_spill] sm:$0xff] }
 0x205   : > { %v2200_v54 = vpop.f32.mrb[106].mxu1  ;;  %v2361_v53 = vadd.f32 %v2360_v46, %v7007_v27  ;;  %v7469_v27 = vld [vmem:[#allocation11_spill] sm:$0xff] }
 0x206   : > { %v7144_v33 = vadd.f32 %v2366_v25, %v7466_v14  ;;  %v2202_v16 = vpop.f32.mrb[107].mxu1  ;;  %v7471_v14 = vld [vmem:[#allocation13_spill] sm:$0xff] }
 0x207   : > { %v7147_v30 = vadd.f32 %v2361_v53, %v7467_v32  ;;  %v4800_v8 = vpop.f32.mrb[92].mxu0 }
 0x208   : > { %v2376_v2 = vadd.f32 %v4800_v8, %v7028_v35  ;;  %v2370_v21 = vpop.f32.mrb[93].mxu0  ;;  %v7470_v35 = vld [vmem:[#allocation14_spill] sm:$0xff] }
 0x209   : > { %v2371_v62 = vadd.f32 %v2370_v21, %v7021_v57  ;;  %v7151_v10 = vpop.f32.mrb[108].mxu1 }
 0x20a   : > { %v7154_v18 = vadd.f32 %v2376_v2, %v7468_v19  ;;  %v3224_v5 = vpop.f32.mrb[109].mxu1 }
 0x20b   : > { %v7157_v26 = vadd.f32 %v2371_v62, %v7469_v27  ;;  %v4803_v40 = vpop.f32.mrb[94].mxu0 }
 0x20c   : > { %v2386_v34 = vadd.f32 %v4803_v40, %v7039_v50  ;;  %v2380_v6 = vpop.f32.mrb[95].mxu0 }
 0x20d   : > { %v2381_v25 = vadd.f32 %v2380_v6, %v7034_v43  ;;  %v3227_v46 = vpop.f32.mrb[110].mxu1  ;;  %v7472_v43 = vld [vmem:[#allocation15_spill] sm:$0xff] }
 0x20e   : > { %v7162_v53 = vadd.f32 %v2386_v34, %v7470_v35  ;;  %v3229_v57 = vpop.f32.mrb[111].mxu1 }
 0x20f   : > { %v7165_v16 = vadd.f32 %v2381_v25, %v7471_v14  ;;  %v4806_v32 = vpop.f32.mrb[96].mxu0 }
 0x210   : > { %v2396_v8 = vadd.f32 %v4806_v32, %v7049_v52  ;;  %v2390_v2 = vpop.f32.mrb[97].mxu0 }
 0x211   : > { %v2391_v21 = vadd.f32 %v2390_v2, %v7044_v3  ;;  %v3232_v62 = vpop.f32.mrb[112].mxu1  ;;  %v7473_v3 = vld [vmem:[#allocation16_spill] sm:$0xff] }
 0x212   : > { %v7170_v50 = vadd.f32 %v2396_v8, %v6981_v13  ;;  %v3234_v19 = vpop.f32.mrb[113].mxu1 }
 0x213   : > { %v7173_v5 = vadd.f32 %v2391_v21, %v7472_v43  ;;  %v4809_v27 = vpop.f32.mrb[98].mxu0 }
 0x214   : > { %v2406_v40 = vadd.f32 %v4809_v27, %v7062_v4  ;;  %v2400_v34 = vpop.f32.mrb[99].mxu0 }
 0x215   : > { %v2401_v6 = vadd.f32 %v2400_v34, %v7052_v12  ;;  %v3237_v25 = vpop.f32.mrb[114].mxu1  ;;  %v7474_v12 = vld [vmem:[#allocation17_spill] sm:$0xff] }
 0x216   : > { %v7178_v52 = vadd.f32 %v2406_v40, %v6995_v22  ;;  %v3239_v35 = vpop.f32.mrb[115].mxu1 }
 0x217   : > { %v7181_v57 = vadd.f32 %v2401_v6, %v7473_v3  ;;  %v4812_v13 = vpop.f32.mrb[100].mxu0 }
 0x218   : > { %v2416_v14 = vadd.f32 %v4812_v13, %v7082_v38  ;;  %v2410_v32 = vpop.f32.mrb[101].mxu0 }
 0x219   : > { %v2411_v8 = vadd.f32 %v2410_v32, %v7072_v42  ;;  %v3242_v2 = vpop.f32.mrb[116].mxu1 }
 0x21a   : > { %v7186_v4 = vadd.f32 %v2416_v14, %v7011_v37  ;;  %v3244_v21 = vpop.f32.mrb[117].mxu1 }
 0x21b   : > { %v7189_v19 = vadd.f32 %v2411_v8, %v7474_v12  ;;  %v4815_v22 = vpop.f32.mrb[102].mxu0 }
 0x21c   : > { %v2426_v43 = vadd.f32 %v4815_v22, %v7102_v56  ;;  %v2420_v27 = vpop.f32.mrb[103].mxu0 }
 0x21d   : > { %v2421_v40 = vadd.f32 %v2420_v27, %v7092_v1  ;;  %v3247_v34 = vpop.f32.mrb[118].mxu1 }
 0x21e   : > { %v7194_v38 = vadd.f32 %v2426_v43, %v7025_v28  ;;  %v3249_v6 = vpop.f32.mrb[119].mxu1 }
 0x21f   : > { %v7197_v42 = vadd.f32 %v2421_v40, %v7018_v36  ;;  %v4818_v37 = vpop.f32.mrb[104].mxu0 }
 0x220   : > { %v2436_v35 = vadd.f32 %v4818_v37, %v7122_v45  ;;  %v2430_v3 = vpop.f32.mrb[105].mxu0 }
 0x221   : > { %v2431_v13 = vadd.f32 %v2430_v3, %v7112_v29  ;;  %v3252_v14 = vpop.f32.mrb[120].mxu1 }
 0x222   : > { %v7202_v56 = vadd.f32 %v2436_v35, %v7037_v9  ;;  %v3254_v32 = vpop.f32.mrb[121].mxu1 }
 0x223   : > { %v7205_v1 = vadd.f32 %v2431_v13, %v7032_v31  ;;  %v4821_v28 = vpop.f32.mrb[106].mxu0  ;;  %v7217_v31 = vld [vmem:[%s7422_s2] ss:$0 sm:$0xff] }
 0x224   : > { %v2446_v8 = vadd.f32 %v4821_v28, %v2200_v54  ;;  %v2440_v21 = vpop.f32.mrb[107].mxu0 }
 0x225   : > { %v2441_v36 = vadd.f32 %v2440_v21, %v7132_v47  ;;  %v3257_v12 = vpop.f32.mrb[122].mxu1 }
 0x226   : > { %v7209_v22 = vadd.f32 %v2446_v8, %v7047_v17  ;;  %v3259_v45 = vpop.f32.mrb[123].mxu1 }
 0x227   : > { %v7212_v29 = vadd.f32 %v2441_v36, %v7042_v7  ;;  %v4856_v43 = vpop.f32.mrb[108].mxu0 }
 0x228   : > { %v3473_v9 = vadd.f32 %v4856_v43, %v3227_v46  ;;  %v3467_v27 = vpop.f32.mrb[109].mxu0 }
 0x229   : > { %v3262_v54 = vpop.f32.mrb[124].mxu1  ;;  %v3468_v40 = vadd.f32 %v3467_v27, %v7151_v10 }
 0x22a   : > { %v3647_v47 = vadd.f32 %v3473_v9, %v7056_v63  ;;  %v3264_v6 = vpop.f32.mrb[125].mxu1 }
 0x22b   : > { %v3646_v17 = vadd.f32 %v3468_v40, %v7059_v48  ;;  %v4859_v37 = vpop.f32.mrb[110].mxu0 }
 0x22c   : > { %v3762_v7 = vadd.f32 %v7217_v31, %v3647_v47  ;;  %v3483_v35 = vadd.f32 %v4859_v37, %v3237_v25  ;;  %v3477_v3 = vpop.f32.mrb[111].mxu0 }
 0x22d   : > { %v3761_v46 = vadd.f32 %v7217_v31, %v3646_v17  ;;  %v3267_v13 = vpop.f32.mrb[126].mxu1  ;;  %v3478_v32 = vadd.f32 %v3477_v3, %v3232_v62 }
 0x22e   : > { %v3798_v28 = vmax.f32 %v3762_v7, 0.0  ;;  %v3649_v8 = vadd.f32 %v3483_v35, %v7066_v20  ;;  %v3269_v21 = vpop.f32.mrb[127].mxu1 }
 0x22f   : > { %v3648_v10 = vadd.f32 %v3478_v32, %v7069_v51  ;;  %v4862_v36 = vpop.f32.mrb[112].mxu0  ;;  %v3797_v63 = vmax.f32 %v3761_v46, 0.0 }
 0x230   : > { %v3764_v45 = vadd.f32 %v7217_v31, %v3649_v8  ;;  %v3493_v48 = vadd.f32 %v4862_v36, %v3247_v34  ;;  %v3487_v43 = vpop.f32.mrb[113].mxu0  ;;  %v3834_v47 = vmin.f32 %v3798_v28, 6.0 }
 0x231   : > { %v3763_v9 = vadd.f32 %v7217_v31, %v3648_v10  ;;  %v3272_v25 = vpop.f32.mrb[128].mxu1  ;;  %v3488_v27 = vadd.f32 %v3487_v43, %v3242_v2  ;;  %v3833_v40 = vmin.f32 %v3797_v63, 6.0 }
 0x232   : > { %v3651_v62 = vadd.f32 %v3493_v48, %v7076_v58  ;;  %v3274_v6 = vpop.f32.mrb[129].mxu1  ;;  %v3800_v17 = vmax.f32 %v3764_v45, 0.0 }
 0x233   : > { %v3650_v20 = vadd.f32 %v3488_v27, %v7079_v0  ;;  %v4865_v37 = vpop.f32.mrb[114].mxu0  ;;  %4940 = vmatprep.mubr.f32.mxu0 %v3833_v40  ;;  %v3799_v51 = vmax.f32 %v3763_v9, 0.0 }
 0x234   : > { %v3766_v7 = vadd.f32 %v7217_v31, %v3651_v62  ;;  %v3503_v35 = vadd.f32 %v4865_v37, %v3257_v12  ;;  %v3497_v34 = vpop.f32.mrb[115].mxu0  ;;  %4941 = vmatmul.mubr.f32.vlgmr.msra.gmra.mrb[136].mxu0 %v3834_v47  ;;  %v3836_v8 = vmin.f32 %v3800_v17, 6.0 }
 0x235   : > { %v3765_v3 = vadd.f32 %v7217_v31, %v3650_v20  ;;  %v3277_v46 = vpop.f32.mrb[130].mxu1  ;;  %v3498_v2 = vadd.f32 %v3497_v34, %v3252_v14  ;;  %v3835_v32 = vmin.f32 %v3799_v51, 6.0 }
 0x236   : > { %v3653_v28 = vadd.f32 %v3503_v35, %v7086_v59  ;;  %v3279_v58 = vpop.f32.mrb[131].mxu1  ;;  %v3802_v21 = vmax.f32 %v3766_v7, 0.0 }
 0x237   : > { %v3652_v0 = vadd.f32 %v3498_v2, %v7089_v24  ;;  %v4868_v10 = vpop.f32.mrb[116].mxu0  ;;  %4943 = vmatprep.mubr.f32.mxu0 %v3835_v32  ;;  %v3801_v36 = vmax.f32 %v3765_v3, 0.0 }
 0x238   : > { %v3768_v63 = vadd.f32 %v7217_v31, %v3653_v28  ;;  %v3513_v12 = vadd.f32 %v4868_v10, %v3267_v13  ;;  %v3507_v45 = vpop.f32.mrb[117].mxu0  ;;  %4944 = vmatmul.mubr.f32.gmra.mrb[138].mxu0 %v3836_v8  ;;  %v3838_v40 = vmin.f32 %v3802_v21, 6.0 }
 0x239   : > { %v3767_v48 = vadd.f32 %v7217_v31, %v3652_v0  ;;  %v3282_v43 = vpop.f32.mrb[132].mxu1  ;;  %v3508_v14 = vadd.f32 %v3507_v45, %v3262_v54  ;;  %v3837_v9 = vmin.f32 %v3801_v36, 6.0 }
 0x23a   : > { %v3655_v59 = vadd.f32 %v3513_v12, %v7096_v23  ;;  %v3284_v27 = vpop.f32.mrb[133].mxu1  ;;  %v3804_v47 = vmax.f32 %v3768_v63, 0.0 }
 0x23b   : > { %v3654_v24 = vadd.f32 %v3508_v14, %v7099_v44  ;;  %v4871_v62 = vpop.f32.mrb[118].mxu0  ;;  %4946 = vmatprep.mubr.f32.mxu0 %v3837_v9  ;;  %v3803_v6 = vmax.f32 %v3767_v48, 0.0 }
 0x23c   : > { %v3770_v17 = vadd.f32 %v7217_v31, %v3655_v59  ;;  %v3523_v13 = vadd.f32 %v4871_v62, %v3277_v46  ;;  %v3517_v20 = vpop.f32.mrb[119].mxu0  ;;  %4947 = vmatmul.mubr.f32.gmra.mrb[140].mxu0 %v3838_v40  ;;  %v3840_v34 = vmin.f32 %v3804_v47, 6.0 }
 0x23d   : > { %v3769_v37 = vadd.f32 %v7217_v31, %v3654_v24  ;;  %v3287_v51 = vpop.f32.mrb[134].mxu1  ;;  %v3518_v54 = vadd.f32 %v3517_v20, %v3272_v25  ;;  %v3839_v7 = vmin.f32 %v3803_v6, 6.0 }
 0x23e   : > { %v3657_v23 = vadd.f32 %v3523_v13, %v7106_v55  ;;  %v3289_v35 = vpop.f32.mrb[135].mxu1  ;;  %v3806_v3 = vmax.f32 %v3770_v17, 0.0 }
 0x23f   : > { %v3656_v44 = vadd.f32 %v3518_v54, %v7109_v49  ;;  %v4874_v2 = vpop.f32.mrb[120].mxu0  ;;  %4949 = vmatprep.mubr.f32.mxu0 %v3839_v7  ;;  %v3805_v32 = vmax.f32 %v3769_v37, 0.0 }
 0x240   : > { %v3772_v28 = vadd.f32 %v7217_v31, %v3657_v23  ;;  %v3533_v46 = vadd.f32 %v4874_v2, %v3287_v51  ;;  %v3527_v58 = vpop.f32.mrb[121].mxu0  ;;  %4950 = vmatmul.mubr.f32.gmra.mrb[142].mxu0 %v3840_v34  ;;  %v3842_v36 = vmin.f32 %v3806_v3, 6.0 }
 0x241   : > { %v3771_v8 = vadd.f32 %v7217_v31, %v3656_v44  ;;  %v3292_v21 = vpop.f32.mrb[136].mxu1  ;;  %v3528_v25 = vadd.f32 %v3527_v58, %v3282_v43  ;;  %v3841_v0 = vmin.f32 %v3805_v32, 6.0 }
 0x242   : > { %v3659_v55 = vadd.f32 %v3533_v46, %v7116_v60  ;;  %v3294_v10 = vpop.f32.mrb[137].mxu1  ;;  %v3808_v63 = vmax.f32 %v3772_v28, 0.0 }
 0x243   : > { %v3658_v49 = vadd.f32 %v3528_v25, %v7119_v11  ;;  %v4877_v12 = vpop.f32.mrb[122].mxu0  ;;  %4952 = vmatprep.mubr.f32.mxu0 %v3841_v0  ;;  %v3807_v45 = vmax.f32 %v3771_v8, 0.0 }
 0x244   : > { %v3774_v48 = vadd.f32 %v7217_v31, %v3659_v55  ;;  %v3537_v14 = vpop.f32.mrb[123].mxu0  ;;  %4953 = vmatmul.mubr.f32.gmra.mrb[144].mxu0 %v3842_v36  ;;  %v3844_v60 = vmin.f32 %v3808_v63, 6.0 }
 0x245   : > { %v3773_v9 = vadd.f32 %v7217_v31, %v3658_v49  ;;  %v3297_v59 = vpop.f32.mrb[138].mxu1  ;;  %v3538_v27 = vadd.f32 %v3537_v14, %v3292_v21  ;;  %v3843_v43 = vmin.f32 %v3807_v45, 6.0 }
 0x246   : > { %v3543_v40 = vadd.f32 %v4877_v12, %v3297_v59  ;;  %v3299_v47 = vpop.f32.mrb[139].mxu1  ;;  %v3810_v24 = vmax.f32 %v3774_v48, 0.0 }
 0x247   : > { %v3660_v62 = vadd.f32 %v3538_v27, %v7129_v15  ;;  %v4880_v6 = vpop.f32.mrb[124].mxu0  ;;  %4955 = vmatprep.mubr.f32.mxu0 %v3843_v43  ;;  %v3809_v11 = vmax.f32 %v3773_v9, 0.0 }
 0x248   : > { %v3661_v17 = vadd.f32 %v3543_v40, %v7126_v39  ;;  %v3547_v13 = vpop.f32.mrb[125].mxu0  ;;  %4956 = vmatmul.mubr.f32.gmra.mrb[146].mxu0 %v3844_v60  ;;  %v3846_v35 = vmin.f32 %v3810_v24, 6.0 }
 0x249   : > { %v3775_v20 = vadd.f32 %v7217_v31, %v3660_v62  ;;  %v3302_v37 = vpop.f32.mrb[140].mxu1  ;;  %v3845_v51 = vmin.f32 %v3809_v11, 6.0 }
 0x24a   : > { %v3776_v54 = vadd.f32 %v7217_v31, %v3661_v17  ;;  %v3548_v7 = vadd.f32 %v3547_v13, %v3302_v37  ;;  %v3304_v23 = vpop.f32.mrb[141].mxu1 }
 0x24b   : > { %4958 = vmatprep.mubr.f32.mxu0 %v3845_v51  ;;  %v4883_v34 = vpop.f32.mrb[126].mxu0  ;;  %v3811_v3 = vmax.f32 %v3775_v20, 0.0 }
 0x24c   : > { %v3662_v15 = vadd.f32 %v3548_v7, %v7139_v41  ;;  %4959 = vmatmul.mubr.f32.gmra.mrb[148].mxu0 %v3846_v35  ;;  %v3557_v44 = vpop.f32.mrb[127].mxu0  ;;  %v3812_v2 = vmax.f32 %v3776_v54, 0.0 }
 0x24d   : > { %v3307_v39 = vpop.f32.mrb[142].mxu1  ;;  %v3847_v32 = vmin.f32 %v3811_v3, 6.0 }
 0x24e   : > { %v3777_v28 = vadd.f32 %v7217_v31, %v3662_v15  ;;  %v3553_v46 = vadd.f32 %v4880_v6, %v3307_v39  ;;  %v3309_v58 = vpop.f32.mrb[143].mxu1  ;;  %v3848_v8 = vmin.f32 %v3812_v2, 6.0 }
 0x24f   : > { %4961 = vmatprep.mubr.f32.mxu0 %v3847_v32  ;;  %v4886_v21 = vpop.f32.mrb[128].mxu0 }
 0x250   : > { %v3663_v25 = vadd.f32 %v3553_v46, %v7136_v61  ;;  %4962 = vmatmul.mubr.f32.gmra.mrb[150].mxu0 %v3848_v8  ;;  %v3813_v0 = vmax.f32 %v3777_v28, 0.0  ;;  %v3567_v55 = vpop.f32.mrb[129].mxu0 }
 0x251   : > { %v3312_v10 = vpop.f32.mrb[144].mxu1 }
 0x252   : > { %v3778_v41 = vadd.f32 %v7217_v31, %v3663_v25  ;;  %v3558_v36 = vadd.f32 %v3557_v44, %v3312_v10  ;;  %v3314_v63 = vpop.f32.mrb[145].mxu1  ;;  %v3849_v49 = vmin.f32 %v3813_v0, 6.0 }
 0x253   : > { %v4889_v12 = vpop.f32.mrb[130].mxu0 }
 0x254   : > { %v3664_v45 = vadd.f32 %v3558_v36, %v7147_v30  ;;  %4964 = vmatprep.mubr.f32.mxu0 %v3849_v49  ;;  %v3814_v48 = vmax.f32 %v3778_v41, 0.0  ;;  %v3577_v14 = vpop.f32.mrb[131].mxu0 }
 0x255   : > { %v3317_v9 = vpop.f32.mrb[146].mxu1 }
 0x256   : > { %v3779_v59 = vadd.f32 %v7217_v31, %v3664_v45  ;;  %v3563_v27 = vadd.f32 %v4883_v34, %v3317_v9  ;;  %v3319_v61 = vpop.f32.mrb[147].mxu1  ;;  %v3850_v43 = vmin.f32 %v3814_v48, 6.0 }
 0x257   : > { %v4892_v40 = vpop.f32.mrb[132].mxu0 }
 0x258   : > { %v3665_v47 = vadd.f32 %v3563_v27, %v7144_v33  ;;  %4965 = vmatmul.mubr.f32.gmra.mrb[152].mxu0 %v3850_v43  ;;  %v3815_v60 = vmax.f32 %v3779_v59, 0.0  ;;  %v3587_v24 = vpop.f32.mrb[133].mxu0 }
 0x259   : > { %v3322_v62 = vpop.f32.mrb[148].mxu1 }
 0x25a   : > { %v3780_v6 = vadd.f32 %v7217_v31, %v3665_v47  ;;  %v3568_v11 = vadd.f32 %v3567_v55, %v3322_v62  ;;  %v3324_v30 = vpop.f32.mrb[149].mxu1  ;;  %v3851_v17 = vmin.f32 %v3815_v60, 6.0 }
 0x25b   : > { %v4895_v13 = vpop.f32.mrb[134].mxu0 }
 0x25c   : > { %v3666_v20 = vadd.f32 %v3568_v11, %v7157_v26  ;;  %4967 = vmatprep.mubr.f32.mxu0 %v3851_v17  ;;  %v3816_v37 = vmax.f32 %v3780_v6, 0.0  ;;  %v3597_v51 = vpop.f32.mrb[135].mxu0 }
 0x25d   : > { %v3327_v54 = vpop.f32.mrb[150].mxu1 }
 0x25e   : > { %v3781_v7 = vadd.f32 %v7217_v31, %v3666_v20  ;;  %v3573_v23 = vadd.f32 %v4886_v21, %v3327_v54  ;;  %v3329_v33 = vpop.f32.mrb[151].mxu1  ;;  %v3852_v35 = vmin.f32 %v3816_v37, 6.0 }
 0x260   : > { %v3667_v34 = vadd.f32 %v3573_v23, %v7154_v18  ;;  %4968 = vmatmul.mubr.f32.gmra.mrb[154].mxu0 %v3852_v35  ;;  %v3817_v3 = vmax.f32 %v3781_v7, 0.0 }
 0x261   : > { %v3332_v15 = vpop.f32.mrb[152].mxu1 }
 0x262   : > { %v3782_v44 = vadd.f32 %v7217_v31, %v3667_v34  ;;  %v3578_v2 = vadd.f32 %v3577_v14, %v3332_v15  ;;  %v3334_v39 = vpop.f32.mrb[153].mxu1  ;;  %v3853_v32 = vmin.f32 %v3817_v3, 6.0 }
 0x264   : > { %v3668_v26 = vadd.f32 %v3578_v2, %v7165_v16  ;;  %4970 = vmatprep.mubr.f32.mxu0 %v3853_v32  ;;  %v3818_v28 = vmax.f32 %v3782_v44, 0.0 }
 0x265   : > { %v3337_v46 = vpop.f32.mrb[154].mxu1 }
 0x266   : > { %v3783_v58 = vadd.f32 %v7217_v31, %v3668_v26  ;;  %v3583_v8 = vadd.f32 %v4889_v12, %v3337_v46  ;;  %v3339_v21 = vpop.f32.mrb[155].mxu1  ;;  %v3854_v25 = vmin.f32 %v3818_v28, 6.0 }
 0x268   : > { %v3669_v18 = vadd.f32 %v3583_v8, %v7162_v53  ;;  %4971 = vmatmul.mubr.f32.gmra.mrb[156].mxu0 %v3854_v25  ;;  %v3819_v0 = vmax.f32 %v3783_v58, 0.0 }
 0x269   : > { %v3342_v55 = vpop.f32.mrb[156].mxu1 }
 0x26a   : > { %v3784_v10 = vadd.f32 %v7217_v31, %v3669_v18  ;;  %v3588_v41 = vadd.f32 %v3587_v24, %v3342_v55  ;;  %v3344_v36 = vpop.f32.mrb[157].mxu1  ;;  %v3855_v63 = vmin.f32 %v3819_v0, 6.0 }
 0x26c   : > { %v3670_v16 = vadd.f32 %v3588_v41, %v7173_v5  ;;  %4973 = vmatprep.mubr.f32.mxu0 %v3855_v63  ;;  %v3820_v49 = vmax.f32 %v3784_v10, 0.0 }
 0x26d   : > { %v3347_v45 = vpop.f32.mrb[158].mxu1 }
 0x26e   : > { %v3785_v48 = vadd.f32 %v7217_v31, %v3670_v16  ;;  %v3593_v12 = vadd.f32 %v4892_v40, %v3347_v45  ;;  %v3349_v14 = vpop.f32.mrb[159].mxu1  ;;  %v3856_v9 = vmin.f32 %v3820_v49, 6.0 }
 0x270   : > { %v3671_v53 = vadd.f32 %v3593_v12, %v7170_v50  ;;  %4974 = vmatmul.mubr.f32.gmra.mrb[158].mxu0 %v3856_v9  ;;  %v3821_v59 = vmax.f32 %v3785_v48, 0.0 }
 0x271   : > { %v3352_v27 = vpop.f32.mrb[160].mxu1 }
 0x272   : > { %v3786_v61 = vadd.f32 %v7217_v31, %v3671_v53  ;;  %v3598_v43 = vadd.f32 %v3597_v51, %v3352_v27  ;;  %v3354_v47 = vpop.f32.mrb[161].mxu1  ;;  %v3857_v60 = vmin.f32 %v3821_v59, 6.0 }
 0x274   : > { %v3672_v5 = vadd.f32 %v3598_v43, %v7181_v57  ;;  %4976 = vmatprep.mubr.f32.mxu0 %v3857_v60  ;;  %v3822_v24 = vmax.f32 %v3786_v61, 0.0 }
 0x275   : > { %v3357_v62 = vpop.f32.mrb[162].mxu1 }
 0x276   : > { %v3787_v6 = vadd.f32 %v7217_v31, %v3672_v5  ;;  %v3603_v40 = vadd.f32 %v4895_v13, %v3357_v62  ;;  %v3359_v11 = vpop.f32.mrb[163].mxu1  ;;  %v3858_v30 = vmin.f32 %v3822_v24, 6.0 }
 0x278   : > { %v3673_v50 = vadd.f32 %v3603_v40, %v7178_v52  ;;  %4977 = vmatmul.mubr.f32.gmra.mrb[160].mxu0 %v3858_v30  ;;  %v3823_v17 = vmax.f32 %v3787_v6, 0.0 }
 0x279   : > { %v3362_v20 = vpop.f32.mrb[164].mxu1 }
 0x27a   : > { %v3788_v37 = vadd.f32 %v7217_v31, %v3673_v50  ;;  %v3364_v51 = vpop.f32.mrb[165].mxu1  ;;  %v3859_v54 = vmin.f32 %v3823_v17, 6.0 }
 0x27c   : > { %4979 = vmatprep.mubr.f32.mxu0 %v3859_v54  ;;  %v3824_v7 = vmax.f32 %v3788_v37, 0.0 }
 0x27d   : > { %v3367_v57 = vpop.f32.mrb[166].mxu1 }
 0x27e   : > { %v3369_v23 = vpop.f32.mrb[167].mxu1  ;;  %v3860_v33 = vmin.f32 %v3824_v7, 6.0 }
 0x280   : > { %4980 = vmatmul.mubr.f32.gmra.mrb[162].mxu0 %v3860_v33 }
 0x281   : > { %v3372_v35 = vpop.f32.mrb[168].mxu1 }
 0x282   : > { %v3374_v34 = vpop.f32.mrb[169].mxu1 }
 0x285   : > { %v3377_v13 = vpop.f32.mrb[170].mxu1 }
 0x286   : > { %v3379_v3 = vpop.f32.mrb[171].mxu1 }
 0x289   : > { %v3382_v15 = vpop.f32.mrb[172].mxu1 }
 0x28a   : > { %v3384_v44 = vpop.f32.mrb[173].mxu1 }
 0x28d   : > { %v3387_v52 = vpop.f32.mrb[174].mxu1 }
 0x28e   : > { %v3389_v2 = vpop.f32.mrb[175].mxu1 }
 0x291   : > { %v3392_v39 = vpop.f32.mrb[176].mxu1 }
 0x292   : > { %v3394_v32 = vpop.f32.mrb[177].mxu1 }
 0x295   : > { %v3397_v26 = vpop.f32.mrb[178].mxu1 }
 0x296   : > { %v3399_v28 = vpop.f32.mrb[179].mxu1 }
 0x299   : > { %v4898_v46 = vpop.f32.mrb[180].mxu1 }
 0x29a   : > { %v3613_v58 = vadd.f32 %v4898_v46, %v3367_v57  ;;  %v3607_v8 = vpop.f32.mrb[181].mxu1 }
 0x29b   : > { %v3608_v21 = vadd.f32 %v3607_v8, %v3362_v20 }
 0x29c   : > { %v3675_v25 = vadd.f32 %v3613_v58, %v7186_v4 }
 0x29d   : > { %v3674_v18 = vadd.f32 %v3608_v21, %v7189_v19  ;;  %v4901_v0 = vpop.f32.mrb[182].mxu1 }
 0x29e   : > { %v3790_v55 = vadd.f32 %v7217_v31, %v3675_v25  ;;  %v3623_v10 = vadd.f32 %v4901_v0, %v3377_v13  ;;  %v3617_v41 = vpop.f32.mrb[183].mxu1 }
 0x29f   : > { %v3789_v36 = vadd.f32 %v7217_v31, %v3674_v18  ;;  %v3618_v63 = vadd.f32 %v3617_v41, %v3372_v35 }
 0x2a0   : > { %v3677_v16 = vadd.f32 %v3623_v10, %v7194_v38  ;;  %v3826_v49 = vmax.f32 %v3790_v55, 0.0 }
 0x2a1   : > { %v3676_v45 = vadd.f32 %v3618_v63, %v7197_v42  ;;  %v4904_v48 = vpop.f32.mrb[184].mxu1  ;;  %v3825_v12 = vmax.f32 %v3789_v36, 0.0 }
 0x2a2   : > { %v3792_v14 = vadd.f32 %v7217_v31, %v3677_v16  ;;  %v3633_v4 = vadd.f32 %v4904_v48, %v3387_v52  ;;  %v3627_v9 = vpop.f32.mrb[185].mxu1  ;;  %v3862_v61 = vmin.f32 %v3826_v49, 6.0 }
 0x2a3   : > { %v3791_v19 = vadd.f32 %v7217_v31, %v3676_v45  ;;  %v3628_v53 = vadd.f32 %v3627_v9, %v3382_v15  ;;  %v3861_v59 = vmin.f32 %v3825_v12, 6.0 }
 0x2a4   : > { %v3679_v27 = vadd.f32 %v3633_v4, %v7202_v56  ;;  %v3828_v43 = vmax.f32 %v3792_v14, 0.0 }
 0x2a5   : > { %v3678_v47 = vadd.f32 %v3628_v53, %v7205_v1  ;;  %v4907_v38 = vpop.f32.mrb[186].mxu1  ;;  %4982 = vmatprep.mubr.f32.mxu0 %v3861_v59  ;;  %v3827_v60 = vmax.f32 %v3791_v19, 0.0 }
 0x2a6   : > { %v3794_v42 = vadd.f32 %v7217_v31, %v3679_v27  ;;  %v3643_v5 = vadd.f32 %v4907_v38, %v3397_v26  ;;  %v3637_v24 = vpop.f32.mrb[187].mxu1  ;;  %4983 = vmatmul.mubr.f32.gmra.mrb[164].mxu0 %v3862_v61  ;;  %v3864_v30 = vmin.f32 %v3828_v43, 6.0 }
 0x2a7   : > { %v3793_v62 = vadd.f32 %v7217_v31, %v3678_v47  ;;  %v3638_v6 = vadd.f32 %v3637_v24, %v3392_v39  ;;  %v3863_v40 = vmin.f32 %v3827_v60, 6.0 }
 0x2a8   : > { %v3681_v11 = vadd.f32 %v3643_v5, %v7209_v22  ;;  %v3830_v56 = vmax.f32 %v3794_v42, 0.0 }
 0x2a9   : > { %v3680_v50 = vadd.f32 %v3638_v6, %v7212_v29  ;;  %4985 = vmatprep.mubr.f32.mxu0 %v3863_v40  ;;  %v3829_v1 = vmax.f32 %v3793_v62, 0.0  ;;  %v7295_v29 = vld [vmem:[%s7424_s4] ss:$0 sm:$0xff] }
 0x2aa   : > { %v3796_v17 = vadd.f32 %v7217_v31, %v3681_v11  ;;  %4986 = vmatmul.mubr.f32.gmra.mrb[166].mxu0 %v3864_v30  ;;  %v3866_v51 = vmin.f32 %v3830_v56, 6.0 }
 0x2ab   : > { %v3795_v20 = vadd.f32 %v7217_v31, %v3680_v50  ;;  %v3865_v37 = vmin.f32 %v3829_v1, 6.0 }
 0x2ac   : > { %v3832_v54 = vmax.f32 %v3796_v17, 0.0 }
 0x2ad   : > { %4988 = vmatprep.mubr.f32.mxu0 %v3865_v37  ;;  %v3831_v7 = vmax.f32 %v3795_v20, 0.0 }
 0x2ae   : > { %4989 = vmatmul.mubr.f32.gmra.mrb[168].mxu0 %v3866_v51  ;;  %v3868_v22 = vmin.f32 %v3832_v54, 6.0 }
 0x2af   : > { %v3867_v57 = vmin.f32 %v3831_v7, 6.0 }
 0x2b1   : > { %4991 = vmatprep.mubr.f32.mxu0 %v3867_v57 }
 0x2b2   : > { %4992 = vmatmul.mubr.f32.gmra.mrb[170].mxu0 %v3868_v22 }
 0x307   : > { %v4942_v23 = vpop.f32.mrb[136].mxu0 }
 0x308   : > { %v3964_v33 = vadd.f32 %v4942_v23, %v7295_v29  ;;  %v3958_v31 = vpop.f32.mrb[137].mxu0 }
 0x309   : > { %v3959_v35 = vadd.f32 %v7295_v29, %v3958_v31 }
 0x30a   : > { %v4138_v34 = vmax.f32 %v3964_v33, 0.0 }
 0x30b   : > { %v4137_v13 = vmax.f32 %v3959_v35, 0.0  ;;  %v4945_v3 = vpop.f32.mrb[138].mxu0 }
 0x30c   : > { %v4174_v15 = vmin.f32 %v4138_v34, 6.0  ;;  %v3974_v44 = vadd.f32 %v4945_v3, %v7295_v29  ;;  %v3968_v52 = vpop.f32.mrb[139].mxu0 }
 0x30d   : > { %v4173_v2 = vmin.f32 %v4137_v13, 6.0  ;;  %v3969_v39 = vadd.f32 %v7295_v29, %v3968_v52 }
 0x30e   : > { %4211 = vst.msk [vmem:[%s7303_s16 + $0x8] sm:$0xff] %vm4209_vm6, %v4174_v15  ;;  %v4140_v32 = vmax.f32 %v3974_v44, 0.0 }
 0x30f   : > { %4210 = vst.msk [vmem:[%s7303_s16] sm:$0xff] %vm4209_vm6, %v4173_v2  ;;  %v4139_v26 = vmax.f32 %v3969_v39, 0.0  ;;  %v4948_v28 = vpop.f32.mrb[140].mxu0 }
 0x310   : > { %v4176_v46 = vmin.f32 %v4140_v32, 6.0  ;;  %v3984_v58 = vadd.f32 %v4948_v28, %v7295_v29  ;;  %v3978_v8 = vpop.f32.mrb[141].mxu0 }
 0x311   : > { %v4175_v21 = vmin.f32 %v4139_v26, 6.0  ;;  %v3979_v25 = vadd.f32 %v7295_v29, %v3978_v8 }
 0x312   : > { %4213 = vst.msk [vmem:[%s7303_s16 + $0x18] sm:$0xff] %vm4209_vm6, %v4176_v46  ;;  %v4142_v18 = vmax.f32 %v3984_v58, 0.0 }
 0x313   : > { %4212 = vst.msk [vmem:[%s7303_s16 + $0x10] sm:$0xff] %vm4209_vm6, %v4175_v21  ;;  %v4141_v0 = vmax.f32 %v3979_v25, 0.0  ;;  %v4951_v55 = vpop.f32.mrb[142].mxu0 }
 0x314   : > { %v4178_v10 = vmin.f32 %v4142_v18, 6.0  ;;  %v3994_v41 = vadd.f32 %v4951_v55, %v7295_v29  ;;  %v3988_v36 = vpop.f32.mrb[143].mxu0 }
 0x315   : > { %v4177_v63 = vmin.f32 %v4141_v0, 6.0  ;;  %v3989_v16 = vadd.f32 %v7295_v29, %v3988_v36 }
 0x316   : > { %4215 = vst.msk [vmem:[%s7303_s16 + $0x28] sm:$0xff] %vm4209_vm6, %v4178_v10  ;;  %v4144_v49 = vmax.f32 %v3994_v41, 0.0 }
 0x317   : > { %4214 = vst.msk [vmem:[%s7303_s16 + $0x20] sm:$0xff] %vm4209_vm6, %v4177_v63  ;;  %v4143_v45 = vmax.f32 %v3989_v16, 0.0  ;;  %v4954_v48 = vpop.f32.mrb[144].mxu0 }
 0x318   : > { %v4180_v12 = vmin.f32 %v4144_v49, 6.0  ;;  %v4004_v14 = vadd.f32 %v4954_v48, %v7295_v29  ;;  %v3998_v4 = vpop.f32.mrb[145].mxu0 }
 0x319   : > { %v4179_v9 = vmin.f32 %v4143_v45, 6.0  ;;  %v3999_v19 = vadd.f32 %v7295_v29, %v3998_v4 }
 0x31a   : > { %4217 = vst.msk [vmem:[%s7303_s16 + $0x38] sm:$0xff] %vm4209_vm6, %v4180_v12  ;;  %v4146_v53 = vmax.f32 %v4004_v14, 0.0 }
 0x31b   : > { %4216 = vst.msk [vmem:[%s7303_s16 + $0x30] sm:$0xff] %vm4209_vm6, %v4179_v9  ;;  %v4145_v59 = vmax.f32 %v3999_v19, 0.0  ;;  %v4957_v27 = vpop.f32.mrb[146].mxu0 }
 0x31c   : > { %v4182_v61 = vmin.f32 %v4146_v53, 6.0  ;;  %v4014_v43 = vadd.f32 %v4957_v27, %v7295_v29  ;;  %v4008_v47 = vpop.f32.mrb[147].mxu0 }
 0x31d   : > { %v4181_v38 = vmin.f32 %v4145_v59, 6.0  ;;  %v4009_v60 = vadd.f32 %v7295_v29, %v4008_v47 }
 0x31e   : > { %4219 = vst.msk [vmem:[%s7303_s16 + $0x48] sm:$0xff] %vm4209_vm6, %v4182_v61  ;;  %v4148_v42 = vmax.f32 %v4014_v43, 0.0 }
 0x31f   : > { %4218 = vst.msk [vmem:[%s7303_s16 + $0x40] sm:$0xff] %vm4209_vm6, %v4181_v38  ;;  %v4147_v5 = vmax.f32 %v4009_v60, 0.0  ;;  %v4960_v24 = vpop.f32.mrb[148].mxu0 }
 0x320   : > { %v4184_v62 = vmin.f32 %v4148_v42, 6.0  ;;  %v4024_v6 = vadd.f32 %v4960_v24, %v7295_v29  ;;  %v4018_v40 = vpop.f32.mrb[149].mxu0 }
 0x321   : > { %v4183_v11 = vmin.f32 %v4147_v5, 6.0  ;;  %v4019_v30 = vadd.f32 %v7295_v29, %v4018_v40 }
 0x322   : > { %4221 = vst.msk [vmem:[%s7303_s16 + $0x58] sm:$0xff] %vm4209_vm6, %v4184_v62  ;;  %v4150_v56 = vmax.f32 %v4024_v6, 0.0 }
 0x323   : > { %4220 = vst.msk [vmem:[%s7303_s16 + $0x50] sm:$0xff] %vm4209_vm6, %v4183_v11  ;;  %v4149_v50 = vmax.f32 %v4019_v30, 0.0  ;;  %v4963_v1 = vpop.f32.mrb[150].mxu0 }
 0x324   : > { %v4186_v17 = vmin.f32 %v4150_v56, 6.0  ;;  %v4034_v20 = vadd.f32 %v4963_v1, %v7295_v29  ;;  %v4028_v37 = vpop.f32.mrb[151].mxu0 }
 0x325   : > { %v4185_v51 = vmin.f32 %v4149_v50, 6.0  ;;  %v4029_v54 = vadd.f32 %v7295_v29, %v4028_v37 }
 0x326   : > { %4223 = vst.msk [vmem:[%s7303_s16 + $0x68] sm:$0xff] %vm4209_vm6, %v4186_v17  ;;  %v4152_v7 = vmax.f32 %v4034_v20, 0.0 }
 0x327   : > { %4222 = vst.msk [vmem:[%s7303_s16 + $0x60] sm:$0xff] %vm4209_vm6, %v4185_v51  ;;  %v4151_v57 = vmax.f32 %v4029_v54, 0.0 }
 0x328   : > { %v4188_v22 = vmin.f32 %v4152_v7, 6.0 }
 0x329   : > { %v4187_v23 = vmin.f32 %v4151_v57, 6.0 }
 0x32a   : > { %4225 = vst.msk [vmem:[%s7303_s16 + $0x78] sm:$0xff] %vm4209_vm6, %v4188_v22 }
 0x32b   : > { %4224 = vst.msk [vmem:[%s7303_s16 + $0x70] sm:$0xff] %vm4209_vm6, %v4187_v23  ;;  %v4966_v33 = vpop.f32.mrb[152].mxu0 }
 0x32c   : > { %v4044_v31 = vadd.f32 %v4966_v33, %v7295_v29  ;;  %v4038_v35 = vpop.f32.mrb[153].mxu0 }
 0x32d   : > { %v4039_v34 = vadd.f32 %v7295_v29, %v4038_v35 }
 0x32e   : > { %v4154_v13 = vmax.f32 %v4044_v31, 0.0 }
 0x32f   : > { %v4153_v3 = vmax.f32 %v4039_v34, 0.0 }
 0x330   : > { %v4190_v15 = vmin.f32 %v4154_v13, 6.0 }
 0x331   : > { %v4189_v44 = vmin.f32 %v4153_v3, 6.0 }
 0x332   : > { %4227 = vst.msk [vmem:[%s7303_s16 + $0x88] sm:$0xff] %vm4209_vm6, %v4190_v15 }
 0x333   : > { %4226 = vst.msk [vmem:[%s7303_s16 + $0x80] sm:$0xff] %vm4209_vm6, %v4189_v44  ;;  %v4969_v52 = vpop.f32.mrb[154].mxu0 }
 0x334   : > { %v4054_v2 = vadd.f32 %v4969_v52, %v7295_v29  ;;  %v4048_v39 = vpop.f32.mrb[155].mxu0 }
 0x335   : > { %v4049_v32 = vadd.f32 %v7295_v29, %v4048_v39 }
 0x336   : > { %v4156_v26 = vmax.f32 %v4054_v2, 0.0 }
 0x337   : > { %v4155_v28 = vmax.f32 %v4049_v32, 0.0 }
 0x338   : > { %v4192_v46 = vmin.f32 %v4156_v26, 6.0 }
 0x339   : > { %v4191_v58 = vmin.f32 %v4155_v28, 6.0 }
 0x33a   : > { %4229 = vst.msk [vmem:[%s7303_s16 + $0x98] sm:$0xff] %vm4209_vm6, %v4192_v46 }
 0x33b   : > { %4228 = vst.msk [vmem:[%s7303_s16 + $0x90] sm:$0xff] %vm4209_vm6, %v4191_v58  ;;  %v4972_v8 = vpop.f32.mrb[156].mxu0 }
 0x33c   : > { %v4064_v21 = vadd.f32 %v4972_v8, %v7295_v29  ;;  %v4058_v25 = vpop.f32.mrb[157].mxu0 }
 0x33d   : > { %v4059_v18 = vadd.f32 %v7295_v29, %v4058_v25 }
 0x33e   : > { %v4158_v0 = vmax.f32 %v4064_v21, 0.0 }
 0x33f   : > { %v4157_v55 = vmax.f32 %v4059_v18, 0.0 }
 0x340   : > { %v4194_v10 = vmin.f32 %v4158_v0, 6.0 }
 0x341   : > { %v4193_v41 = vmin.f32 %v4157_v55, 6.0 }
 0x342   : > { %4231 = vst.msk [vmem:[%s7303_s16 + $0xa8] sm:$0xff] %vm4209_vm6, %v4194_v10 }
 0x343   : > { %4230 = vst.msk [vmem:[%s7303_s16 + $0xa0] sm:$0xff] %vm4209_vm6, %v4193_v41  ;;  %v4975_v36 = vpop.f32.mrb[158].mxu0 }
 0x344   : > { %v4074_v63 = vadd.f32 %v4975_v36, %v7295_v29  ;;  %v4068_v16 = vpop.f32.mrb[159].mxu0 }
 0x345   : > { %v4069_v49 = vadd.f32 %v7295_v29, %v4068_v16 }
 0x346   : > { %v4160_v45 = vmax.f32 %v4074_v63, 0.0 }
 0x347   : > { %v4159_v48 = vmax.f32 %v4069_v49, 0.0 }
 0x348   : > { %v4196_v12 = vmin.f32 %v4160_v45, 6.0 }
 0x349   : > { %v4195_v14 = vmin.f32 %v4159_v48, 6.0 }
 0x34a   : > { %4233 = vst.msk [vmem:[%s7303_s16 + $0xb8] sm:$0xff] %vm4209_vm6, %v4196_v12 }
 0x34b   : > { %4232 = vst.msk [vmem:[%s7303_s16 + $0xb0] sm:$0xff] %vm4209_vm6, %v4195_v14  ;;  %v4978_v4 = vpop.f32.mrb[160].mxu0 }
 0x34c   : > { %v4084_v9 = vadd.f32 %v4978_v4, %v7295_v29  ;;  %v4078_v19 = vpop.f32.mrb[161].mxu0 }
 0x34d   : > { %v4079_v53 = vadd.f32 %v7295_v29, %v4078_v19 }
 0x34e   : > { %v4162_v59 = vmax.f32 %v4084_v9, 0.0 }
 0x34f   : > { %v4161_v27 = vmax.f32 %v4079_v53, 0.0 }
 0x350   : > { %v4198_v61 = vmin.f32 %v4162_v59, 6.0 }
 0x351   : > { %v4197_v43 = vmin.f32 %v4161_v27, 6.0 }
 0x352   : > { %4235 = vst.msk [vmem:[%s7303_s16 + $0xc8] sm:$0xff] %vm4209_vm6, %v4198_v61 }
 0x353   : > { %4234 = vst.msk [vmem:[%s7303_s16 + $0xc0] sm:$0xff] %vm4209_vm6, %v4197_v43  ;;  %v4981_v47 = vpop.f32.mrb[162].mxu0 }
 0x354   : > { %v4094_v38 = vadd.f32 %v4981_v47, %v7295_v29  ;;  %v4088_v60 = vpop.f32.mrb[163].mxu0 }
 0x355   : > { %v4089_v42 = vadd.f32 %v7295_v29, %v4088_v60 }
 0x356   : > { %v4164_v5 = vmax.f32 %v4094_v38, 0.0 }
 0x357   : > { %v4163_v24 = vmax.f32 %v4089_v42, 0.0 }
 0x358   : > { %v4200_v62 = vmin.f32 %v4164_v5, 6.0 }
 0x359   : > { %v4199_v6 = vmin.f32 %v4163_v24, 6.0 }
 0x35a   : > { %4237 = vst.msk [vmem:[%s7303_s16 + $0xd8] sm:$0xff] %vm4209_vm6, %v4200_v62 }
 0x35b   : > { %4236 = vst.msk [vmem:[%s7303_s16 + $0xd0] sm:$0xff] %vm4209_vm6, %v4199_v6 }
 0x379   : > { %v4984_v40 = vpop.f32.mrb[164].mxu0 }
 0x37a   : > { %v4104_v11 = vadd.f32 %v4984_v40, %v7295_v29  ;;  %v4098_v30 = vpop.f32.mrb[165].mxu0 }
 0x37b   : > { %v4099_v56 = vadd.f32 %v7295_v29, %v4098_v30 }
 0x37c   : > { %v4166_v50 = vmax.f32 %v4104_v11, 0.0 }
 0x37d   : > { %v4165_v1 = vmax.f32 %v4099_v56, 0.0  ;;  %v4987_v17 = vpop.f32.mrb[166].mxu0 }
 0x37e   : > { %v4202_v20 = vmin.f32 %v4166_v50, 6.0  ;;  %v4114_v37 = vadd.f32 %v4987_v17, %v7295_v29  ;;  %v4108_v51 = vpop.f32.mrb[167].mxu0 }
 0x37f   : > { %v4201_v54 = vmin.f32 %v4165_v1, 6.0  ;;  %v4109_v7 = vadd.f32 %v7295_v29, %v4108_v51 }
 0x380   : > { %4239 = vst.msk [vmem:[%s7303_s16 + $0xe8] sm:$0xff] %vm4209_vm6, %v4202_v20  ;;  %v4168_v57 = vmax.f32 %v4114_v37, 0.0 }
 0x381   : > { %4238 = vst.msk [vmem:[%s7303_s16 + $0xe0] sm:$0xff] %vm4209_vm6, %v4201_v54  ;;  %v4167_v22 = vmax.f32 %v4109_v7, 0.0  ;;  %v4990_v23 = vpop.f32.mrb[168].mxu0 }
 0x382   : > { %v4204_v33 = vmin.f32 %v4168_v57, 6.0  ;;  %v4124_v31 = vadd.f32 %v4990_v23, %v7295_v29  ;;  %v4118_v35 = vpop.f32.mrb[169].mxu0 }
 0x383   : > { %v4203_v34 = vmin.f32 %v4167_v22, 6.0  ;;  %v4119_v13 = vadd.f32 %v7295_v29, %v4118_v35 }
 0x384   : > { %4241 = vst.msk [vmem:[%s7303_s16 + $0xf8] sm:$0xff] %vm4209_vm6, %v4204_v33  ;;  %v4170_v3 = vmax.f32 %v4124_v31, 0.0 }
 0x385   : > { %4240 = vst.msk [vmem:[%s7303_s16 + $0xf0] sm:$0xff] %vm4209_vm6, %v4203_v34  ;;  %v4169_v15 = vmax.f32 %v4119_v13, 0.0  ;;  %v4993_v44 = vpop.f32.mrb[170].mxu0 }
 0x386   : > { %v4206_v52 = vmin.f32 %v4170_v3, 6.0  ;;  %v4134_v2 = vadd.f32 %v4993_v44, %v7295_v29  ;;  %v4128_v39 = vpop.f32.mrb[171].mxu0 }
 0x387   : > { %v4205_v32 = vmin.f32 %v4169_v15, 6.0  ;;  %v4129_v26 = vadd.f32 %v7295_v29, %v4128_v39 }
 0x388   : > { %4243 = vst.msk [vmem:[%s7303_s16 + $0x108] sm:$0xff] %vm4209_vm6, %v4206_v52  ;;  %v4172_v28 = vmax.f32 %v4134_v2, 0.0 }
 0x389   : > { %4242 = vst.msk [vmem:[%s7303_s16 + $0x100] sm:$0xff] %vm4209_vm6, %v4205_v32  ;;  %v4171_v46 = vmax.f32 %v4129_v26, 0.0 }
 0x38a   : > { %v4208_v58 = vmin.f32 %v4172_v28, 6.0 }
 0x38b   : > { %v4207_v8 = vmin.f32 %v4171_v46, 6.0 }
 0x38c   : > { %4245 = vst.msk [vmem:[%s7303_s16 + $0x118] sm:$0xff] %vm4209_vm6, %v4208_v58 }
 0x38d   : > { %4244 = vst.msk [vmem:[%s7303_s16 + $0x110] sm:$0xff] %vm4209_vm6, %v4207_v8 }
 0x38e PF: > { %s16_s20 = sadd.s32 1, %s5377_s20   ;;  %s7475_s18 = smov %s5373_s19 }
 0x38f   : > { %p13_p4 = scmp.ge.s32.totalorder %s16_s20, 4   ;;  %s7476_s19 = smov %s7478_s22 }
 0x391   :  { %15 = sbr.rel (!%p13_p4) target bundleno = 2 (0x2), region = 80 }
 0x398   :  { %4276 = vsyncpa [#allocation5], 1 }
 0x399   :  { %4278 = vsyncpa [#allocation5 + $0x1], 1 }

</bundles_post_ra>
